<compile_context>
chip_gen: v5e
topology: v5e:2x2
jax: 0.10.0
libtpu: 0.0.40
codegen_flags: <defaults>
</compile_context>

<pallas_src>
import numpy as np
import jax
import jax.numpy as jnp
from jax import lax
from jax.experimental import pallas as pl
from jax.experimental.pallas import tpu as pltpu

# ----------------------------------------------------------------------------
# Config (grid_conf) — matches the 200x200 BEV in the module docstring
# ----------------------------------------------------------------------------
XBOUND = [-50.0, 50.0, 0.5]
YBOUND = [-50.0, 50.0, 0.5]
ZBOUND = [-10.0, 10.0, 20.0]

DX = np.array([XBOUND[2], YBOUND[2]], dtype=np.float64)                 # (0.5, 0.5)
BX = np.array([XBOUND[0] + XBOUND[2] / 2.0,
               YBOUND[0] + YBOUND[2] / 2.0], dtype=np.float64)          # (-49.75, -49.75)
BEV_H = int(round((XBOUND[1] - XBOUND[0]) / XBOUND[2]))                 # 200
BEV_W = int(round((YBOUND[1] - YBOUND[0]) / YBOUND[2]))                 # 200

CAR_W = 1.85
CAR_H = 4.084
HEADWAY_L = 10.0
SAFETY_LAMBDA_CELLS = int(1.0 / DX[0])                                  # 2

SEG = 256           # lane-aligned segment stride inside the fused-map slab


def origin_offset_ranges(lam_cells):
    """Replicates BaseCost.get_origin_points + skimage.draw.polygon for the
    axis-aligned rectangular footprint: the filled pixels are exactly the
    integer grid points strictly inside the (fractional-corner) rectangle,
    i.e. a full Cartesian product [rlo, rhi] x [clo, chi]."""
    pts = np.array(
        [[-CAR_H / 2.0 + 0.5 - lam_cells,  CAR_W / 2.0 + lam_cells],
         [ CAR_H / 2.0 + 0.5 + lam_cells,  CAR_W / 2.0 + lam_cells],
         [ CAR_H / 2.0 + 0.5 + lam_cells, -CAR_W / 2.0 - lam_cells],
         [-CAR_H / 2.0 + 0.5 - lam_cells, -CAR_W / 2.0 - lam_cells]],
        dtype=np.float64)
    pts = (pts - BX) / DX
    r_vals, c_vals = pts[:, 1], pts[:, 0]          # polygon(pts[:,1], pts[:,0])
    rlo = int(np.floor(r_vals.min())) + 1
    rhi = int(np.ceil(r_vals.max())) - 1
    clo = int(np.floor(c_vals.min())) + 1
    chi = int(np.ceil(c_vals.max())) - 1
    return rlo, rhi, clo, chi


RLO0, RHI0, CLO0, CHI0 = origin_offset_ranges(0)                      # lambda = 0
RLO2, RHI2, CLO2, CHI2 = origin_offset_ranges(SAFETY_LAMBDA_CELLS)    # lambda = 2 cells


# ----------------------------------------------------------------------------
# Pallas kernel: one batch element per grid step, maps resident in VMEM.
# ----------------------------------------------------------------------------
def _make_kernel(Np):
    dx0, dx1 = float(DX[0]), float(DX[1])
    bx0, bx1 = float(BX[0]), float(BX[1])
    HB, WB = BEV_H, BEV_W
    BIG = 1 << 20          # plain Python int: never captured as a jax constant

    def kernel(traj_ref, cv_ref, occ_ref, driv_ref, out_ref, slab_ref):
        f32 = jnp.float32
        trajs = traj_ref[...].astype(f32)                    # (Np, 2)
        x = trajs[:, 0:1]                                    # (Np, 1)
        y = trajs[:, 1:2]

        occ = occ_ref[...].astype(f32)                       # (200, 200) binary
        driv = driv_ref[...].astype(f32)
        cvol = cv_ref[...]
        if cvol.dtype != f32:
            cvol = cvol.astype(f32)

        # --- fused binary-map slab: one MXU weight-stream for all three maps.
        # Segments start at 256-aligned lanes; the (200, 56) gap columns are
        # never read back (matmul output columns are independent of other
        # input columns), so they may remain uninitialized.
        slab_ref[:, 0:WB] = occ                                        # safety
        slab_ref[:, SEG:SEG + WB] = occ * driv                         # headway
        slab_ref[:, 2 * SEG:2 * SEG + WB] = (driv == 0.0).astype(f32)  # rule

        # base cell indices (floor + integer offset == torch trunc + clamp)
        xi  = jnp.floor(x / dx0).astype(jnp.int32)                     # rows
        yi  = jnp.floor(y / dx1).astype(jnp.int32)                     # cols
        yih = jnp.floor((y + HEADWAY_L) / dx1).astype(jnp.int32)       # headway cols
        xd  = jnp.clip(jnp.floor((x - bx0) / dx0).astype(jnp.int32), 0, HB - 1)
        yd  = jnp.clip(jnp.floor((y - bx1) / dx1).astype(jnp.int32), 0, WB - 1)

        zi = jnp.zeros_like(xi)

        # Stacked row groups: [Wr0 (lam=0) | Wr2 (lam=1m) | one-hot for cvol]
        row_idx = jnp.concatenate([xi, xi, xd], axis=0)                # (3Np, 1)
        row_lo  = jnp.concatenate([zi + RLO0, zi + RLO2, zi], axis=0)
        row_hi  = jnp.concatenate([zi + RHI0, zi + RHI2, zi], axis=0)

        # Stacked column groups: [Wc0 | Wc2 | Wc0 shifted by headway | one-hot]
        col_idx = jnp.concatenate([yi, yi, yih, yd], axis=0)           # (4Np, 1)
        col_lo  = jnp.concatenate([zi + CLO0, zi + CLO2, zi + CLO0, zi], axis=0)
        col_hi  = jnp.concatenate([zi + CHI0, zi + CHI2, zi + CHI0, zi], axis=0)

        def counts(idx, lo, hi, length):
            # counts[g, j] = #{p in [lo,hi] : clamp(idx + p, 0, length-1) == j}
            j = lax.broadcasted_iota(jnp.int32, (1, length), 1)
            lo_j = jnp.where(j == 0, -BIG, j - idx)
            hi_j = jnp.where(j == length - 1, BIG, j - idx)
            c = jnp.minimum(hi, hi_j) - jnp.maximum(lo, lo_j) + 1
            return jnp.maximum(c, 0).astype(f32)

        # TODO(synk): for production N in the hundreds, build these in bf16
        # (counts are small integers, exact) and pad N to a 128 multiple for a
        # lane-dense output.
        Wrow = counts(row_idx, row_lo, row_hi, HB)          # (3Np, 200)
        Wcol = counts(col_idx, col_lo, col_hi, WB)          # (4Np, 200)

        Wr01 = Wrow[:2 * Np, :]                             # [Wr0 ; Wr2]
        OHr  = Wrow[2 * Np:, :]
        Wc0  = Wcol[:Np, :]
        Wc2  = Wcol[Np:2 * Np, :]
        Wc0h = Wcol[2 * Np:3 * Np, :]
        OHc  = Wcol[3 * Np:, :]

        # Single MXU call for occ / occ*driv / !driv.  Counts (<=16) and the
        # binary maps are exact in bf16, so default matmul precision is exact.
        # (If soft/probabilistic occupancy maps are ever used, the binary-input
        # contract is broken and this matmul would lose ~3 decimal digits.)
        A = jnp.dot(Wr01, slab_ref[...], preferred_element_type=f32)   # (2Np, 3*SEG)

        # cost_volume holds arbitrary f32: split into three bf16 terms so the
        # strict one-hot gather stays exact with plain bf16 MXU matmuls.
        oh_r = OHr.astype(jnp.bfloat16)
        c1 = cvol.astype(jnp.bfloat16)
        r1 = cvol - c1.astype(f32)
        c2 = r1.astype(jnp.bfloat16)
        c3 = (r1 - c2.astype(f32)).astype(jnp.bfloat16)
        A_cv = (jnp.dot(oh_r, c1, preferred_element_type=f32)
                + jnp.dot(oh_r, c2, preferred_element_type=f32)
                + jnp.dot(oh_r, c3, preferred_element_type=f32))       # (Np, 200)

        s1   = jnp.sum(A[:Np, 0:WB] * Wc0, axis=-1, keepdims=True)              # (Np,1)
        s2   = jnp.sum(A[Np:, 0:WB] * Wc2, axis=-1, keepdims=True)
        hd   = jnp.sum(A[:Np, SEG:SEG + WB] * Wc0h, axis=-1, keepdims=True)
        rl   = jnp.sum(A[:Np, 2 * SEG:2 * SEG + WB] * Wc0, axis=-1, keepdims=True)
        cv_g = jnp.sum(A_cv * OHc, axis=-1, keepdims=True)

        vel = jnp.sqrt(x * x + y * y) / 0.5                  # (Np, 1)

        safety  = jnp.clip(0.1 * (s1 * 1.0 + s2 * vel * 1.0), 0.0, 100.0)
        headway = jnp.clip(1.0 * hd, 0.0, 100.0)
        rule    = jnp.clip(5.0 * rl, 0.0, 100.0)
        # clamp(C,0,1000) commutes with the strict one-hot gather
        cvcost  = jnp.clip(100.0 * jnp.clip(cv_g, 0.0, 1000.0), 0.0, 100.0)

        out_ref[...] = safety + headway + cvcost + rule      # (Np, 1)

    return kernel


def cost_function(cost_volume, trajs, instance_occupancy, drivable_area):
    """JAX wrapper matching Cost_Function.forward(cost_volume, trajs, occ, driv).

    instance_occupancy / drivable_area may be passed as bf16 / int8 binary
    masks to cut HBM traffic (the kernel casts to f32 internally); cost_volume
    should stay f32.
    """
    B, N, _ = trajs.shape
    # Pad trajectory count to a sublane multiple so every row/column group
    # slice inside the kernel stays (8,128)-tile aligned.
    Np = ((N + 7) // 8) * 8
    if Np != N:
        trajs = jnp.concatenate(
            [trajs, jnp.zeros((B, Np - N, 2), trajs.dtype)], axis=1)

    kernel = _make_kernel(Np)
    out = pl.pallas_call(
        kernel,
        out_shape=jax.ShapeDtypeStruct((B, Np, 1), jnp.float32),
        grid_spec=pltpu.PrefetchScalarGridSpec(
            num_scalar_prefetch=0,
            # One batch element per step: grid length == B, so steps pipeline
            # and shard across TensorCores (never collapses to G=1 for B>=2).
            grid=(B,),
            in_specs=[
                pl.BlockSpec((None, Np, 2), lambda b: (b, 0, 0)),
                pl.BlockSpec((None, BEV_H, BEV_W), lambda b: (b, 0, 0)),
                pl.BlockSpec((None, BEV_H, BEV_W), lambda b: (b, 0, 0)),
                pl.BlockSpec((None, BEV_H, BEV_W), lambda b: (b, 0, 0)),
            ],
            out_specs=pl.BlockSpec((None, Np, 1), lambda b: (b, 0, 0)),
            # fused-map slab: [occ | occ*driv | !driv] at 256-aligned segments
            scratch_shapes=[pltpu.VMEM((BEV_H, 3 * SEG), jnp.float32)],
        ),
        compiler_params=pltpu.CompilerParams(
            dimension_semantics=("parallel",),          # shard batch across TCs
            vmem_limit_bytes=32 * 1024 * 1024),
    )(trajs, cost_volume, instance_occupancy, drivable_area)
    return out[:, :N, 0]


# ----------------------------------------------------------------------------
# Pure numpy reference (faithful to the PyTorch semantics) for sanity checking
# ----------------------------------------------------------------------------
def _offsets_rc(lam_cells):
    rlo, rhi, clo, chi = origin_offset_ranges(lam_cells)
    R, C = np.meshgrid(np.arange(rlo, rhi + 1), np.arange(clo, chi + 1),
                       indexing="ij")
    return np.stack([R.ravel(), C.ravel()], axis=-1).astype(np.float64)   # (P, 2)


def _compute_area_ref(occ, trajs, vel=None, lam=0.0):
    B, N, _ = trajs.shape
    rc = _offsets_rc(int(lam / DX[0]))
    t = trajs[:, :, None, :].astype(np.float64) / DX      # (B, N, 1, 2)
    t = t + rc                                            # (B, N, P, 2)
    rr = np.clip(t[..., 0].astype(np.int64), 0, BEV_H - 1)   # trunc toward zero
    cc = np.clip(t[..., 1].astype(np.int64), 0, BEV_W - 1)
    ii = np.arange(B)[:, None, None]
    sub = occ[ii, rr, cc].sum(-1)
    if vel is not None:
        sub = sub * vel
    return sub


def cost_function_ref(cost_volume, trajs, occ, driv):
    B, N, _ = trajs.shape
    vel = np.sqrt((trajs ** 2).sum(-1)) / 0.5
    safety = np.clip(
        0.1 * (_compute_area_ref(occ, trajs)
               + _compute_area_ref(occ, trajs, vel, 1.0)), 0.0, 100.0)
    tmp = trajs.copy()
    tmp[:, :, 1] = tmp[:, :, 1] + HEADWAY_L
    headway = np.clip(_compute_area_ref(occ * driv, tmp), 0.0, 100.0)
    rule = np.clip(5.0 * _compute_area_ref((driv == 0.0).astype(np.float32), trajs),
                   0.0, 100.0)
    C = np.clip(cost_volume, 0.0, 1000.0)
    xi = np.clip(((trajs[:, :, 0] - np.float32(BX[0])) / np.float32(DX[0])
                  ).astype(np.int64), 0, BEV_H - 1)
    yi = np.clip(((trajs[:, :, 1] - np.float32(BX[1])) / np.float32(DX[1])
                  ).astype(np.int64), 0, BEV_W - 1)
    ii = np.arange(B)[:, None]
    cvc = np.clip(100.0 * C[ii, xi, yi], 0.0, 100.0)
    return safety + headway + cvc + rule


# ----------------------------------------------------------------------------
if __name__ == "__main__":
    B, N = 2, 8
    key = jax.random.PRNGKey(0)
    k1, k2, k3, k4 = jax.random.split(key, 4)

    trajs = jax.random.uniform(k1, (B, N, 2), jnp.float32, minval=-20.0, maxval=20.0)
    cost_volume = jax.random.uniform(k2, (B, BEV_H, BEV_W), jnp.float32,
                                     minval=0.0, maxval=2.0)
    # Binary masks passed as bf16 ({0,1} is exact) to halve mask HBM traffic.
    instance_occupancy = (jax.random.uniform(k3, (B, BEV_H, BEV_W)) > 0.7
                          ).astype(jnp.bfloat16)
    drivable_area = (jax.random.uniform(k4, (B, BEV_H, BEV_W)) > 0.3
                     ).astype(jnp.bfloat16)

    out = cost_function(cost_volume, trajs, instance_occupancy, drivable_area)
    out = jax.block_until_ready(out)

    ref = cost_function_ref(
        np.asarray(cost_volume), np.asarray(trajs),
        np.asarray(instance_occupancy.astype(jnp.float32)),
        np.asarray(drivable_area.astype(jnp.float32)))
    np.testing.assert_allclose(np.asarray(out), ref, rtol=1e-4, atol=1e-3)

    print("KERNEL_OK")
</pallas_src>

<mosaic_0001>
module attributes {stable_mosaic.version = 11 : i64} {
  func.func @kernel(%arg0: i32, %arg1: memref<1x8x2xf32, #tpu.memory_space<vmem>>, %arg2: memref<1x200x200xf32, #tpu.memory_space<vmem>>, %arg3: memref<1x200x200xbf16, #tpu.memory_space<vmem>>, %arg4: memref<1x200x200xbf16, #tpu.memory_space<vmem>>, %arg5: memref<1x8x1xf32, #tpu.memory_space<vmem>>, %arg6: memref<200x768xf32, #tpu.memory_space<vmem>>) attributes {dimension_semantics = [#tpu.dimension_semantics<parallel>], iteration_bounds = array<i64: 2>, scalar_prefetch = 0 : i64, scratch_operands = 1 : i64, tpu.core_type = #tpu.core_type<tc>, window_params = [{transform_indices = @transform_0, window_bounds = array<i64: 1, 8, 2>}, {transform_indices = @transform_1, window_bounds = array<i64: 1, 200, 200>}, {transform_indices = @transform_2, window_bounds = array<i64: 1, 200, 200>}, {transform_indices = @transform_3, window_bounds = array<i64: 1, 200, 200>}, {transform_indices = @transform_4, window_bounds = array<i64: 1, 8, 1>}]} {
    %c0 = arith.constant 0 : index
    %c0_0 = arith.constant 0 : index
    %c0_1 = arith.constant 0 : index
    %0 = vector.load %arg1[%c0, %c0_0, %c0_1] : memref<1x8x2xf32, #tpu.memory_space<vmem>>, vector<1x8x2xf32>
    %1 = vector.shape_cast %0 : vector<1x8x2xf32> to vector<8x2xf32>
    %2 = vector.extract_strided_slice %1 {offsets = [0, 0], sizes = [8, 1], strides = [1, 1]} : vector<8x2xf32> to vector<8x1xf32>
    %3 = vector.extract_strided_slice %1 {offsets = [0, 1], sizes = [8, 1], strides = [1, 1]} : vector<8x2xf32> to vector<8x1xf32>
    %c0_2 = arith.constant 0 : index
    %c0_3 = arith.constant 0 : index
    %c0_4 = arith.constant 0 : index
    %4 = vector.load %arg3[%c0_2, %c0_3, %c0_4] : memref<1x200x200xbf16, #tpu.memory_space<vmem>>, vector<1x200x200xbf16>
    %5 = vector.shape_cast %4 : vector<1x200x200xbf16> to vector<200x200xbf16>
    %6 = arith.extf %5 : vector<200x200xbf16> to vector<200x200xf32>
    %c0_5 = arith.constant 0 : index
    %c0_6 = arith.constant 0 : index
    %c0_7 = arith.constant 0 : index
    %7 = vector.load %arg4[%c0_5, %c0_6, %c0_7] : memref<1x200x200xbf16, #tpu.memory_space<vmem>>, vector<1x200x200xbf16>
    %8 = vector.shape_cast %7 : vector<1x200x200xbf16> to vector<200x200xbf16>
    %9 = arith.extf %8 : vector<200x200xbf16> to vector<200x200xf32>
    %c0_8 = arith.constant 0 : index
    %c0_9 = arith.constant 0 : index
    %c0_10 = arith.constant 0 : index
    %10 = vector.load %arg2[%c0_8, %c0_9, %c0_10] : memref<1x200x200xf32, #tpu.memory_space<vmem>>, vector<1x200x200xf32>
    %11 = vector.shape_cast %10 : vector<1x200x200xf32> to vector<200x200xf32>
    %c0_11 = arith.constant 0 : index
    %c0_12 = arith.constant 0 : index
    %12 = vector.load %arg6[%c0_11, %c0_12] : memref<200x768xf32, #tpu.memory_space<vmem>>, vector<200x200xf32>
    tpu.vector_store %arg6[%c0_11, %c0_12], %6 {strides = array<i32>} : memref<200x768xf32, #tpu.memory_space<vmem>>, vector<200x200xf32>,
    %13 = arith.mulf %6, %9 : vector<200x200xf32>
    %c0_13 = arith.constant 0 : index
    %c256 = arith.constant 256 : index
    %14 = vector.load %arg6[%c0_13, %c256] : memref<200x768xf32, #tpu.memory_space<vmem>>, vector<200x200xf32>
    tpu.vector_store %arg6[%c0_13, %c256], %13 {strides = array<i32>} : memref<200x768xf32, #tpu.memory_space<vmem>>, vector<200x200xf32>,
    %cst = arith.constant 0.000000e+00 : f32
    %15 = vector.broadcast %cst : f32 to vector<200x200xf32>
    %16 = arith.cmpf oeq, %9, %15 : vector<200x200xf32>
    %17 = arith.extui %16 : vector<200x200xi1> to vector<200x200xi32>
    %18 = arith.sitofp %17 : vector<200x200xi32> to vector<200x200xf32>
    %c0_14 = arith.constant 0 : index
    %c512 = arith.constant 512 : index
    %19 = vector.load %arg6[%c0_14, %c512] : memref<200x768xf32, #tpu.memory_space<vmem>>, vector<200x200xf32>
    tpu.vector_store %arg6[%c0_14, %c512], %18 {strides = array<i32>} : memref<200x768xf32, #tpu.memory_space<vmem>>, vector<200x200xf32>,
    %cst_15 = arith.constant 5.000000e-01 : f32
    %20 = vector.broadcast %cst_15 : f32 to vector<8x1xf32>
    %21 = arith.divf %2, %20 : vector<8x1xf32>
    %22 = math.floor %21 : vector<8x1xf32>
    %23 = arith.fptosi %22 : vector<8x1xf32> to vector<8x1xi32>
    %cst_16 = arith.constant 5.000000e-01 : f32
    %24 = vector.broadcast %cst_16 : f32 to vector<8x1xf32>
    %25 = arith.divf %3, %24 : vector<8x1xf32>
    %26 = math.floor %25 : vector<8x1xf32>
    %27 = arith.fptosi %26 : vector<8x1xf32> to vector<8x1xi32>
    %cst_17 = arith.constant 1.000000e+01 : f32
    %28 = vector.broadcast %cst_17 : f32 to vector<8x1xf32>
    %29 = arith.addf %3, %28 : vector<8x1xf32>
    %cst_18 = arith.constant 5.000000e-01 : f32
    %30 = vector.broadcast %cst_18 : f32 to vector<8x1xf32>
    %31 = arith.divf %29, %30 : vector<8x1xf32>
    %32 = math.floor %31 : vector<8x1xf32>
    %33 = arith.fptosi %32 : vector<8x1xf32> to vector<8x1xi32>
    %cst_19 = arith.constant -4.975000e+01 : f32
    %34 = vector.broadcast %cst_19 : f32 to vector<8x1xf32>
    %35 = arith.subf %2, %34 : vector<8x1xf32>
    %cst_20 = arith.constant 5.000000e-01 : f32
    %36 = vector.broadcast %cst_20 : f32 to vector<8x1xf32>
    %37 = arith.divf %35, %36 : vector<8x1xf32>
    %38 = math.floor %37 : vector<8x1xf32>
    %39 = arith.fptosi %38 : vector<8x1xf32> to vector<8x1xi32>
    %c0_i32 = arith.constant 0 : i32
    %c199_i32 = arith.constant 199 : i32
    %40 = vector.broadcast %c0_i32 : i32 to vector<8x1xi32>
    %41 = arith.maxsi %40, %39 : vector<8x1xi32>
    %42 = vector.broadcast %c199_i32 : i32 to vector<8x1xi32>
    %43 = arith.minsi %42, %41 : vector<8x1xi32>
    %cst_21 = arith.constant -4.975000e+01 : f32
    %44 = vector.broadcast %cst_21 : f32 to vector<8x1xf32>
    %45 = arith.subf %3, %44 : vector<8x1xf32>
    %cst_22 = arith.constant 5.000000e-01 : f32
    %46 = vector.broadcast %cst_22 : f32 to vector<8x1xf32>
    %47 = arith.divf %45, %46 : vector<8x1xf32>
    %48 = math.floor %47 : vector<8x1xf32>
    %49 = arith.fptosi %48 : vector<8x1xf32> to vector<8x1xi32>
    %c0_i32_23 = arith.constant 0 : i32
    %c199_i32_24 = arith.constant 199 : i32
    %50 = vector.broadcast %c0_i32_23 : i32 to vector<8x1xi32>
    %51 = arith.maxsi %50, %49 : vector<8x1xi32>
    %52 = vector.broadcast %c199_i32_24 : i32 to vector<8x1xi32>
    %53 = arith.minsi %52, %51 : vector<8x1xi32>
    %c0_i32_25 = arith.constant 0 : i32
    %54 = vector.broadcast %c0_i32_25 : i32 to vector<8x1xi32>
    %55 = tpu.concatenate %23, %23, %43 in 0 : vector<8x1xi32>, vector<8x1xi32>, vector<8x1xi32> -> vector<24x1xi32>
    %c98_i32 = arith.constant 98 : i32
    %56 = vector.broadcast %c98_i32 : i32 to vector<8x1xi32>
    %57 = arith.addi %54, %56 : vector<8x1xi32>
    %c94_i32 = arith.constant 94 : i32
    %58 = vector.broadcast %c94_i32 : i32 to vector<8x1xi32>
    %59 = arith.addi %54, %58 : vector<8x1xi32>
    %60 = tpu.concatenate %57, %59, %54 in 0 : vector<8x1xi32>, vector<8x1xi32>, vector<8x1xi32> -> vector<24x1xi32>
    %c101_i32 = arith.constant 101 : i32
    %61 = vector.broadcast %c101_i32 : i32 to vector<8x1xi32>
    %62 = arith.addi %54, %61 : vector<8x1xi32>
    %c105_i32 = arith.constant 105 : i32
    %63 = vector.broadcast %c105_i32 : i32 to vector<8x1xi32>
    %64 = arith.addi %54, %63 : vector<8x1xi32>
    %65 = tpu.concatenate %62, %64, %54 in 0 : vector<8x1xi32>, vector<8x1xi32>, vector<8x1xi32> -> vector<24x1xi32>
    %66 = tpu.concatenate %27, %27, %33, %53 in 0 : vector<8x1xi32>, vector<8x1xi32>, vector<8x1xi32>, vector<8x1xi32> -> vector<32x1xi32>
    %c97_i32 = arith.constant 97 : i32
    %67 = vector.broadcast %c97_i32 : i32 to vector<8x1xi32>
    %68 = arith.addi %54, %67 : vector<8x1xi32>
    %c93_i32 = arith.constant 93 : i32
    %69 = vector.broadcast %c93_i32 : i32 to vector<8x1xi32>
    %70 = arith.addi %54, %69 : vector<8x1xi32>
    %c97_i32_26 = arith.constant 97 : i32
    %71 = vector.broadcast %c97_i32_26 : i32 to vector<8x1xi32>
    %72 = arith.addi %54, %71 : vector<8x1xi32>
    %73 = tpu.concatenate %68, %70, %72, %54 in 0 : vector<8x1xi32>, vector<8x1xi32>, vector<8x1xi32>, vector<8x1xi32> -> vector<32x1xi32>
    %c104_i32 = arith.constant 104 : i32
    %74 = vector.broadcast %c104_i32 : i32 to vector<8x1xi32>
    %75 = arith.addi %54, %74 : vector<8x1xi32>
    %c108_i32 = arith.constant 108 : i32
    %76 = vector.broadcast %c108_i32 : i32 to vector<8x1xi32>
    %77 = arith.addi %54, %76 : vector<8x1xi32>
    %c104_i32_27 = arith.constant 104 : i32
    %78 = vector.broadcast %c104_i32_27 : i32 to vector<8x1xi32>
    %79 = arith.addi %54, %78 : vector<8x1xi32>
    %80 = tpu.concatenate %75, %77, %79, %54 in 0 : vector<8x1xi32>, vector<8x1xi32>, vector<8x1xi32>, vector<8x1xi32> -> vector<32x1xi32>
    %81 = tpu.iota {dimensions = array<i32: 1>} : vector<1x200xi32>
    %c0_i32_28 = arith.constant 0 : i32
    %82 = vector.broadcast %c0_i32_28 : i32 to vector<1x200xi32>
    %83 = arith.cmpi eq, %81, %82 : vector<1x200xi32>
    %84 = vector.broadcast %81 : vector<1x200xi32> to vector<24x200xi32>
    %85 = vector.broadcast %55 : vector<24x1xi32> to vector<24x200xi32>
    %86 = arith.subi %84, %85 : vector<24x200xi32>
    %c-1048576_i32 = arith.constant -1048576 : i32
    %87 = vector.shape_cast %83 : vector<1x200xi1> to vector<1x200xi1>
    %88 = vector.broadcast %87 : vector<1x200xi1> to vector<24x200xi1>
    %89 = vector.broadcast %c-1048576_i32 : i32 to vector<24x200xi32>
    %90 = arith.select %88, %89, %86 : vector<24x200xi1>, vector<24x200xi32>
    %c199_i32_29 = arith.constant 199 : i32
    %91 = vector.broadcast %c199_i32_29 : i32 to vector<1x200xi32>
    %92 = arith.cmpi eq, %81, %91 : vector<1x200xi32>
    %93 = vector.broadcast %81 : vector<1x200xi32> to vector<24x200xi32>
    %94 = vector.broadcast %55 : vector<24x1xi32> to vector<24x200xi32>
    %95 = arith.subi %93, %94 : vector<24x200xi32>
    %c1048576_i32 = arith.constant 1048576 : i32
    %96 = vector.shape_cast %92 : vector<1x200xi1> to vector<1x200xi1>
    %97 = vector.broadcast %96 : vector<1x200xi1> to vector<24x200xi1>
    %98 = vector.broadcast %c1048576_i32 : i32 to vector<24x200xi32>
    %99 = arith.select %97, %98, %95 : vector<24x200xi1>, vector<24x200xi32>
    %100 = vector.broadcast %65 : vector<24x1xi32> to vector<24x200xi32>
    %101 = arith.minsi %100, %99 : vector<24x200xi32>
    %102 = vector.broadcast %60 : vector<24x1xi32> to vector<24x200xi32>
    %103 = arith.maxsi %102, %90 : vector<24x200xi32>
    %104 = arith.subi %101, %103 : vector<24x200xi32>
    %c1_i32 = arith.constant 1 : i32
    %105 = vector.broadcast %c1_i32 : i32 to vector<24x200xi32>
    %106 = arith.addi %104, %105 : vector<24x200xi32>
    %c0_i32_30 = arith.constant 0 : i32
    %107 = vector.broadcast %c0_i32_30 : i32 to vector<24x200xi32>
    %108 = arith.maxsi %106, %107 : vector<24x200xi32>
    %109 = arith.sitofp %108 : vector<24x200xi32> to vector<24x200xf32>
    %110 = tpu.iota {dimensions = array<i32: 1>} : vector<1x200xi32>
    %c0_i32_31 = arith.constant 0 : i32
    %111 = vector.broadcast %c0_i32_31 : i32 to vector<1x200xi32>
    %112 = arith.cmpi eq, %110, %111 : vector<1x200xi32>
    %113 = vector.broadcast %110 : vector<1x200xi32> to vector<32x200xi32>
    %114 = vector.broadcast %66 : vector<32x1xi32> to vector<32x200xi32>
    %115 = arith.subi %113, %114 : vector<32x200xi32>
    %c-1048576_i32_32 = arith.constant -1048576 : i32
    %116 = vector.shape_cast %112 : vector<1x200xi1> to vector<1x200xi1>
    %117 = vector.broadcast %116 : vector<1x200xi1> to vector<32x200xi1>
    %118 = vector.broadcast %c-1048576_i32_32 : i32 to vector<32x200xi32>
    %119 = arith.select %117, %118, %115 : vector<32x200xi1>, vector<32x200xi32>
    %c199_i32_33 = arith.constant 199 : i32
    %120 = vector.broadcast %c199_i32_33 : i32 to vector<1x200xi32>
    %121 = arith.cmpi eq, %110, %120 : vector<1x200xi32>
    %122 = vector.broadcast %110 : vector<1x200xi32> to vector<32x200xi32>
    %123 = vector.broadcast %66 : vector<32x1xi32> to vector<32x200xi32>
    %124 = arith.subi %122, %123 : vector<32x200xi32>
    %c1048576_i32_34 = arith.constant 1048576 : i32
    %125 = vector.shape_cast %121 : vector<1x200xi1> to vector<1x200xi1>
    %126 = vector.broadcast %125 : vector<1x200xi1> to vector<32x200xi1>
    %127 = vector.broadcast %c1048576_i32_34 : i32 to vector<32x200xi32>
    %128 = arith.select %126, %127, %124 : vector<32x200xi1>, vector<32x200xi32>
    %129 = vector.broadcast %80 : vector<32x1xi32> to vector<32x200xi32>
    %130 = arith.minsi %129, %128 : vector<32x200xi32>
    %131 = vector.broadcast %73 : vector<32x1xi32> to vector<32x200xi32>
    %132 = arith.maxsi %131, %119 : vector<32x200xi32>
    %133 = arith.subi %130, %132 : vector<32x200xi32>
    %c1_i32_35 = arith.constant 1 : i32
    %134 = vector.broadcast %c1_i32_35 : i32 to vector<32x200xi32>
    %135 = arith.addi %133, %134 : vector<32x200xi32>
    %c0_i32_36 = arith.constant 0 : i32
    %136 = vector.broadcast %c0_i32_36 : i32 to vector<32x200xi32>
    %137 = arith.maxsi %135, %136 : vector<32x200xi32>
    %138 = arith.sitofp %137 : vector<32x200xi32> to vector<32x200xf32>
    %139 = vector.extract_strided_slice %109 {offsets = [0, 0], sizes = [16, 200], strides = [1, 1]} : vector<24x200xf32> to vector<16x200xf32>
    %140 = vector.extract_strided_slice %109 {offsets = [16, 0], sizes = [8, 200], strides = [1, 1]} : vector<24x200xf32> to vector<8x200xf32>
    %141 = vector.extract_strided_slice %138 {offsets = [0, 0], sizes = [8, 200], strides = [1, 1]} : vector<32x200xf32> to vector<8x200xf32>
    %142 = vector.extract_strided_slice %138 {offsets = [8, 0], sizes = [8, 200], strides = [1, 1]} : vector<32x200xf32> to vector<8x200xf32>
    %143 = vector.extract_strided_slice %138 {offsets = [16, 0], sizes = [8, 200], strides = [1, 1]} : vector<32x200xf32> to vector<8x200xf32>
    %144 = vector.extract_strided_slice %138 {offsets = [24, 0], sizes = [8, 200], strides = [1, 1]} : vector<32x200xf32> to vector<8x200xf32>
    %c0_37 = arith.constant 0 : index
    %c0_38 = arith.constant 0 : index
    %145 = vector.load %arg6[%c0_37, %c0_38] : memref<200x768xf32, #tpu.memory_space<vmem>>, vector<200x768xf32>
    %cst_39 = arith.constant dense<0.000000e+00> : vector<16x768xf32>
    %146 = tpu.matmul %139, %145, %cst_39 {dimension_numbers = #tpu.dot_dimension_numbers<[1], [0], [0], [1], [0, 0, 1, 1], [], []>} : vector<16x200xf32>, vector<200x768xf32>, vector<16x768xf32> -> vector<16x768xf32>
    %147 = arith.truncf %140 : vector<8x200xf32> to vector<8x200xbf16>
    %148 = arith.truncf %11 : vector<200x200xf32> to vector<200x200xbf16>
    %149 = arith.extf %148 : vector<200x200xbf16> to vector<200x200xf32>
    %150 = arith.subf %11, %149 : vector<200x200xf32>
    %151 = arith.truncf %150 : vector<200x200xf32> to vector<200x200xbf16>
    %152 = arith.extf %151 : vector<200x200xbf16> to vector<200x200xf32>
    %153 = arith.subf %150, %152 : vector<200x200xf32>
    %154 = arith.truncf %153 : vector<200x200xf32> to vector<200x200xbf16>
    %cst_40 = arith.constant dense<0.000000e+00> : vector<8x200xf32>
    %155 = tpu.matmul %147, %148, %cst_40 {dimension_numbers = #tpu.dot_dimension_numbers<[1], [0], [0], [1], [0, 0, 1, 1], [], []>} : vector<8x200xbf16>, vector<200x200xbf16>, vector<8x200xf32> -> vector<8x200xf32>
    %cst_41 = arith.constant dense<0.000000e+00> : vector<8x200xf32>
    %156 = tpu.matmul %147, %151, %cst_41 {dimension_numbers = #tpu.dot_dimension_numbers<[1], [0], [0], [1], [0, 0, 1, 1], [], []>} : vector<8x200xbf16>, vector<200x200xbf16>, vector<8x200xf32> -> vector<8x200xf32>
    %157 = arith.addf %155, %156 : vector<8x200xf32>
    %cst_42 = arith.constant dense<0.000000e+00> : vector<8x200xf32>
    %158 = tpu.matmul %147, %154, %cst_42 {dimension_numbers = #tpu.dot_dimension_numbers<[1], [0], [0], [1], [0, 0, 1, 1], [], []>} : vector<8x200xbf16>, vector<200x200xbf16>, vector<8x200xf32> -> vector<8x200xf32>
    %159 = arith.addf %157, %158 : vector<8x200xf32>
    %160 = vector.extract_strided_slice %146 {offsets = [0, 0], sizes = [8, 200], strides = [1, 1]} : vector<16x768xf32> to vector<8x200xf32>
    %161 = arith.mulf %160, %141 : vector<8x200xf32>
    %cst_43 = arith.constant dense<0.000000e+00> : vector<8xf32>
    %162 = vector.multi_reduction <add>, %161, %cst_43 [1] : vector<8x200xf32> to vector<8xf32>
    %163 = vector.shape_cast %162 : vector<8xf32> to vector<8x1xf32>
    %164 = vector.extract_strided_slice %146 {offsets = [8, 0], sizes = [8, 200], strides = [1, 1]} : vector<16x768xf32> to vector<8x200xf32>
    %165 = arith.mulf %164, %142 : vector<8x200xf32>
    %cst_44 = arith.constant dense<0.000000e+00> : vector<8xf32>
    %166 = vector.multi_reduction <add>, %165, %cst_44 [1] : vector<8x200xf32> to vector<8xf32>
    %167 = vector.shape_cast %166 : vector<8xf32> to vector<8x1xf32>
    %168 = vector.extract_strided_slice %146 {offsets = [0, 256], sizes = [8, 200], strides = [1, 1]} : vector<16x768xf32> to vector<8x200xf32>
    %169 = arith.mulf %168, %143 : vector<8x200xf32>
    %cst_45 = arith.constant dense<0.000000e+00> : vector<8xf32>
    %170 = vector.multi_reduction <add>, %169, %cst_45 [1] : vector<8x200xf32> to vector<8xf32>
    %171 = vector.shape_cast %170 : vector<8xf32> to vector<8x1xf32>
    %172 = vector.extract_strided_slice %146 {offsets = [0, 512], sizes = [8, 200], strides = [1, 1]} : vector<16x768xf32> to vector<8x200xf32>
    %173 = arith.mulf %172, %141 : vector<8x200xf32>
    %cst_46 = arith.constant dense<0.000000e+00> : vector<8xf32>
    %174 = vector.multi_reduction <add>, %173, %cst_46 [1] : vector<8x200xf32> to vector<8xf32>
    %175 = vector.shape_cast %174 : vector<8xf32> to vector<8x1xf32>
    %176 = arith.mulf %159, %144 : vector<8x200xf32>
    %cst_47 = arith.constant dense<0.000000e+00> : vector<8xf32>
    %177 = vector.multi_reduction <add>, %176, %cst_47 [1] : vector<8x200xf32> to vector<8xf32>
    %178 = vector.shape_cast %177 : vector<8xf32> to vector<8x1xf32>
    %179 = arith.mulf %2, %2 : vector<8x1xf32>
    %180 = arith.mulf %3, %3 : vector<8x1xf32>
    %181 = arith.addf %179, %180 : vector<8x1xf32>
    %182 = math.sqrt %181 : vector<8x1xf32>
    %cst_48 = arith.constant 5.000000e-01 : f32
    %183 = vector.broadcast %cst_48 : f32 to vector<8x1xf32>
    %184 = arith.divf %182, %183 : vector<8x1xf32>
    %cst_49 = arith.constant 1.000000e+00 : f32
    %185 = vector.broadcast %cst_49 : f32 to vector<8x1xf32>
    %186 = arith.mulf %163, %185 : vector<8x1xf32>
    %187 = arith.mulf %167, %184 : vector<8x1xf32>
    %cst_50 = arith.constant 1.000000e+00 : f32
    %188 = vector.broadcast %cst_50 : f32 to vector<8x1xf32>
    %189 = arith.mulf %187, %188 : vector<8x1xf32>
    %190 = arith.addf %186, %189 : vector<8x1xf32>
    %cst_51 = arith.constant 1.000000e-01 : f32
    %191 = vector.broadcast %cst_51 : f32 to vector<8x1xf32>
    %192 = arith.mulf %191, %190 : vector<8x1xf32>
    %cst_52 = arith.constant 0.000000e+00 : f32
    %cst_53 = arith.constant 1.000000e+02 : f32
    %193 = vector.broadcast %cst_52 : f32 to vector<8x1xf32>
    %194 = arith.maximumf %193, %192 : vector<8x1xf32>
    %195 = vector.broadcast %cst_53 : f32 to vector<8x1xf32>
    %196 = arith.minimumf %195, %194 : vector<8x1xf32>
    %cst_54 = arith.constant 1.000000e+00 : f32
    %197 = vector.broadcast %cst_54 : f32 to vector<8x1xf32>
    %198 = arith.mulf %197, %171 : vector<8x1xf32>
    %cst_55 = arith.constant 0.000000e+00 : f32
    %cst_56 = arith.constant 1.000000e+02 : f32
    %199 = vector.broadcast %cst_55 : f32 to vector<8x1xf32>
    %200 = arith.maximumf %199, %198 : vector<8x1xf32>
    %201 = vector.broadcast %cst_56 : f32 to vector<8x1xf32>
    %202 = arith.minimumf %201, %200 : vector<8x1xf32>
    %cst_57 = arith.constant 5.000000e+00 : f32
    %203 = vector.broadcast %cst_57 : f32 to vector<8x1xf32>
    %204 = arith.mulf %203, %175 : vector<8x1xf32>
    %cst_58 = arith.constant 0.000000e+00 : f32
    %cst_59 = arith.constant 1.000000e+02 : f32
    %205 = vector.broadcast %cst_58 : f32 to vector<8x1xf32>
    %206 = arith.maximumf %205, %204 : vector<8x1xf32>
    %207 = vector.broadcast %cst_59 : f32 to vector<8x1xf32>
    %208 = arith.minimumf %207, %206 : vector<8x1xf32>
    %cst_60 = arith.constant 0.000000e+00 : f32
    %cst_61 = arith.constant 1.000000e+03 : f32
    %209 = vector.broadcast %cst_60 : f32 to vector<8x1xf32>
    %210 = arith.maximumf %209, %178 : vector<8x1xf32>
    %211 = vector.broadcast %cst_61 : f32 to vector<8x1xf32>
    %212 = arith.minimumf %211, %210 : vector<8x1xf32>
    %cst_62 = arith.constant 1.000000e+02 : f32
    %213 = vector.broadcast %cst_62 : f32 to vector<8x1xf32>
    %214 = arith.mulf %213, %212 : vector<8x1xf32>
    %cst_63 = arith.constant 0.000000e+00 : f32
    %cst_64 = arith.constant 1.000000e+02 : f32
    %215 = vector.broadcast %cst_63 : f32 to vector<8x1xf32>
    %216 = arith.maximumf %215, %214 : vector<8x1xf32>
    %217 = vector.broadcast %cst_64 : f32 to vector<8x1xf32>
    %218 = arith.minimumf %217, %216 : vector<8x1xf32>
    %219 = arith.addf %196, %202 : vector<8x1xf32>
    %220 = arith.addf %219, %218 : vector<8x1xf32>
    %221 = arith.addf %220, %208 : vector<8x1xf32>
    %c0_65 = arith.constant 0 : index
    %c0_66 = arith.constant 0 : index
    %c0_67 = arith.constant 0 : index
    %222 = vector.load %arg5[%c0_65, %c0_66, %c0_67] : memref<1x8x1xf32, #tpu.memory_space<vmem>>, vector<1x8x1xf32>
    %223 = vector.shape_cast %222 : vector<1x8x1xf32> to vector<8x1xf32>
    %224 = vector.shape_cast %221 : vector<8x1xf32> to vector<1x8x1xf32>
    tpu.vector_store %arg5[%c0_65, %c0_66, %c0_67], %224 {strides = array<i32>} : memref<1x8x1xf32, #tpu.memory_space<vmem>>, vector<1x8x1xf32>,
    return
  }
  func.func @transform_0(%arg0: i32) -> (i32, i32, i32) {
    %c0_i32 = arith.constant 0 : i32
    %c0_i32_0 = arith.constant 0 : i32
    %c0_i32_1 = arith.constant 0 : i32
    return %arg0, %c0_i32, %c0_i32_0 : i32, i32, i32
  }
  func.func @transform_1(%arg0: i32) -> (i32, i32, i32) {
    %c0_i32 = arith.constant 0 : i32
    %c0_i32_0 = arith.constant 0 : i32
    %c0_i32_1 = arith.constant 0 : i32
    return %arg0, %c0_i32, %c0_i32_0 : i32, i32, i32
  }
  func.func @transform_2(%arg0: i32) -> (i32, i32, i32) {
    %c0_i32 = arith.constant 0 : i32
    %c0_i32_0 = arith.constant 0 : i32
    %c0_i32_1 = arith.constant 0 : i32
    return %arg0, %c0_i32, %c0_i32_0 : i32, i32, i32
  }
  func.func @transform_3(%arg0: i32) -> (i32, i32, i32) {
    %c0_i32 = arith.constant 0 : i32
    %c0_i32_0 = arith.constant 0 : i32
    %c0_i32_1 = arith.constant 0 : i32
    return %arg0, %c0_i32, %c0_i32_0 : i32, i32, i32
  }
  func.func @transform_4(%arg0: i32) -> (i32, i32, i32) {
    %c0_i32 = arith.constant 0 : i32
    %c0_i32_0 = arith.constant 0 : i32
    %c0_i32_1 = arith.constant 0 : i32
    return %arg0, %c0_i32, %c0_i32_0 : i32, i32, i32
  }
}

</mosaic_0001>

<bundles_post_ra>
// kernel: tpu_custom_call.1
= control target key start
LH: loop header
LB: loop body
LE: loop exit
PB: predicated region body
PF: predicated region fallthrough
CT: control target
= control target key end

     0   :  { %9 = vsyncpa [#allocation4], 0  ;;  %s4782_s0 = inlined_call_operand.vmem [shape: f32[2,8,2], index: 0, kind: input, shape index: {}]   ;;  %s4783_s1 = inlined_call_operand.hbm [shape: f32[2,200,200], index: 1, kind: input, shape index: {}]   ;;  %s4784_s2 = inlined_call_operand.hbm [shape: bf16[2,200,200], index: 2, kind: input, shape index: {}]   ;;  %s4785_s3 = inlined_call_operand.hbm [shape: bf16[2,200,200], index: 3, kind: input, shape index: {}]   ;;  %s4786_s4 = inlined_call_operand.vmem [shape: f32[2,8,1], index: 4, kind: output, shape index: {}]  }
   0x1   :  { %11 = vsyncpa [#allocation4 + $0x1], 0 }
   0x2   :  { %12 = vsyncpa [#allocation6], 0 }
   0x3   :  { %14 = vsyncpa [#allocation6 + $0x1], 0  ;;  %s2861_s15 = smov 0   ;;  %s2863_s16 = smov 0  }
   0x4   :  { %s2865_s17 = smov 0   ;;  %s2867_s18 = smov 0  }
   0x5 LB: > { %s2880_s19 = sadd.s32 4294967295, %s2824_s18   ;;  %s2883_s20 = sadd.s32 1, %s2824_s18   ;;  %s2824_s18 = sphi %s2867_s18, %s5331_s18   ;;  %s2820_s17 = sphi %s2865_s17, %s5330_s17   ;;  %s2816_s16 = sphi %s2863_s16, %s5329_s16   ;;  %s2812_s15 = sphi %s2861_s15, %s5328_s15  }
   0x6   : > { %s50_s21 = ssub.s32 %s2824_s18, %s2883_s20  ;;  %s53_s22 = sadd.s32 1, %s2820_s17 }
   0x7   : > { %p51_p0 = scmp.eq.s32.totalorder %s50_s21, 0  ;;  %p60_p1 = scmp.ne.s32.totalorder %s2820_s17, %s2816_s16 }
   0x8   : > { %p61_p2 = scmp.eq.s32.totalorder %s2824_s18, 0  ;;  %p66_p3 = scmp.ne.s32.totalorder %s2816_s16, %s2812_s15 }
   0x9   : > { %s2893_s23 = scalar_select %p51_p0, %s2820_s17, %s53_s22  }
   0xa   : > { %p62_p4 = por %p61_p2, %p60_p1  ;;  %p67_p5 = scmp.eq.s32.totalorder %s2880_s19, 0 }
   0xb   : > { %p2621_p6 = scmp.lt.s32.totalorder %s2824_s18, 2  ;;  %s2902_s25 = sand.u32 1, %s2820_s17  }
   0xc   : > { %p2897_p7 = por %p67_p5, %p66_p3  ;;  %s197_s27 = sand.u32 1, %s2824_s18  }
   0xd   : > { %p2904_p8 = pnand %p2621_p6, %p62_p4  ;;  %s4789_s28 = smul.u32 200, %s2902_s25 }
   0xe   : > { %s2594_s29 = smul.u32 200, %s2824_s18  ;;  %s2918_s10 = scalar_lea.sflag [#allocation6], %s197_s27 }
   0xf   : > { %s201_s7 = scalar_lea.vmem [#allocation5], %s4789_s28  ;;  %p2700_p10 = pneg %p2904_p8 }
  0x10   : > { %s206_s6 = scalar_lea.hbm %s4784_s2, %s2594_s29  ;;  %s209_s8 = sshll.u32 %s201_s7, 4  ;;  %s210_s8 = int_to_ptr.vmem [resolvable:$true] %s209_s8 }
  0x11   : > { %s207_s9 = sshll.u32 %s206_s6, 4  ;;  %s2703_s15 = scalar_lea.hbm %s4784_s2, 400  ;;  %s208_s9 = int_to_ptr.hbm [resolvable:$true] %s207_s9 }
  0x12   : > { %s2696_s11 = sshra.s32 %s208_s9, 4  ;;  %s2697_s11 = int_to_ptr.hbm [resolvable:$true] %s2696_s11 }
  0x13   : > { %s2698_s12 = scalar_lea.hbm %s2697_s11, 200  ;;  %p2704_p13 = scmp.lt.s32.totalorder %s2697_s11, %s4784_s2 }
  0x14   : > { %p2699_p9 = scmp.ne.s32.totalorder %s2697_s11, %s2698_s12  ;;  %p2705_p0 = scmp.lt.s32.totalorder %s2703_s15, %s2698_s12 }
  0x16   : > { %p2701_p11 = pnand %p2700_p10, %p2699_p9  ;;  %p2706_p1 = por %p2705_p0, %p2704_p13 }
  0x18   : > { %p2702_p12 = pneg %p2701_p11 }
  0x1a   : > { %p2707_p2 = pnand %p2706_p1, %p2702_p12 }
  0x1c   : > { %2710 = shalt.err (!%p2707_p2)
}
  0x1d   : > { %s4787_s27 = smov 128   ;;  %s4788_s30 = smov 8  }
  0x1e   : > { %2617 = dma.hbm_to_vmem [thread:$0]  (!%p2904_p8), %s208_s9, 3200, %s210_s8, %s2918_s10, %s4787_s27, %s4787_s27, %s4788_s30  }
  0x1f   : > { %p2431_p3 = scmp.ge.s32.totalorder %s2824_s18, 1  ;;  %p239_p4 = scmp.lt.s32.totalorder %s2824_s18, 3 }
  0x20   : > { %s2591_s5 = smul.u32 400, %s2902_s25  ;;  %s176_s22 = scalar_lea.sflag [#allocation4], %s2902_s25 }
  0x21   : > { %p2940_p5 = pnand %p2431_p3, %p239_p4  ;;  %s2592_s7 = smul.u32 400, %s2824_s18 }
  0x22   : > { %s179_s14 = scalar_lea.vmem [#allocation3], %s2591_s5  ;;  %s2733_s28 = scalar_lea.hbm %s4783_s1, 800 }
  0x23   : > { %s184_s13 = scalar_lea.hbm %s4783_s1, %s2592_s7  ;;  %s187_s15 = sshll.u32 %s179_s14, 4  ;;  %s188_s15 = int_to_ptr.vmem [resolvable:$true] %s187_s15 }
  0x24   : > { %s185_s21 = sshll.u32 %s184_s13, 4  ;;  %s186_s21 = int_to_ptr.hbm [resolvable:$true] %s185_s21 }
  0x25   : > { %s2726_s8 = sshra.s32 %s186_s21, 4  ;;  %s2727_s8 = int_to_ptr.hbm [resolvable:$true] %s2726_s8 }
  0x26   : > { %s2728_s9 = scalar_lea.hbm %s2727_s8, 400  ;;  %p2734_p12 = scmp.lt.s32.totalorder %s2727_s8, %s4783_s1 }
  0x27   : > { %p2729_p6 = scmp.ne.s32.totalorder %s2727_s8, %s2728_s9  ;;  %p2735_p13 = scmp.lt.s32.totalorder %s2733_s28, %s2728_s9 }
  0x29   : > { %p2731_p9 = pnand %p2729_p6, %p2700_p10  ;;  %p2736_p0 = por %p2735_p13, %p2734_p12 }
  0x2b   : > { %p2732_p11 = pneg %p2731_p9 }
  0x2d   : > { %p2737_p1 = pnand %p2736_p0, %p2732_p11 }
  0x2f   : > { %2740 = shalt.err (!%p2737_p1)
}
  0x30   : > { %s2828_s5 = smov 256   ;;  %s2829_s12 = smov 16  }
  0x31   : > { %2614 = dma.hbm_to_vmem [thread:$0]  (!%p2904_p8), %s186_s21, 6400, %s188_s15, %s176_s22, %s2828_s5, %s2828_s5, %s2829_s12  }
  0x32   : > { %s228_s30 = scalar_lea.hbm %s4785_s3, %s2594_s29  ;;  %s4971_s11 = smul.u32 200, %s2902_s25 }
  0x33   : > { %s229_s14 = sshll.u32 %s228_s30, 4  ;;  %s2763_s21 = scalar_lea.hbm %s4785_s3, 400  ;;  %s230_s14 = int_to_ptr.hbm [resolvable:$true] %s229_s14 }
  0x34   : > { %s223_s8 = scalar_lea.vmem [#allocation7], %s4971_s11  ;;  %s2756_s9 = sshra.s32 %s230_s14, 4  ;;  %s2757_s9 = int_to_ptr.hbm [resolvable:$true] %s2756_s9 }
  0x35   : > { %s231_s28 = sshll.u32 %s223_s8, 4  ;;  %s2758_s7 = scalar_lea.hbm %s2757_s9, 200  ;;  %s232_s28 = int_to_ptr.vmem [resolvable:$true] %s231_s28 }
  0x36   : > { %p2759_p2 = scmp.ne.s32.totalorder %s2757_s9, %s2758_s7  ;;  %p2764_p6 = scmp.lt.s32.totalorder %s2757_s9, %s4785_s3 }
  0x37   : > { %p2765_p9 = scmp.lt.s32.totalorder %s2763_s21, %s2758_s7 }
  0x38   : > { %p2761_p3 = pnand %p2759_p2, %p2700_p10 }
  0x39   : > { %p2766_p11 = por %p2765_p9, %p2764_p6 }
  0x3a   : > { %p2762_p4 = pneg %p2761_p3 }
  0x3c   : > { %p2767_p12 = pnand %p2766_p11, %p2762_p4 }
  0x3e   : > { %2770 = shalt.err (!%p2767_p12)
}
  0x3f   : > { %s4972_s25 = smov 8   ;;  %s4973_s5 = smov 128  }
  0x40   : > { %2620 = dma.hbm_to_vmem [thread:$0]  (!%p2904_p8), %s230_s14, 3200, %s232_s28, %s2918_s10, %s4973_s5, %s4973_s5, %s4972_s25  }
  0x41   : > { %243 = sbr.rel (%p2940_p5) target bundleno = 659 (0x293), region = 36 }
  0x46   : > { %s2985_s12 = sand.u32 1, %s2816_s16  }
  0x47   : > { %s2597_s13 = smul.u32 400, %s2985_s12  ;;  %s246_s27 = scalar_lea.sflag [#allocation4], %s2985_s12 }
  0x49   : > { %s2989_s30 = scalar_lea.vmem [#allocation3], %s2597_s13 }
  0x4a   : > { %2803 = dma.done.wait (%p2897_p7), %s246_s27, 6400  }
  0x4b   : > { %2805 = vsyncadd (%p2897_p7), %s246_s27, 4294960896  ;;  %s255_s26 = sand.u32 1, %s2880_s19   ;;  %s2598_s10 = smul.u32 200, %s2985_s12 }
  0x4c   : > { %s256_s6 = scalar_lea.sflag [#allocation6], %s255_s26 }
  0x4d   : > { %s2999_s14 = scalar_lea.vmem [#allocation5], %s2598_s10 }
  0x4e   : > { %2807 = dma.done.wait (%p2897_p7), %s256_s6, 6400  }
  0x4f   : > { %2809 = vsyncadd (%p2897_p7), %s256_s6, 4294960896  ;;  %p308_p8 = scmp.lt.s32.totalorder %s2880_s19, 1  ;;  %v2830_v0 = vmov 0   ;;  %v2831_v1 = vmov 0.5   ;;  %v3011_v3 = vld [vmem:[%s2999_s14 + $0x78] sm:$0xff]  ;;  %v3014_v4 = vld [vmem:[%s2999_s14 + $0x70] sm:$0xff] }
  0x50   : > { %2663 = vset.pattern.permute.xlu0 %v2830_v0  ;;  %2666 = vrcp.f32 %v2831_v1  ;;  %v373_v6 = vunpack.c.l.bf16 %v3011_v3  ;;  %v3018_v7 = vld [vmem:[%s2999_s14 + $0x68] sm:$0xff]  ;;  %v3021_v8 = vld [vmem:[%s2999_s14 + $0x60] sm:$0xff]  ;;  %v371_v9 = vunpack.c.l.bf16 %v3014_v4  ;;  %v3032_v10 = vld [vmem:[%s2999_s14 + $0x58] sm:$0xff]  ;;  %v374_v27 = vunpack.c.h.bf16 %v3011_v3  ;;  %s3228_s9 = scalar_lea.vmem [#allocation7], %s2598_s10  ;;  %s2835_s7 = smov 127  }
  0x51   : > { %s5333_s19 = smov (!%p308_p8, %s2880_s19), 1  ;;  %v369_v12 = vunpack.c.l.bf16 %v3018_v7  ;;  %v3038_v13 = vld [vmem:[%s2999_s14 + $0x50] sm:$0xff]  ;;  %v3041_v14 = vld [vmem:[%s2999_s14 + $0xc0] sm:$0xff]  ;;  %v367_v15 = vunpack.c.l.bf16 %v3021_v8  ;;  %v3045_v16 = vld [vmem:[%s2999_s14 + $0x48] sm:$0xff]  ;;  %v365_v20 = vunpack.c.l.bf16 %v3032_v10  ;;  %vm4895_vm1 = vcmask 588800  }
  0x52   : > { %s2432_s24 = sshll.u32 %s5333_s19, 3  ;;  %1260 = vmatpush.msra.mxu0 %v373_v6  ;;  %v3048_v17 = vld [vmem:[%s2999_s14 + $0xb8] sm:$0xff]  ;;  %v3055_v21 = vld [vmem:[%s2999_s14 + $0x40] sm:$0xff]  ;;  %v3058_v22 = vld [vmem:[%s2999_s14 + $0xb0] sm:$0xff]  ;;  %v363_v24 = vunpack.c.l.bf16 %v3038_v13  ;;  %v391_v25 = vunpack.c.l.bf16 %v3041_v14  ;;  %v361_v28 = vunpack.c.l.bf16 %v3045_v16  ;;  %v362_v35 = vunpack.c.h.bf16 %v3045_v16  ;;  %550 = vst.msk [vmem:[#allocation2 + $0x2d8] sm:$0xff] %vm4895_vm1, %v374_v27 }
  0x53   : > { %s3028_s28 = scalar_lea.vmem %s4782_s0, %s2432_s24  ;;  %v389_v29 = vunpack.c.l.bf16 %v3048_v17  ;;  %v3068_v30 = vld [vmem:[%s2999_s14 + $0xa8] sm:$0xff]  ;;  %v359_v31 = vunpack.c.l.bf16 %v3055_v21  ;;  %v360_v32 = vunpack.c.h.bf16 %v3055_v21  ;;  %v387_v33 = vunpack.c.l.bf16 %v3058_v22  ;;  %v3081_v36 = vld [vmem:[%s2999_s14 + $0xa0] sm:$0xff]  ;;  %v3096_v42 = vld [vmem:[%s2999_s14 + $0x98] sm:$0xff]  ;;  %s315_s21 = scalar_lea.vmem %s4786_s4, %s2432_s24 }
  0x54   : > { %v317_v18 = vld [vmem:[%s3028_s28] sm:$0xff]  ;;  %1261 = vmatpush.msra.mxu0 %v371_v9  ;;  %1290 = vmatpush.msra.mxu1 %v391_v25  ;;  %v364_v39 = vunpack.c.h.bf16 %v3038_v13  ;;  %v4795_v40 = vunpack.c.l.bf16 %v3068_v30  ;;  %v366_v41 = vunpack.c.h.bf16 %v3032_v10  ;;  %v368_v45 = vunpack.c.h.bf16 %v3021_v8  ;;  %v3103_v46 = vld [vmem:[%s2999_s14 + $0x38] sm:$0xff]  ;;  %538 = vst.msk [vmem:[#allocation2 + $0x1b8] sm:$0xff] %vm4895_vm1, %v362_v35  ;;  %v3160_v0 = vld [vmem:[%s2999_s14 + $0x20] sm:$0xff] }
  0x55   : > { %v2484_v23 = vadd.f32 49.75, %v317_v18  ;;  %536 = vst.msk [vmem:[#allocation2 + $0x188] sm:$0xff] %vm4895_vm1, %v360_v32  ;;  %v4793_v47 = vunpack.c.l.bf16 %v3081_v36  ;;  %v370_v48 = vunpack.c.h.bf16 %v3018_v7  ;;  %v3115_v49 = vld [vmem:[%s2999_s14 + $0x90] sm:$0xff]  ;;  %v372_v52 = vunpack.c.h.bf16 %v3014_v4  ;;  %v3136_v56 = vld [vmem:[%s2999_s14 + $0x88] sm:$0xff] }
  0x56   : > { %v2667_v2 = vpop.eup %2666  ;;  %1262 = vmatpush.msra.mxu0 %v369_v12  ;;  %1291 = vmatpush.msra.mxu1 %v389_v29  ;;  %540 = vst.msk [vmem:[#allocation2 + $0x1e8] sm:$0xff] %vm4895_vm1, %v364_v39  ;;  %v3124_v53 = vld [vmem:[%s2999_s14 + $0x30] sm:$0xff]  ;;  %v4792_v54 = vunpack.c.l.bf16 %v3096_v42  ;;  %v357_v55 = vunpack.c.l.bf16 %v3103_v46  ;;  %v392_v57 = vunpack.c.h.bf16 %v3041_v14  ;;  %v3144_v58 = vld [vmem:[%s2999_s14 + $0x28] sm:$0xff]  ;;  %v4791_v59 = vunpack.c.l.bf16 %v3115_v49 }
  0x57   : > { %v870_v5 = vmul.f32 0.5, %v2667_v2  ;;  %vm874_vm0 = vweird.f32 %v2667_v2  ;;  %542 = vst.msk [vmem:[#allocation2 + $0x218] sm:$0xff] %vm4895_vm1, %v366_v41  ;;  %v355_v61 = vunpack.c.l.bf16 %v3124_v53  ;;  %v4803_v63 = vunpack.c.h.bf16 %v3103_v46 }
  0x58   : > { %1263 = vmatpush.msra.mxu0 %v367_v15  ;;  %1292 = vmatpush.msra.mxu1 %v387_v33  ;;  %544 = vst.msk [vmem:[#allocation2 + $0x248] sm:$0xff] %vm4895_vm1, %v368_v45  ;;  %v4790_v1 = vunpack.c.l.bf16 %v3136_v56  ;;  %v4975_v21 = vunpack.c.h.bf16 %v3103_v46  ;;  %v4977_v46 = vunpack.c.h.bf16 %v3124_v53 }
  0x59   : > { %v871_v11 = vsub.f32 1.0, %v870_v5  ;;  %546 = vst.msk [vmem:[#allocation2 + $0x278] sm:$0xff] %vm4895_vm1, %v370_v48  ;;  %v1195_v62 = vld [vmem:[#allocation2 + $0x2d8] sm:$0xff]  ;;  %v4797_v5 = vunpack.c.l.bf16 %v3144_v58 }
  0x5a   : > { %1264 = vmatpush.msra.mxu0 %v365_v20  ;;  %1293 = vmatpush.msra.mxu1 %v4795_v40  ;;  %548 = vst.msk [vmem:[#allocation2 + $0x2a8] sm:$0xff] %vm4895_vm1, %v372_v52 }
  0x5b   : > { %v872_v19 = vmul.f32 %v2667_v2, %v871_v11  ;;  %1306 = vmatpush.msra.mxu2 %v1195_v62  ;;  %568 = vst.msk [vmem:[#allocation2 + $0x488] sm:$0xff] %vm4895_vm1, %v392_v57  ;;  %v4801_v11 = vunpack.c.h.bf16 %v3048_v17 }
  0x5c   : > { %1265 = vmatpush.msra.mxu0 %v363_v24  ;;  %1294 = vmatpush.msra.mxu1 %v4793_v47  ;;  %534 = vst.msk [vmem:[#allocation2 + $0x158] sm:$0xff] %vm4895_vm1, %v4803_v63 }
  0x5d   : > { %v873_v26 = vadd.f32 %v2667_v2, %v872_v19  ;;  %566 = vst.msk [vmem:[#allocation2 + $0x458] sm:$0xff] %vm4895_vm1, %v4801_v11 }
  0x5e   : > { %1266 = vmatpush.msra.mxu0 %v361_v28  ;;  %1295 = vmatpush.msra.mxu1 %v4792_v54  ;;  %v3217_v54 = vld [vmem:[%s2999_s14] sm:$0xff] }
  0x5f   : > { %v3075_v34 = vsel %vm874_vm0, %v2667_v2, %v873_v26  ;;  %v3166_v2 = vld [vmem:[%s2999_s14 + $0x80] sm:$0xff]  ;;  %v4796_v26 = vunpack.c.l.bf16 %v3160_v0  ;;  %v1177_v47 = vld [vmem:[#allocation2 + $0x248] sm:$0xff] }
  0x60   : > { %4974 = vst [vmem:[#allocation10_spill] sm:$0xff] %v3075_v34  ;;  %v876_v37 = vmul.f32 %v3075_v34, %v317_v18  ;;  %v884_v38 = vmul.f32 %v2484_v23, %v3075_v34  ;;  %1267 = vmatpush.msra.mxu0 %v359_v31  ;;  %v3176_v18 = vld [vmem:[%s2999_s14 + $0x18] sm:$0xff]  ;;  %1296 = vmatpush.msra.mxu1 %v4791_v59  ;;  %v4794_v19 = vunpack.c.l.bf16 %v3166_v2  ;;  %v1183_v62 = vld [vmem:[#allocation2 + $0x278] sm:$0xff]  ;;  %v4804_v59 = vunpack.c.h.bf16 %v3144_v58 }
  0x62   : > { %v877_v43 = vfloor.f32 %v876_v37  ;;  %v885_v44 = vfloor.f32 %v884_v38  ;;  %1268 = vmatpush.msra.mxu0 %v357_v55  ;;  %v4800_v37 = vunpack.c.h.bf16 %v3124_v53  ;;  %v3192_v38 = vld [vmem:[%s2999_s14 + $0x10] sm:$0xff]  ;;  %1297 = vmatpush.msra.mxu1 %v4790_v1  ;;  %530 = vst.msk [vmem:[#allocation2 + $0xf8] sm:$0xff] %vm4895_vm1, %v4804_v59  ;;  %v3256_v59 = vld [vmem:[%s3228_s9 + $0x68] sm:$0xff] }
  0x63   : > { %v4802_v1 = vunpack.c.l.bf16 %v3192_v38  ;;  %v1249_v40 = vld [vmem:[#allocation2 + $0x488] sm:$0xff] }
  0x64   : > { %v3117_v50 = vcvt.f32.s32 %v877_v43  ;;  %v2604_v51 = vcvt.f32.s32 %v885_v44  ;;  %1269 = vmatpush.msra.mxu0 %v355_v61  ;;  %v4798_v43 = vunpack.c.l.bf16 %v3176_v18  ;;  %v4799_v44 = vunpack.c.h.bf16 %v3058_v22  ;;  %1298 = vmatpush.msra.mxu1 %v4794_v19  ;;  %532 = vst.msk [vmem:[#allocation2 + $0x128] sm:$0xff] %vm4895_vm1, %v4800_v37  ;;  %v1165_v37 = vld [vmem:[#allocation2 + $0x1e8] sm:$0xff]  ;;  %v1243_v11 = vld [vmem:[#allocation2 + $0x458] sm:$0xff] }
  0x65   : > { %1336 = vmatpush.msra.mxu3 %v1249_v40  ;;  %v4810_v40 = vunpack.c.h.bf16 %v3160_v0 }
  0x66   : > { %897 = vperm.xlu0 %2663, %v3117_v50   ;;  %vm887_vm2 = vcmp.gt.s32.totalorder %v2604_v51, 0  ;;  %1270 = vmatpush.msra.mxu0 %v4797_v5  ;;  %564 = vst.msk [vmem:[#allocation2 + $0x428] sm:$0xff] %vm4895_vm1, %v4799_v44  ;;  %v1171_v5 = vld [vmem:[#allocation2 + $0x218] sm:$0xff] }
  0x67   : > { %v888_v60 = vsel %vm887_vm2, %v2604_v51, 0  ;;  %v3205_v51 = vld [vmem:[%s2999_s14 + $0x8] sm:$0xff]  ;;  %v3242_v44 = vld [vmem:[%s3228_s9 + $0x70] sm:$0xff]  ;;  %1337 = vmatpush.msra.mxu3 %v1243_v11  ;;  %528 = vst.msk [vmem:[#allocation2 + $0xc8] sm:$0xff] %vm4895_vm1, %v4810_v40  ;;  %v3270_v11 = vld [vmem:[%s3228_s9 + $0x60] sm:$0xff] }
  0x68   : > { %vm889_vm3 = vcmp.lt.s32.totalorder %v888_v60, 199  ;;  %1271 = vmatpush.msra.mxu0 %v4796_v26  ;;  %v4805_v19 = vunpack.c.l.bf16 %v3205_v51  ;;  %v3231_v26 = vld [vmem:[%s3228_s9 + $0x78] sm:$0xff]  ;;  %v4809_v63 = vunpack.c.l.bf16 %v3242_v44 }
  0x69   : > { %v3182_v23 = vsel %vm889_vm3, %v888_v60, 199  ;;  %v1189_v60 = vld [vmem:[#allocation2 + $0x2a8] sm:$0xff]  ;;  %v1147_v40 = vld [vmem:[#allocation2 + $0x158] sm:$0xff] }
  0x6a   : > { %1307 = vmatpush.msra.mxu2 %v1189_v60  ;;  %1272 = vmatpush.msra.mxu0 %v4798_v43  ;;  %v4807_v60 = vunpack.c.h.bf16 %v3068_v30  ;;  %v4806_v43 = vunpack.c.l.bf16 %v3231_v26 }
  0x6c   : > { %1308 = vmatpush.msra.mxu2 %v1183_v62  ;;  %1273 = vmatpush.msra.mxu0 %v4802_v1  ;;  %v4808_v62 = vunpack.c.l.bf16 %v3217_v54  ;;  %v599_v1 = vmul.f32 %v4806_v43, %v373_v6  ;;  %562 = vst.msk [vmem:[#allocation2 + $0x3f8] sm:$0xff] %vm4895_vm1, %v4807_v60  ;;  %v597_v6 = vmul.f32 %v4809_v63, %v371_v9  ;;  %v4811_v43 = vunpack.c.l.bf16 %v3256_v59  ;;  %v1153_v60 = vld [vmem:[#allocation2 + $0x188] sm:$0xff] }
  0x6d   : > { %v4816_v63 = vunpack.c.h.bf16 %v3096_v42 }
  0x6e   : > { %900 = vperm.xlu0 %2663, %v3182_v23   ;;  %1309 = vmatpush.msra.mxu2 %v1177_v47  ;;  %v4812_v47 = vunpack.c.h.bf16 %v3081_v36  ;;  %v595_v9 = vmul.f32 %v4811_v43, %v369_v12  ;;  %v348_v43 = vunpack.c.h.bf16 %v3192_v38 }
  0x6f   : > { %1274 = vmatpush.msra.mxu0 %v4805_v19  ;;  %v1159_v19 = vld [vmem:[#allocation2 + $0x1b8] sm:$0xff]  ;;  %1352 = vmatpush.msrb.mxu1 %v599_v1  ;;  %v4813_v1 = vunpack.c.l.bf16 %v3270_v11  ;;  %558 = vst.msk [vmem:[#allocation2 + $0x398] sm:$0xff] %vm4895_vm1, %v4816_v63  ;;  %v3322_v63 = vld [vmem:[%s3228_s9 + $0x40] sm:$0xff] }
  0x70   : > { %1310 = vmatpush.msra.mxu2 %v1171_v5  ;;  %v4814_v5 = vunpack.c.h.bf16 %v3176_v18  ;;  %560 = vst.msk [vmem:[#allocation2 + $0x3c8] sm:$0xff] %vm4895_vm1, %v4812_v47 }
  0x71   : > { %1275 = vmatpush.msra.mxu0 %v4808_v62  ;;  %v1237_v62 = vld [vmem:[#allocation2 + $0x428] sm:$0xff]  ;;  %1353 = vmatpush.msrb.mxu1 %v597_v6  ;;  %v593_v12 = vmul.f32 %v4813_v1, %v367_v15  ;;  %v4819_v1 = vunpack.c.h.bf16 %v3115_v49  ;;  %524 = vst.msk [vmem:[#allocation2 + $0x68] sm:$0xff] %vm4895_vm1, %v348_v43 }
  0x72   : > { %1311 = vmatpush.msra.mxu2 %v1165_v37  ;;  %1338 = vmatpush.msra.mxu3 %v1237_v62  ;;  %v3282_v37 = vld [vmem:[%s3228_s9 + $0x58] sm:$0xff]  ;;  %526 = vst.msk [vmem:[#allocation2 + $0x98] sm:$0xff] %vm4895_vm1, %v4814_v5  ;;  %v1141_v62 = vld [vmem:[#allocation2 + $0x128] sm:$0xff] }
  0x73   : > { %1354 = vmatpush.msrb.mxu1 %v595_v9  ;;  %v4815_v6 = vunpack.c.l.bf16 %v3282_v37  ;;  %v1231_v47 = vld [vmem:[#allocation2 + $0x3f8] sm:$0xff]  ;;  %556 = vst.msk [vmem:[#allocation2 + $0x368] sm:$0xff] %vm4895_vm1, %v4819_v1 }
  0x74   : > { %1312 = vmatpush.msra.mxu2 %v1159_v19  ;;  %v3294_v19 = vld [vmem:[%s3228_s9 + $0x50] sm:$0xff]  ;;  %1339 = vmatpush.msra.mxu3 %v1231_v47  ;;  %v3340_v1 = vld [vmem:[%s3228_s9 + $0x38] sm:$0xff] }
  0x75   : > { %1355 = vmatpush.msrb.mxu1 %v593_v12  ;;  %v591_v9 = vmul.f32 %v4815_v6, %v365_v20  ;;  %v4817_v15 = vunpack.c.l.bf16 %v3294_v19  ;;  %v1135_v5 = vld [vmem:[#allocation2 + $0xf8] sm:$0xff]  ;;  %v4821_v6 = vunpack.c.h.bf16 %v3205_v51  ;;  %v4836_v16 = vunpack.c.h.bf16 %v3340_v1 }
  0x76   : > { %1313 = vmatpush.msra.mxu2 %v1153_v60  ;;  %v3306_v60 = vld [vmem:[%s3228_s9 + $0x48] sm:$0xff] }
  0x77   : > { %1356 = vmatpush.msrb.mxu1 %v591_v9  ;;  %v589_v20 = vmul.f32 %v4817_v15, %v363_v24  ;;  %v4818_v12 = vunpack.c.l.bf16 %v3306_v60  ;;  %v1225_v47 = vld [vmem:[#allocation2 + $0x3c8] sm:$0xff]  ;;  %v378_v24 = vunpack.c.h.bf16 %v3136_v56  ;;  %522 = vst.msk [vmem:[#allocation2 + $0x38] sm:$0xff] %vm4895_vm1, %v4821_v6  ;;  %v4840_v8 = vunpack.c.h.bf16 %v3306_v60 }
  0x78   : > { %1314 = vmatpush.msra.mxu2 %v1147_v40  ;;  %v1129_v40 = vld [vmem:[#allocation2 + $0xc8] sm:$0xff]  ;;  %1340 = vmatpush.msra.mxu3 %v1225_v47  ;;  %v1219_v47 = vld [vmem:[#allocation2 + $0x398] sm:$0xff] }
  0x79   : > { %1357 = vmatpush.msrb.mxu1 %v589_v20  ;;  %v587_v9 = vmul.f32 %v4818_v12, %v361_v28  ;;  %v4850_v20 = vunpack.c.h.bf16 %v3231_v26  ;;  %v1123_v15 = vld [vmem:[#allocation2 + $0x98] sm:$0xff]  ;;  %v344_v28 = vunpack.c.h.bf16 %v3217_v54  ;;  %554 = vst.msk [vmem:[#allocation2 + $0x338] sm:$0xff] %vm4895_vm1, %v378_v24  ;;  %v1117_v6 = vld [vmem:[#allocation2 + $0x68] sm:$0xff]  ;;  %v588_v13 = vmul.f32 %v4840_v8, %v362_v35 }
  0x7a   : > { %1315 = vmatpush.msra.mxu2 %v1141_v62  ;;  %v4820_v62 = vunpack.c.l.bf16 %v3322_v63  ;;  %1341 = vmatpush.msra.mxu3 %v1219_v47  ;;  %v1213_v47 = vld [vmem:[#allocation2 + $0x368] sm:$0xff] }
  0x7b   : > { %1358 = vmatpush.msrb.mxu1 %v587_v9  ;;  %v4851_v9 = vunpack.c.h.bf16 %v3166_v2  ;;  %520 = vst.msk [vmem:[#allocation2 + $0x8] sm:$0xff] %vm4895_vm1, %v344_v28 }
  0x7c   : > { %1316 = vmatpush.msra.mxu2 %v1135_v5  ;;  %v585_v12 = vmul.f32 %v4820_v62, %v359_v31  ;;  %v4823_v5 = vunpack.c.h.bf16 %v3242_v44  ;;  %v600_v31 = vmul.f32 %v4850_v20, %v374_v27  ;;  %v4824_v62 = vunpack.c.h.bf16 %v3256_v59  ;;  %1342 = vmatpush.msra.mxu3 %v1213_v47  ;;  %v3382_v47 = vld [vmem:[%s3228_s9 + $0xb8] sm:$0xff]  ;;  %638 = vst.msk [vmem:[#allocation2 + $0x1c8] sm:$0xff] %vm4895_vm1, %v588_v13  ;;  %v498_v20 = vld [vmem:[%s2989_s30 + $0xf0] sm:$0xff] }
  0x7d   : > { %v4848_v27 = vunpack.c.h.bf16 %v3270_v11  ;;  %552 = vst.msk [vmem:[#allocation2 + $0x308] sm:$0xff] %vm4895_vm1, %v4851_v9  ;;  %v4997_v9 = vunpack.c.l.bf16 %v3176_v18 }
  0x7e   : > { %1317 = vmatpush.msra.mxu2 %v1129_v40  ;;  %v4822_v40 = vunpack.c.l.bf16 %v3340_v1  ;;  %1359 = vmatpush.msrb.mxu1 %v585_v12  ;;  %v598_v3 = vmul.f32 %v4823_v5, %v372_v52  ;;  %v3365_v12 = vld [vmem:[%s3228_s9 + $0x30] sm:$0xff]  ;;  %650 = vst.msk [vmem:[#allocation2 + $0x2e8] sm:$0xff] %vm4895_vm1, %v600_v31  ;;  %v596_v52 = vmul.f32 %v4824_v62, %v370_v48  ;;  %v4841_v48 = vunpack.c.h.bf16 %v3294_v19 }
  0x7f   : > { %v4825_v4 = vunpack.c.l.bf16 %v3365_v12  ;;  %v594_v7 = vmul.f32 %v4848_v27, %v368_v45  ;;  %v4847_v62 = vunpack.c.l.bf16 %v3382_v47  ;;  %v4835_v14 = vunpack.c.h.bf16 %v3365_v12 }
  0x80   : > { %1318 = vmatpush.msra.mxu2 %v1123_v15  ;;  %v583_v15 = vmul.f32 %v4822_v40, %v357_v55  ;;  %v4843_v55 = vunpack.c.h.bf16 %v3282_v37  ;;  %v1111_v40 = vld [vmem:[#allocation2 + $0x38] sm:$0xff]  ;;  %648 = vst.msk [vmem:[#allocation2 + $0x2b8] sm:$0xff] %vm4895_vm1, %v598_v3  ;;  %v590_v10 = vmul.f32 %v4841_v48, %v364_v39  ;;  %v4996_v27 = vunpack.c.l.bf16 %v3081_v36 }
  0x81   : > { %v1207_v31 = vld [vmem:[#allocation2 + $0x338] sm:$0xff]  ;;  %646 = vst.msk [vmem:[#allocation2 + $0x288] sm:$0xff] %vm4895_vm1, %v596_v52 }
  0x82   : > { %1319 = vmatpush.msra.mxu2 %v1117_v6  ;;  %v3371_v6 = vld [vmem:[%s3228_s9 + $0xc0] sm:$0xff]  ;;  %1360 = vmatpush.msrb.mxu1 %v583_v15  ;;  %v581_v15 = vmul.f32 %v4825_v4, %v355_v61  ;;  %v592_v61 = vmul.f32 %v4843_v55, %v366_v41  ;;  %644 = vst.msk [vmem:[#allocation2 + $0x258] sm:$0xff] %vm4895_vm1, %v594_v7  ;;  %v4839_v41 = vunpack.c.h.bf16 %v3322_v63 }
  0x83   : > { %v4849_v5 = vunpack.c.l.bf16 %v3371_v6  ;;  %1343 = vmatpush.msra.mxu3 %v1207_v31  ;;  %v1105_v3 = vld [vmem:[#allocation2 + $0x8] sm:$0xff]  ;;  %640 = vst.msk [vmem:[#allocation2 + $0x1f8] sm:$0xff] %vm4895_vm1, %v590_v10 }
  0x84   : > { %1320 = vmatpush.msra.mxu2 %v1111_v40  ;;  %v3396_v40 = vld [vmem:[%s3228_s9 + $0xb0] sm:$0xff]  ;;  %1361 = vmatpush.msrb.mxu1 %v581_v15  ;;  %v1201_v52 = vld [vmem:[#allocation2 + $0x308] sm:$0xff]  ;;  %v615_v15 = vmul.f32 %v4847_v62, %v389_v29  ;;  %642 = vst.msk [vmem:[#allocation2 + $0x228] sm:$0xff] %vm4895_vm1, %v592_v61  ;;  %v586_v29 = vmul.f32 %v4839_v41, %v360_v32  ;;  %v4992_v41 = vunpack.c.l.bf16 %v3144_v58 }
  0x85   : > { %v617_v45 = vmul.f32 %v4849_v5, %v391_v25  ;;  %v4844_v31 = vunpack.c.l.bf16 %v3396_v40  ;;  %v1197_v4 = vld [vmem:[#allocation2 + $0x2e8] sm:$0xff]  ;;  %1344 = vmatpush.msra.mxu3 %v1201_v52  ;;  %v4830_v25 = vunpack.c.h.bf16 %v3371_v6  ;;  %v584_v32 = vmul.f32 %v4836_v16, %v4975_v21 }
  0x86   : > { %1321 = vmatpush.msra.mxu2 %v1105_v3  ;;  %1396 = vmatpush.msrb.mxu0 %v1197_v4  ;;  %636 = vst.msk [vmem:[#allocation2 + $0x198] sm:$0xff] %vm4895_vm1, %v586_v29  ;;  %v4827_v10 = vunpack.c.h.bf16 %v3396_v40  ;;  %v1161_v13 = vld [vmem:[#allocation2 + $0x1c8] sm:$0xff] }
  0x87   : > { %1381 = vmatpush.msrb.mxu3 %v617_v45  ;;  %v613_v39 = vmul.f32 %v4844_v31, %v387_v33  ;;  %v1191_v7 = vld [vmem:[#allocation2 + $0x2b8] sm:$0xff]  ;;  %v618_v35 = vmul.f32 %v4830_v25, %v392_v57  ;;  %v4828_v33 = vunpack.c.h.bf16 %v3382_v47  ;;  %v4976_v57 = vunpack.c.h.bf16 %v3048_v17  ;;  %634 = vst.msk [vmem:[#allocation2 + $0x168] sm:$0xff] %vm4895_vm1, %v584_v32  ;;  %v3469_v21 = vld [vmem:[%s3228_s9 + $0xa8] sm:$0xff]  ;;  %v3550_v16 = vld [vmem:[%s3228_s9 + $0x80] sm:$0xff] }
  0x88   : > { %1397 = vmatpush.msrb.mxu0 %v1191_v7  ;;  %v1185_v4 = vld [vmem:[#allocation2 + $0x288] sm:$0xff]  ;;  %v4978_v17 = vunpack.c.h.bf16 %v3058_v22 }
  0x89   : > { %1382 = vmatpush.msrb.mxu3 %v615_v15  ;;  %v1179_v61 = vld [vmem:[#allocation2 + $0x258] sm:$0xff]  ;;  %668 = vst.msk [vmem:[#allocation2 + $0x498] sm:$0xff] %vm4895_vm1, %v618_v35  ;;  %v616_v45 = vmul.f32 %v4828_v33, %v4976_v57  ;;  %v582_v15 = vmul.f32 %v4835_v14, %v4977_v46  ;;  %v3474_v57 = vld [vmem:[%s3228_s9 + $0x20] sm:$0xff]  ;;  %v4846_v14 = vunpack.c.l.bf16 %v3469_v21 }
  0x8a   : > { %1398 = vmatpush.msrb.mxu0 %v1185_v4  ;;  %v1167_v52 = vld [vmem:[#allocation2 + $0x1f8] sm:$0xff] }
  0x8b   : > { %1383 = vmatpush.msrb.mxu3 %v613_v39  ;;  %v1173_v3 = vld [vmem:[#allocation2 + $0x228] sm:$0xff]  ;;  %666 = vst.msk [vmem:[#allocation2 + $0x468] sm:$0xff] %vm4895_vm1, %v616_v45  ;;  %v614_v39 = vmul.f32 %v4827_v10, %v4978_v17  ;;  %v4831_v17 = vunpack.c.h.bf16 %v3474_v57  ;;  %v3508_v10 = vld [vmem:[%s3228_s9 + $0x10] sm:$0xff] }
  0x8c   : > { %1399 = vmatpush.msrb.mxu0 %v1179_v61  ;;  %632 = vst.msk [vmem:[#allocation2 + $0x138] sm:$0xff] %vm4895_vm1, %v582_v15  ;;  %v3466_v61 = vld [vmem:[%s3228_s9 + $0x28] sm:$0xff]  ;;  %v3477_v45 = vld [vmem:[%s3228_s9 + $0xa0] sm:$0xff]  ;;  %v4981_v15 = vunpack.c.h.bf16 %v3068_v30 }
  0x8d   : > { %v1155_v7 = vld [vmem:[#allocation2 + $0x198] sm:$0xff]  ;;  %664 = vst.msk [vmem:[#allocation2 + $0x438] sm:$0xff] %vm4895_vm1, %v614_v39  ;;  %v4834_v32 = vunpack.c.h.bf16 %v3466_v61  ;;  %v4829_v39 = vunpack.c.h.bf16 %v3477_v45 }
  0x8e   : > { %1400 = vmatpush.msrb.mxu0 %v1173_v3  ;;  %v1149_v53 = vld [vmem:[#allocation2 + $0x168] sm:$0xff]  ;;  %v4826_v3 = vunpack.c.h.bf16 %v3469_v21  ;;  %4979 = vst [vmem:[#allocation11_spill] sm:$0xff] %v3477_v45 }
  0x90   : > { %1401 = vmatpush.msrb.mxu0 %v1167_v52  ;;  %v1251_v29 = vld [vmem:[#allocation2 + $0x498] sm:$0xff]  ;;  %v4980_v52 = vunpack.c.h.bf16 %v3144_v58 }
  0x91   : > { %1425 = vmatpush.msrb.mxu2 %v1251_v29  ;;  %v3493_v29 = vld [vmem:[%s3228_s9 + $0x98] sm:$0xff] }
  0x92   : > { %1402 = vmatpush.msrb.mxu0 %v1161_v13  ;;  %v1245_v4 = vld [vmem:[#allocation2 + $0x468] sm:$0xff]  ;;  %v580_v46 = vmul.f32 %v4834_v32, %v4980_v52  ;;  %v612_v13 = vmul.f32 %v4826_v3, %v4981_v15  ;;  %4982 = vst [vmem:[#allocation12_spill] sm:$0xff] %v3493_v29  ;;  %v4833_v15 = vunpack.c.h.bf16 %v3493_v29  ;;  %v891_v3 = vlaneseq }
  0x93   : > { %1426 = vmatpush.msrb.mxu2 %v1245_v4  ;;  %v1143_v22 = vld [vmem:[#allocation2 + $0x138] sm:$0xff]  ;;  %v4858_v31 = vunpack.c.l.bf16 %v3493_v29 }
  0x94   : > { %1403 = vmatpush.msrb.mxu0 %v1155_v7  ;;  %v1239_v35 = vld [vmem:[#allocation2 + $0x438] sm:$0xff]  ;;  %630 = vst.msk [vmem:[#allocation2 + $0x108] sm:$0xff] %vm4895_vm1, %v580_v46  ;;  %v3541_v32 = vand.u32 127, %v891_v3 }
  0x95   : > { %1427 = vmatpush.msrb.mxu2 %v1239_v35  ;;  %v3490_v7 = vld [vmem:[%s3228_s9 + $0x18] sm:$0xff]  ;;  %662 = vst.msk [vmem:[#allocation2 + $0x408] sm:$0xff] %vm4895_vm1, %v612_v13  ;;  %v3511_v46 = vld [vmem:[%s3228_s9 + $0x90] sm:$0xff]  ;;  %v4838_v13 = vunpack.c.h.bf16 %v3508_v10 }
  0x96   : > { %1404 = vmatpush.msrb.mxu0 %v1149_v53  ;;  %v4983_v53 = vunpack.c.h.bf16 %v3160_v0  ;;  %v4832_v52 = vunpack.c.h.bf16 %v3490_v7  ;;  %4985 = vst [vmem:[#allocation13_spill] sm:$0xff] %v3511_v46  ;;  %v4837_v25 = vunpack.c.h.bf16 %v3511_v46  ;;  %v4855_v58 = vunpack.c.l.bf16 %v3490_v7 }
  0x97   : > { %4990 = vst [vmem:[#allocation15_spill] sm:$0xff] %v3541_v32 }
  0x98   : > { %1405 = vmatpush.msrb.mxu0 %v1143_v22  ;;  %v578_v4 = vmul.f32 %v4831_v17, %v4983_v53  ;;  %v4984_v22 = vunpack.c.h.bf16 %v3081_v36  ;;  %v4986_v53 = vunpack.c.h.bf16 %v3176_v18  ;;  %v3526_v17 = vld [vmem:[%s3228_s9 + $0x8] sm:$0xff] }
  0x9a   : > { %v610_v35 = vmul.f32 %v4829_v39, %v4984_v22  ;;  %628 = vst.msk [vmem:[#allocation2 + $0xd8] sm:$0xff] %vm4895_vm1, %v578_v4  ;;  %v576_v33 = vmul.f32 %v4832_v52, %v4986_v53  ;;  %v4987_v22 = vunpack.c.h.bf16 %v3096_v42  ;;  %v3529_v4 = vld [vmem:[%s3228_s9 + $0x88] sm:$0xff]  ;;  %v574_v53 = vmul.f32 %v4838_v13, %v348_v43 }
  0x9b   : > { %4988 = vst [vmem:[#allocation14_spill] sm:$0xff] %v3529_v4  ;;  %v4989_v52 = vunpack.c.h.bf16 %v3115_v49  ;;  %v4991_v43 = vunpack.c.h.bf16 %v3205_v51  ;;  %v4852_v3 = vunpack.c.h.bf16 %v3529_v4 }
  0x9c   : > { %v608_v39 = vmul.f32 %v4833_v15, %v4987_v22  ;;  %660 = vst.msk [vmem:[#allocation2 + $0x3d8] sm:$0xff] %vm4895_vm1, %v610_v35  ;;  %v4842_v15 = vunpack.c.h.bf16 %v3526_v17  ;;  %v4845_v35 = vunpack.c.l.bf16 %v3466_v61  ;;  %v1233_v55 = vld [vmem:[#allocation2 + $0x408] sm:$0xff] }
  0x9d   : > { %626 = vst.msk [vmem:[#allocation2 + $0xa8] sm:$0xff] %vm4895_vm1, %v576_v33  ;;  %v606_v22 = vmul.f32 %v4837_v25, %v4989_v52  ;;  %v3547_v33 = vld [vmem:[%s3228_s9] sm:$0xff]  ;;  %1428 = vmatpush.msrb.mxu2 %v1233_v55  ;;  %v575_v55 = vmul.f32 %v4855_v58, %v4997_v9  ;;  %v604_v36 = vmul.f32 %v4852_v3, %v378_v24  ;;  %v5000_v9 = vunpack.c.l.bf16 %v3115_v49 }
  0x9e   : > { %658 = vst.msk [vmem:[#allocation2 + $0x3a8] sm:$0xff] %vm4895_vm1, %v608_v39  ;;  %v572_v52 = vmul.f32 %v4842_v15, %v4991_v43  ;;  %v4853_v25 = vunpack.c.h.bf16 %v3547_v33  ;;  %v1137_v39 = vld [vmem:[#allocation2 + $0x108] sm:$0xff]  ;;  %v579_v8 = vmul.f32 %v4845_v35, %v4992_v41  ;;  %v4856_v43 = vunpack.c.l.bf16 %v3474_v57 }
  0x9f   : > { %624 = vst.msk [vmem:[#allocation2 + $0x78] sm:$0xff] %vm4895_vm1, %v574_v53  ;;  %v4993_v53 = vunpack.c.l.bf16 %v3068_v30  ;;  %v4859_v15 = vunpack.c.l.bf16 %v3477_v45  ;;  %1406 = vmatpush.msrb.mxu0 %v1137_v39  ;;  %v4854_v41 = vunpack.c.l.bf16 %v3508_v10  ;;  %v4857_v30 = vunpack.c.l.bf16 %v3511_v46  ;;  %v497_v35 = vld [vmem:[%s2989_s30 + $0xe8] sm:$0xff] }
  0xa0   : > { %656 = vst.msk [vmem:[#allocation2 + $0x378] sm:$0xff] %vm4895_vm1, %v606_v22  ;;  %1362 = vmatpush.msrb.mxu1 %v579_v8  ;;  %v4995_v39 = vunpack.c.l.bf16 %v3160_v0  ;;  %v4998_v0 = vunpack.c.l.bf16 %v3096_v42  ;;  %v5011_v58 = vunpack.c.l.bf16 %v3205_v51 }
  0xa1   : > { %v611_v48 = vmul.f32 %v4846_v14, %v4993_v53  ;;  %622 = vst.msk [vmem:[#allocation2 + $0x48] sm:$0xff] %vm4895_vm1, %v572_v52  ;;  %v496_v53 = vld [vmem:[%s2989_s30 + $0xe0] sm:$0xff]  ;;  %v3579_v14 = vadd.s32 128, %v3541_v32  ;;  %v1131_v22 = vld [vmem:[#allocation2 + $0xd8] sm:$0xff]  ;;  %v609_v5 = vmul.f32 %v4859_v15, %v4996_v27  ;;  %v605_v42 = vmul.f32 %v4857_v30, %v5000_v9  ;;  %v494_v15 = vld [vmem:[%s2989_s30 + $0xd0] sm:$0xff] }
  0xa2   : > { %v577_v62 = vmul.f32 %v4856_v43, %v4995_v39  ;;  %v499_v52 = vld [vmem:[%s2989_s30 + $0xf8] sm:$0xff]  ;;  %1407 = vmatpush.msrb.mxu0 %v1131_v22  ;;  %v607_v8 = vmul.f32 %v4858_v31, %v4998_v0  ;;  %v570_v22 = vmul.f32 %v4853_v25, %v344_v28  ;;  %v3619_v39 = vpack.c.bf16 %v497_v35, %v496_v53  ;;  %v492_v25 = vld [vmem:[%s2989_s30 + $0xc0] sm:$0xff] }
  0xa3   : > { %4994 = vst [vmem:[#allocation16_spill] sm:$0xff] %v3579_v14  ;;  %1384 = vmatpush.msrb.mxu3 %v611_v48  ;;  %v1227_v13 = vld [vmem:[#allocation2 + $0x3d8] sm:$0xff]  ;;  %v4999_v48 = vunpack.c.l.bf16 %v3192_v38  ;;  %v5002_v38 = vunpack.c.h.bf16 %v3550_v16  ;;  %v3621_v49 = vpack.c.bf16 %v499_v52, %v498_v20  ;;  %v4865_v28 = vunpack.c.l.bf16 %v3529_v4 }
  0xa4   : > { %1429 = vmatpush.msrb.mxu2 %v1227_v13  ;;  %1363 = vmatpush.msrb.mxu1 %v577_v62  ;;  %v1125_v27 = vld [vmem:[#allocation2 + $0xa8] sm:$0xff]  ;;  %v5001_v62 = vunpack.c.h.bf16 %v3166_v2  ;;  %5003 = vst [vmem:[#allocation17_spill] sm:$0xff] %v3619_v39  ;;  %v5008_v9 = vunpack.c.h.bf16 %v3242_v44  ;;  %v4862_v30 = vunpack.c.l.bf16 %v3547_v33  ;;  %v4864_v31 = vunpack.c.l.bf16 %v3550_v16 }
  0xa5   : > { %v573_v18 = vmul.f32 %v4854_v41, %v4999_v48  ;;  %1385 = vmatpush.msrb.mxu3 %v609_v5  ;;  %1408 = vmatpush.msrb.mxu0 %v1125_v27  ;;  %v1221_v24 = vld [vmem:[#allocation2 + $0x3a8] sm:$0xff]  ;;  %5004 = vst [vmem:[#allocation18_spill] sm:$0xff] %v3621_v49  ;;  %v4863_v48 = vunpack.c.l.bf16 %v3526_v17  ;;  %v5005_v5 = vunpack.c.h.bf16 %v3231_v26  ;;  %v1586_v3 = vunpack.c.h.bf16 %v3621_v49 }
  0xa6   : > { %v602_v13 = vmul.f32 %v5002_v38, %v5001_v62  ;;  %1430 = vmatpush.msrb.mxu2 %v1221_v24  ;;  %1364 = vmatpush.msrb.mxu1 %v575_v55  ;;  %v1119_v0 = vld [vmem:[#allocation2 + $0x78] sm:$0xff]  ;;  %vm3633_vm5 = vcmp.eq.f32.partialorder %v5008_v9, 0.0  ;;  %v1583_v24 = vunpack.c.l.bf16 %v3619_v39  ;;  %v1584_v38 = vunpack.c.h.bf16 %v3619_v39  ;;  %654 = vst.msk [vmem:[#allocation2 + $0x348] sm:$0xff] %vm4895_vm1, %v604_v36 }
  0xa7   : > { %vm3627_vm4 = vcmp.eq.f32.partialorder %v5005_v5, 0.0  ;;  %1386 = vmatpush.msrb.mxu3 %v607_v8  ;;  %1409 = vmatpush.msrb.mxu0 %v1119_v0  ;;  %v1215_v55 = vld [vmem:[#allocation2 + $0x378] sm:$0xff]  ;;  %v1585_v5 = vunpack.c.l.bf16 %v3621_v49  ;;  %v571_v8 = vmul.f32 %v4863_v48, %v5011_v58  ;;  %v5012_v0 = vunpack.c.l.bf16 %v3136_v56  ;;  %620 = vst.msk [vmem:[#allocation2 + $0x18] sm:$0xff] %vm4895_vm1, %v570_v22 }
  0xa8   : > { %v493_v41 = vld [vmem:[%s2989_s30 + $0xc8] sm:$0xff]  ;;  %1431 = vmatpush.msrb.mxu2 %v1215_v55  ;;  %1365 = vmatpush.msrb.mxu1 %v573_v18  ;;  %v495_v49 = vld [vmem:[%s2989_s30 + $0xd8] sm:$0xff]  ;;  %v3655_v18 = vsub.f32 %v496_v53, %v1583_v24  ;;  %v3657_v55 = vsub.f32 %v497_v35, %v1584_v38  ;;  %v5016_v56 = vunpack.c.l.bf16 %v3217_v54  ;;  %v5019_v54 = vunpack.c.h.bf16 %v3256_v59  ;;  %652 = vst.msk [vmem:[#allocation2 + $0x318] sm:$0xff] %vm4895_vm1, %v602_v13 }
  0xa9   : > { %v1113_v9 = vld [vmem:[#allocation2 + $0x48] sm:$0xff]  ;;  %v603_v43 = vmul.f32 %v4865_v28, %v5012_v0  ;;  %1387 = vmatpush.msrb.mxu3 %v605_v42  ;;  %v3659_v51 = vsub.f32 %v498_v20, %v1585_v5  ;;  %v5017_v0 = vunpack.c.l.bf16 %v3166_v2  ;;  %v3673_v20 = vsub.f32 %v499_v52, %v1586_v3 }
  0xaa   : > { %1410 = vmatpush.msrb.mxu0 %v1113_v9  ;;  %5013 = vst [vmem:[#allocation19_spill] sm:$0xff] %v3655_v18  ;;  %1366 = vmatpush.msrb.mxu1 %v571_v8  ;;  %v569_v58 = vmul.f32 %v4862_v30, %v5016_v56  ;;  %v4869_v9 = vmov 0.0   ;;  %v3677_v53 = vpack.c.bf16 %v3657_v55, %v3655_v18  ;;  %vm696_vm6 = vcmp.eq.f32.partialorder %v5019_v54, 0.0 }
  0xab   : > { %5014 = vst [vmem:[#allocation20_spill] sm:$0xff] %v3657_v55  ;;  %v601_v42 = vmul.f32 %v4864_v31, %v5017_v0  ;;  %v2465_v35 = vsel %vm3627_vm4, 1.0, %v4869_v9  ;;  %1388 = vmatpush.msrb.mxu3 %v603_v43  ;;  %v3681_v36 = vpack.c.bf16 %v493_v41, %v492_v25  ;;  %v3683_v2 = vpack.c.bf16 %v495_v49, %v494_v15 }
  0xac   : > { %5015 = vst [vmem:[#allocation21_spill] sm:$0xff] %v3659_v51  ;;  %1367 = vmatpush.msrb.mxu1 %v569_v58  ;;  %v3687_v24 = vpack.c.bf16 %v3673_v20, %v3659_v51  ;;  %v5022_v3 = vunpack.c.l.bf16 %v3231_v26  ;;  %v2463_v52 = vsel %vm3633_vm5, 1.0, %v4869_v9  ;;  %v2461_v27 = vsel %vm696_vm6, 1.0, %v4869_v9 }
  0xad   : > { %5018 = vst [vmem:[#allocation22_spill] sm:$0xff] %v3673_v20  ;;  %1389 = vmatpush.msrb.mxu3 %v601_v42  ;;  %v1860_v38 = vunpack.c.h.b16 %v3677_v53  ;;  %v5025_v5 = vunpack.c.l.bf16 %v3371_v6  ;;  %v5028_v26 = vunpack.c.h.bf16 %v3270_v11  ;;  %v2833_v62 = vmov 1  }
  0xae   : > { %5020 = vst [vmem:[#allocation23_spill] sm:$0xff] %v3681_v36  ;;  %vm3691_vm7 = vcmp.eq.f32.partialorder %v5022_v3, 0.0  ;;  %v1862_v22 = vunpack.c.h.b16 %v3687_v24  ;;  %2664 = vset.pattern.permute.xlu1 %v2833_v62  ;;  %v1579_v58 = vunpack.c.l.bf16 %v3681_v36  ;;  %v1580_v0 = vunpack.c.h.bf16 %v3681_v36  ;;  %2665 = vset.pattern.permute.xlu2 %v2833_v62  ;;  %v486_v36 = vld [vmem:[%s2989_s30 + $0x90] sm:$0xff] }
  0xaf   : > { %5021 = vst [vmem:[#allocation24_spill] sm:$0xff] %v3683_v2  ;;  %vm3703_vm8 = vcmp.eq.f32.partialorder %v5025_v5, 0.0  ;;  %vm3709_vm9 = vcmp.eq.f32.partialorder %v5028_v26, 0.0  ;;  %994 = vperm.xlu1 %2664, %v3117_v50   ;;  %v5031_v42 = vunpack.c.l.bf16 %v3242_v44  ;;  %v5034_v13 = vunpack.c.l.bf16 %v3382_v47  ;;  %v488_v44 = vld [vmem:[%s2989_s30 + $0xa0] sm:$0xff]  ;;  %v1203_v56 = vld [vmem:[#allocation2 + $0x318] sm:$0xff] }
  0xb0   : > { %v1581_v5 = vunpack.c.l.bf16 %v3683_v2  ;;  %v1582_v26 = vunpack.c.h.bf16 %v3683_v2  ;;  %v3732_v62 = vpack.c.b16 %v1862_v22, %v1860_v38  ;;  %v3734_v50 = vsub.f32 %v492_v25, %v1579_v58  ;;  %850 = vst.msk [vmem:[#allocation2 + $0x2f8] sm:$0xff] %vm4895_vm1, %v2465_v35  ;;  %v489_v38 = vld [vmem:[%s2989_s30 + $0xa8] sm:$0xff]  ;;  %v490_v22 = vld [vmem:[%s2989_s30 + $0xb0] sm:$0xff] }
  0xb1   : > { %vm3720_vm10 = vcmp.eq.f32.partialorder %v5031_v42, 0.0  ;;  %vm3726_vm11 = vcmp.eq.f32.partialorder %v5034_v13, 0.0  ;;  %v1209_v42 = vld [vmem:[#allocation2 + $0x348] sm:$0xff]  ;;  %v3738_v30 = vsub.f32 %v493_v41, %v1580_v0  ;;  %v5041_v31 = vunpack.c.l.bf16 %v3256_v59  ;;  %848 = vst.msk [vmem:[#allocation2 + $0x2c8] sm:$0xff] %vm4895_vm1, %v2463_v52 }
  0xb2   : > { %5037 = vst [vmem:[#allocation25_spill] sm:$0xff] %v3734_v50  ;;  %v3740_v48 = vsub.f32 %v494_v15, %v1581_v5  ;;  %v3742_v13 = vsub.f32 %v495_v49, %v1582_v26  ;;  %1432 = vmatpush.msrb.mxu2 %v1209_v42  ;;  %v5044_v25 = vunpack.c.l.bf16 %v3396_v40  ;;  %v5047_v15 = vunpack.c.h.bf16 %v3282_v37  ;;  %v491_v41 = vld [vmem:[%s2989_s30 + $0xb8] sm:$0xff]  ;;  %v485_v2 = vld [vmem:[%s2989_s30 + $0x88] sm:$0xff] }
  0xb3   : > { %5038 = vst [vmem:[#allocation26_spill] sm:$0xff] %v3738_v30  ;;  %vm3746_vm12 = vcmp.eq.f32.partialorder %v5041_v31, 0.0  ;;  %v3763_v59 = vpack.c.bf16 %v3738_v30, %v3734_v50  ;;  %v2459_v49 = vsel %vm3709_vm9, 1.0, %v4869_v9  ;;  %v5048_v35 = vunpack.c.l.bf16 %v3270_v11  ;;  %v1107_v5 = vld [vmem:[#allocation2 + $0x18] sm:$0xff] }
  0xb4   : > { %5039 = vst [vmem:[#allocation27_spill] sm:$0xff] %v3740_v48  ;;  %vm3754_vm13 = vcmp.eq.f32.partialorder %v5044_v25, 0.0  ;;  %vm692_vm14 = vcmp.eq.f32.partialorder %v5047_v15, 0.0  ;;  %v3767_v31 = vpack.c.bf16 %v3742_v13, %v3740_v48  ;;  %v5051_v26 = vunpack.c.l.bf16 %v3469_v21  ;;  %1411 = vmatpush.msrb.mxu0 %v1107_v5  ;;  %1433 = vmatpush.msrb.mxu2 %v1203_v56  ;;  %v477_v0 = vld [vmem:[%s2989_s30 + $0x48] sm:$0xff] }
  0xb5   : > { %5040 = vst [vmem:[#allocation28_spill] sm:$0xff] %v3742_v13  ;;  %vm3774_vm15 = vcmp.eq.f32.partialorder %v5048_v35, 0.0  ;;  %v5052_v42 = vmov 0  ;;  %v3785_v25 = vpack.c.bf16 %v489_v38, %v488_v44  ;;  %v1856_v11 = vunpack.c.h.b16 %v3763_v59  ;;  %v487_v13 = vld [vmem:[%s2989_s30 + $0x98] sm:$0xff] }
  0xb6   : > { %vm3781_vm0 = vcmp.eq.f32.partialorder %v5051_v26, 0.0  ;;  %v1858_v15 = vunpack.c.h.b16 %v3767_v31  ;;  %v2457_v35 = vsel %vm692_vm14, 1.0, %v4869_v9  ;;  %v3790_v48 = vpack.c.bf16 %v491_v41, %v490_v22  ;;  %846 = vst.msk [vmem:[#allocation2 + $0x298] sm:$0xff] %vm4895_vm1, %v2461_v27 }
  0xb7   : > { %v5053_v42 = vsel %vm3781_vm0, 4294967295, %v5052_v42  ;;  %5054 = vst [vmem:[#allocation29_spill] sm:$0xff] %v3785_v25  ;;  %v1575_v52 = vunpack.c.l.bf16 %v3785_v25  ;;  %v1576_v26 = vunpack.c.h.bf16 %v3785_v25  ;;  %v5056_v50 = vunpack.c.h.bf16 %v3294_v19  ;;  %v484_v25 = vld [vmem:[%s2989_s30 + $0x80] sm:$0xff]  ;;  %1000 = vperm.xlu1 %2664, %v3182_v23  }
  0xb8   : > { %5055 = vst [vmem:[#allocation30_spill] sm:$0xff] %v3790_v48  ;;  %v5057_v5 = vunpack.c.h.bf16 %v3306_v60  ;;  %v3803_v9 = vpack.c.b16 %v1858_v15, %v1856_v11  ;;  %v1577_v56 = vunpack.c.l.bf16 %v3790_v48  ;;  %v1578_v18 = vunpack.c.h.bf16 %v3790_v48 }
  0xb9   : > { %vm690_vm2 = vcmp.eq.f32.partialorder %v5056_v50, 0.0  ;;  %v3812_v50 = vsub.f32 %v488_v44, %v1575_v52  ;;  %v5062_v27 = vunpack.c.l.bf16 %v3282_v37  ;;  %v5063_v11 = vmov 0  ;;  %844 = vst.msk [vmem:[#allocation2 + $0x268] sm:$0xff] %vm4895_vm1, %v2459_v49 }
  0xba   : > { %vm3798_vm3 = vcmp.eq.f32.partialorder %v5057_v5, 0.0  ;;  %v3814_v5 = vsub.f32 %v489_v38, %v1576_v26  ;;  %v5065_v15 = vmov 0.0   ;;  %v3825_v30 = vsub.f32 %v490_v22, %v1577_v56  ;;  %842 = vst.msk [vmem:[#allocation2 + $0x238] sm:$0xff] %vm4895_vm1, %v2457_v35 }
  0xbb   : > { %5060 = vst [vmem:[#allocation31_spill] sm:$0xff] %v3812_v50  ;;  %vm3818_vm6 = vcmp.eq.f32.partialorder %v5062_v27, 0.0  ;;  %v2455_v48 = vsel %vm690_vm2, 1.0, %v5065_v15  ;;  %v3827_v23 = vsub.f32 %v491_v41, %v1578_v18  ;;  %v5068_v39 = vunpack.c.l.bf16 %v3477_v45 }
  0xbc   : > { %5061 = vst [vmem:[#allocation32_spill] sm:$0xff] %v3814_v5  ;;  %v5064_v11 = vsel %vm3818_vm6, 4294967295, %v5063_v11  ;;  %v5069_v44 = vmov 0  ;;  %v2453_v37 = vsel %vm3798_vm3, 1.0, %v5065_v15  ;;  %v3841_v38 = vpack.c.bf16 %v3814_v5, %v3812_v50 }
  0xbd   : > { %5066 = vst [vmem:[#allocation33_spill] sm:$0xff] %v3825_v30  ;;  %vm3831_vm9 = vcmp.eq.f32.partialorder %v5068_v39, 0.0  ;;  %v5071_v22 = vunpack.c.l.bf16 %v3294_v19  ;;  %v5072_v18 = vmov 0  ;;  %v3849_v39 = vpack.c.bf16 %v485_v2, %v484_v25 }
  0xbe   : > { %5067 = vst [vmem:[#allocation34_spill] sm:$0xff] %v3827_v23  ;;  %v5070_v44 = vsel %vm3831_vm9, 4294967295, %v5069_v44  ;;  %v3853_v41 = vpack.c.bf16 %v3827_v23, %v3825_v30  ;;  %v5075_v51 = vunpack.c.l.bf16 %v3493_v29  ;;  %v5076_v49 = vmov 0 }
  0xbf   : > { %vm3845_vm14 = vcmp.eq.f32.partialorder %v5071_v22, 0.0  ;;  %5074 = vst [vmem:[#allocation35_spill] sm:$0xff] %v3849_v39  ;;  %v3861_v52 = vpack.c.bf16 %v487_v13, %v486_v36  ;;  %v1852_v19 = vunpack.c.h.b16 %v3841_v38  ;;  %v1571_v26 = vunpack.c.l.bf16 %v3849_v39 }
  0xc0   : > { %v5073_v18 = vsel %vm3845_vm14, 4294967295, %v5072_v18  ;;  %vm3857_vm2 = vcmp.eq.f32.partialorder %v5075_v51, 0.0  ;;  %v1572_v56 = vunpack.c.h.bf16 %v3849_v39  ;;  %v1854_v27 = vunpack.c.h.b16 %v3853_v41  ;;  %840 = vst.msk [vmem:[#allocation2 + $0x208] sm:$0xff] %vm4895_vm1, %v2455_v48 }
  0xc1   : > { %v5077_v49 = vsel %vm3857_vm2, 4294967295, %v5076_v49  ;;  %5078 = vst [vmem:[#allocation36_spill] sm:$0xff] %v3861_v52  ;;  %v1573_v22 = vunpack.c.l.bf16 %v3861_v52  ;;  %v1574_v30 = vunpack.c.h.bf16 %v3861_v52  ;;  %v5079_v51 = vunpack.c.l.bf16 %v3306_v60  ;;  %v1175_v58 = vld [vmem:[#allocation2 + $0x238] sm:$0xff] }
  0xc2   : > { %v5080_v50 = vmov 0  ;;  %v3876_v23 = vsub.f32 %v484_v25, %v1571_v26  ;;  %v3878_v5 = vsub.f32 %v485_v2, %v1572_v56  ;;  %v5084_v39 = vunpack.c.l.bf16 %v3511_v46 }
  0xc3   : > { %vm3872_vm3 = vcmp.eq.f32.partialorder %v5079_v51, 0.0  ;;  %v5085_v35 = vmov 0  ;;  %v3886_v34 = vpack.c.b16 %v1854_v27, %v1852_v19  ;;  %v3888_v20 = vsub.f32 %v486_v36, %v1573_v22 }
  0xc4   : > { %v5081_v50 = vsel %vm3872_vm3, 4294967295, %v5080_v50  ;;  %5082 = vst [vmem:[#allocation37_spill] sm:$0xff] %v3876_v23  ;;  %vm3882_vm5 = vcmp.eq.f32.partialorder %v5084_v39, 0.0  ;;  %v3890_v52 = vsub.f32 %v487_v13, %v1574_v30  ;;  %v3895_v25 = vpack.c.bf16 %v3878_v5, %v3876_v23 }
  0xc5   : > { %5083 = vst [vmem:[#allocation38_spill] sm:$0xff] %v3878_v5  ;;  %v5086_v35 = vsel %vm3882_vm5, 4294967295, %v5085_v35  ;;  %v5089_v2 = vunpack.c.h.bf16 %v3322_v63  ;;  %v5090_v39 = vunpack.c.l.bf16 %v3322_v63  ;;  %v5091_v26 = vmov 0 }
  0xc6   : > { %5087 = vst [vmem:[#allocation39_spill] sm:$0xff] %v3888_v20  ;;  %v5093_v36 = vunpack.c.l.bf16 %v3529_v4  ;;  %v5094_v30 = vmov 0  ;;  %v3915_v19 = vpack.c.bf16 %v3890_v52, %v3888_v20  ;;  %vm5096_vm1 = vcmp.eq.s32.totalorder %v3541_v32, 0 }
  0xc7   : > { %5088 = vst [vmem:[#allocation40_spill] sm:$0xff] %v3890_v52  ;;  %vm686_vm4 = vcmp.eq.f32.partialorder %v5089_v2, 0.0  ;;  %vm3901_vm3 = vcmp.eq.f32.partialorder %v5090_v39, 0.0  ;;  %vm5097_vm14 = vcmp.eq.s32.totalorder %v3579_v14, 199  ;;  %vm5098_vm2 = vcmask 588800  }
  0xc8   : > { %v5092_v26 = vsel %vm3901_vm3, 4294967295, %v5091_v26  ;;  %vm3907_vm5 = vcmp.eq.f32.partialorder %v5093_v36, 0.0  ;;  %v2451_v56 = vsel %vm686_vm4, 1.0, %v5065_v15  ;;  %838 = vst.msk [vmem:[#allocation2 + $0x1d8] sm:$0xff] %vm5098_vm2, %v2453_v37  ;;  %v5099_v2 = vunpack.c.h.bf16 %v3340_v1 }
  0xc9   : > { %v5095_v30 = vsel %vm3907_vm5, 4294967295, %v5094_v30  ;;  %v1850_v55 = vunpack.c.h.b16 %v3915_v19 }
  0xca   : > { %vm3926_vm0 = vcmp.eq.f32.partialorder %v5099_v2, 0.0 }
  0xd8   : > { %v898_v60 = vpop.permute.xlu0 %897 }
  0xd9   : > { %v902_v48 = vsub.s32 %v3541_v32, %v898_v60  ;;  %v903_v13 = vsub.s32 %v3579_v14, %v898_v60 }
  0xdb   : > { %v910_v27 = vsel %vm5096_vm1, 4293918720, %v902_v48  ;;  %vm2485_vm3 = vcmp.gt.s32.totalorder %v902_v48, 101  ;;  %v921_v22 = vsel %vm5097_vm14, 1048576, %v903_v13  ;;  %vm2492_vm5 = vcmp.lt.s32.totalorder %v903_v13, 98  ;;  %vm5102_vm14 = vmmov %vm5098_vm2 }
  0xdc   : > { %v934_v51 = vsel %vm2485_vm3, 101, %v902_v48  ;;  %vm2491_vm6 = vcmp.lt.s32.totalorder %v910_v27, 98  ;;  %vm2486_vm9 = vcmp.gt.s32.totalorder %v921_v22, 101  ;;  %v954_v60 = vsel %vm2492_vm5, 98, %v903_v13  ;;  %836 = vst.msk [vmem:[#allocation2 + $0x1a8] sm:$0xff] %vm5102_vm14, %v2451_v56 }
  0xdd   : > { %v952_v36 = vsel %vm2491_vm6, 98, %v910_v27  ;;  %v936_v63 = vsel %vm2486_vm9, 101, %v921_v22  ;;  %vm2487_vm1 = vcmp.gt.s32.totalorder %v902_v48, 105  ;;  %vm2493_vm4 = vcmp.lt.s32.totalorder %v910_v27, 94 }
  0xde   : > { %v963_v20 = vsub.s32 %v934_v51, %v952_v36  ;;  %v964_v23 = vsub.s32 %v936_v63, %v954_v60  ;;  %v938_v52 = vsel %vm2487_vm1, 105, %v902_v48  ;;  %v956_v5 = vsel %vm2493_vm4, 94, %v910_v27  ;;  %v483_v60 = vld [vmem:[%s2989_s30 + $0x78] sm:$0xff] }
  0xdf   : > { %v965_v37 = vsub.s32 %v938_v52, %v956_v5  ;;  %vm2488_vm2 = vcmp.gt.s32.totalorder %v921_v22, 105  ;;  %vm2494_vm3 = vcmp.lt.s32.totalorder %v903_v13, 94  ;;  %vm5103_vm9 = vcmp.eq.s32.totalorder %v3541_v32, 0 }
  0xe0   : > { %v901_v4 = vpop.permute.xlu0 %900  ;;  %v3932_v2 = vadd.s32 1, %v963_v20  ;;  %v970_v46 = vadd.s32 1, %v964_v23  ;;  %v940_v29 = vsel %vm2488_vm2, 105, %v921_v22  ;;  %v958_v45 = vsel %vm2494_vm3, 94, %v903_v13  ;;  %v1199_v20 = vld [vmem:[#allocation2 + $0x2f8] sm:$0xff]  ;;  %v482_v22 = vld [vmem:[%s2989_s30 + $0x70] sm:$0xff] }
  0xe1   : > { %v904_v51 = vsub.s32 %v3541_v32, %v901_v4  ;;  %v905_v48 = vsub.s32 %v3579_v14, %v901_v4  ;;  %v3936_v63 = vadd.s32 1, %v965_v37  ;;  %v966_v56 = vsub.s32 %v940_v29, %v958_v45  ;;  %v480_v4 = vld [vmem:[%s2989_s30 + $0x60] sm:$0xff]  ;;  %v481_v45 = vld [vmem:[%s2989_s30 + $0x68] sm:$0xff] }
  0xe2   : > { %vm975_vm5 = vcmp.gt.s32.totalorder %v3932_v2, 0  ;;  %v3940_v5 = vcvt.s32.f32 %v3932_v2  ;;  %vm977_vm6 = vcmp.gt.s32.totalorder %v970_v46, 0  ;;  %v2499_v23 = vcvt.s32.f32 %v970_v46  ;;  %v1187_v46 = vld [vmem:[#allocation2 + $0x298] sm:$0xff] }
  0xe3   : > { %v912_v52 = vsel %vm5103_vm9, 4293918720, %v904_v51  ;;  %vm5104_vm1 = vcmp.eq.s32.totalorder %v3579_v14, 199  ;;  %vm2489_vm4 = vcmp.gt.s32.totalorder %v904_v51, 0  ;;  %vm2496_vm14 = vcmp.lt.s32.totalorder %v905_v48, 0  ;;  %v1193_v14 = vld [vmem:[#allocation2 + $0x2c8] sm:$0xff] }
  0xe4   : > { %v923_v13 = vsel %vm5104_vm1, 1048576, %v905_v48  ;;  %v942_v29 = vsel %vm2489_vm4, 0, %v904_v51  ;;  %vm2495_vm3 = vcmp.lt.s32.totalorder %v912_v52, 0  ;;  %v962_v27 = vsel %vm2496_vm14, 0, %v905_v48  ;;  %2541 = vmatmul.msk.f32.vlgmr.msra.gmra.mxu0 %vm975_vm5, %v3940_v5  ;;  %2545 = vmatmul.msk.f32.vlgmr.msra.gmra.mxu2 %vm975_vm5, %v3940_v5 }
  0xe5   : > { %vm2490_vm2 = vcmp.gt.s32.totalorder %v923_v13, 0  ;;  %v960_v37 = vsel %vm2495_vm3, 0, %v912_v52  ;;  %1484 = vmatpush.msra.mxu2 %v1199_v20  ;;  %1967 = vmatpush.bf16.msra.mxu0 %v3732_v62  ;;  %v3958_v51 = vsel %vm977_vm6, %v2499_v23, 0.0  ;;  %vm979_vm9 = vcmp.gt.s32.totalorder %v3936_v63, 0 }
  0xe6   : > { %v944_v36 = vsel %vm2490_vm2, 0, %v923_v13  ;;  %v967_v48 = vsub.s32 %v942_v29, %v960_v37  ;;  %vm5105_vm1 = vcmask 588800   ;;  %v3966_v13 = vcvt.s32.f32 %v3936_v63 }
  0xe7   : > { %v968_v32 = vsub.s32 %v944_v36, %v962_v27  ;;  %2543 = vmatmul.msk.f32.vlgmr.msra.gmra.mxu1 %vm5105_vm1, %v3958_v51  ;;  %vm5106_vm4 = vmmov %vm5105_vm1  ;;  %v972_v20 = vadd.s32 1, %v966_v56  ;;  %v4915_v52 = vmov 1.0   ;;  %v5107_v62 = vunpack.c.h.b16 %v3895_v25  ;;  %1485 = vmatpush.msra.mxu2 %v1193_v14 }
  0xe8   : > { %2547 = vmatmul.msk.f32.vlgmr.msra.gmra.mxu3 %vm5106_vm4, %v3958_v51  ;;  %2672 = vmatpush.msk.msra.mxu1 %vm3703_vm8, %v4915_v52  ;;  %v2449_v29 = vsel %vm3926_vm0, 1.0, %v5065_v15  ;;  %v3981_v27 = vpack.c.bf16 %v481_v45, %v480_v4  ;;  %v3983_v56 = vpack.c.bf16 %v483_v60, %v482_v22  ;;  %v3985_v36 = vadd.s32 1, %v967_v48  ;;  %vm5110_vm8 = vmmov %vm5105_vm1 }
  0xe9   : > { %2671 = vmatpush.msk.msra.mxu3 %vm3691_vm7, %v4915_v52  ;;  %v3976_v23 = vpack.c.b16 %v1850_v55, %v5107_v62  ;;  %v974_v43 = vadd.s32 1, %v968_v32  ;;  %vm981_vm7 = vcmp.gt.s32.totalorder %v972_v20, 0  ;;  %v2503_v8 = vcvt.s32.f32 %v972_v20  ;;  %834 = vst.msk [vmem:[#allocation2 + $0x178] sm:$0xff] %vm5110_vm8, %v2449_v29  ;;  %v1181_v55 = vld [vmem:[#allocation2 + $0x268] sm:$0xff]  ;;  %1486 = vmatpush.msra.mxu2 %v1187_v46  ;;  %vm5127_vm2 = vmmov %vm5105_vm1 }
  0xea   : > { %5108 = vst [vmem:[#allocation41_spill] sm:$0xff] %v3981_v27  ;;  %2674 = vmatpush.msk.msra.mxu1 %vm3726_vm11, %v4915_v52  ;;  %v1567_v39 = vunpack.c.l.bf16 %v3981_v27  ;;  %v1568_v37 = vunpack.c.h.bf16 %v3981_v27  ;;  %v1569_v32 = vunpack.c.l.bf16 %v3983_v56  ;;  %v1570_v14 = vunpack.c.h.bf16 %v3983_v56  ;;  %1968 = vmatpush.bf16.msra.mxu0 %v3803_v9 }
  0xeb   : > { %5109 = vst [vmem:[#allocation42_spill] sm:$0xff] %v3983_v56  ;;  %2673 = vmatpush.msk.msra.mxu3 %vm3720_vm10, %v4915_v52  ;;  %vm985_vm0 = vcmp.gt.s32.totalorder %v974_v43, 0  ;;  %v2505_v48 = vcvt.s32.f32 %v3985_v36  ;;  %v2507_v20 = vcvt.s32.f32 %v974_v43  ;;  %v4000_v54 = vsel %vm981_vm7, %v2503_v8, 0.0  ;;  %1487 = vmatpush.msra.mxu2 %v1181_v55  ;;  %v476_v55 = vld [vmem:[%s2989_s30 + $0x40] sm:$0xff] }
  0xec   : > { %2676 = vmatpush.msk.msra.mxu1 %vm3754_vm13, %v4915_v52  ;;  %v4008_v3 = vsub.f32 %v480_v4, %v1567_v39  ;;  %v4010_v62 = vsub.f32 %v481_v45, %v1568_v37  ;;  %v4012_v29 = vsub.f32 %v482_v22, %v1569_v32  ;;  %v5113_v9 = vunpack.c.l.bf16 %v3340_v1  ;;  %2542 = vmatmul.msk.f32.gmra.mxu0 %vm979_vm9, %v3966_v13 }
  0xed   : > { %2675 = vmatpush.msk.msra.mxu3 %vm3746_vm12, %v4915_v52  ;;  %v2508_v28 = vsel %vm985_vm0, %v2507_v20, 0.0  ;;  %v4020_v43 = vpack.c.bf16 %v2505_v48, %v2505_v48  ;;  %v4025_v4 = vsub.f32 %v483_v60, %v1570_v14  ;;  %vm5117_vm11 = vnez %v5053_v42  ;;  %2546 = vmatmul.msk.f32.gmra.mxu2 %vm979_vm9, %v3966_v13  ;;  %v1169_v42 = vld [vmem:[#allocation2 + $0x208] sm:$0xff]  ;;  %v478_v14 = vld [vmem:[%s2989_s30 + $0x50] sm:$0xff] }
  0xee   : > { %5111 = vst [vmem:[#allocation43_spill] sm:$0xff] %v4008_v3  ;;  %vm4016_vm10 = vcmp.eq.f32.partialorder %v5113_v9, 0.0  ;;  %v4027_v45 = vpack.c.bf16 %v2508_v28, %v2508_v28  ;;  %2678 = vmatpush.msk.msra.mxu1 %vm5117_vm11, %v4915_v52  ;;  %v4037_v1 = vpack.c.bf16 %v4010_v62, %v4008_v3  ;;  %v5118_v22 = vunpack.c.l.bf16 %v3550_v16  ;;  %1969 = vmatpush.bf16.msra.mxu0 %v3886_v34  ;;  %v479_v48 = vld [vmem:[%s2989_s30 + $0x58] sm:$0xff]  ;;  %vm5137_vm11 = vmmov %vm5105_vm1 }
  0xef   : > { %5112 = vst [vmem:[#allocation44_spill] sm:$0xff] %v4012_v29  ;;  %2677 = vmatpush.msk.msra.mxu3 %vm3774_vm15, %v4915_v52  ;;  %v5121_v8 = vunpack.c.h.bf16 %v3365_v12  ;;  %v4055_v39 = vpack.c.bf16 %v4025_v4, %v4012_v29  ;;  %v1859_v32 = vunpack.c.l.b16 %v3677_v53  ;;  %1488 = vmatpush.msra.mxu2 %v1175_v58  ;;  %vm5122_vm15 = vmmov %vm5105_vm1  ;;  %v1861_v9 = vunpack.c.l.b16 %v3687_v24  ;;  %v1163_v58 = vld [vmem:[#allocation2 + $0x1d8] sm:$0xff] }
  0xf0   : > { %5116 = vst [vmem:[#allocation45_spill] sm:$0xff] %v4025_v4  ;;  %vm4041_vm12 = vcmp.eq.f32.partialorder %v5118_v22, 0.0  ;;  %2544 = vmatmul.msk.f32.gmra.mxu1 %vm5122_vm15, %v4000_v54  ;;  %v1844_v20 = vunpack.c.h.b16 %v4037_v1  ;;  %v5123_v34 = vunpack.c.l.bf16 %v3365_v12  ;;  %v5126_v22 = vunpack.c.h.bf16 %v3466_v61  ;;  %2548 = vmatmul.msk.f32.gmra.mxu3 %vm5127_vm2, %v4000_v54  ;;  %v4211_v4 = vld [vmem:[%s2989_s30 + $0x180] sm:$0xff] }
  0xf1   : > { %vm682_vm13 = vcmp.eq.f32.partialorder %v5121_v8, 0.0  ;;  %vm5128_vm3 = vnez %v5070_v44  ;;  %v1846_v8 = vunpack.c.h.b16 %v4055_v39  ;;  %vm5130_vm4 = vnez %v5064_v11  ;;  %1489 = vmatpush.msra.mxu2 %v1169_v42  ;;  %v1157_v11 = vld [vmem:[#allocation2 + $0x1a8] sm:$0xff] }
  0xf2   : > { %v2447_v37 = vsel %vm682_vm13, 1.0, %v5065_v15  ;;  %vm4067_vm6 = vcmp.eq.f32.partialorder %v5123_v34, 0.0  ;;  %vm680_vm14 = vcmp.eq.f32.partialorder %v5126_v22, 0.0  ;;  %2679 = vmatpush.msk.msra.mxu1 %vm5128_vm3, %v4915_v52  ;;  %v4081_v34 = vpack.c.bf16 %v477_v0, %v476_v55  ;;  %2680 = vmatpush.msk.msra.mxu3 %vm5130_vm4, %v4915_v52 }
  0xf3   : > { %832 = vst.msk [vmem:[#allocation2 + $0x148] sm:$0xff] %vm5105_vm1, %v2447_v37  ;;  %v2445_v12 = vsel %vm680_vm14, 1.0, %v5065_v15  ;;  %v4086_v22 = vpack.c.b16 %v1861_v9, %v1859_v32  ;;  %v4088_v29 = vpack.c.bf16 %v479_v48, %v478_v14  ;;  %v5132_v44 = vunpack.c.l.bf16 %v3466_v61  ;;  %1970 = vmatpush.bf16.msra.mxu0 %v3976_v23  ;;  %1490 = vmatpush.msra.mxu2 %v1163_v58  ;;  %vm5142_vm14 = vmmov %vm5105_vm1 }
  0xf4   : > { %5129 = vst [vmem:[#allocation46_spill] sm:$0xff] %v4081_v34  ;;  %v5135_v37 = vunpack.c.h.bf16 %v3474_v57  ;;  %vm5136_vm0 = vnez %v5077_v49  ;;  %v1888_v42 = vpack.c.b16 %v1846_v8, %v1844_v20  ;;  %v1563_v61 = vunpack.c.l.bf16 %v4081_v34  ;;  %v472_v8 = vld [vmem:[%s2989_s30 + $0x20] sm:$0xff]  ;;  %2553 = vmatmul.msk.f32.vlgmr.msrb.gmra.mxu0 %vm975_vm5, %v3940_v5 }
  0xf5   : > { %5131 = vst [vmem:[#allocation47_spill] sm:$0xff] %v4088_v29  ;;  %vm4092_vm7 = vcmp.eq.f32.partialorder %v5132_v44, 0.0  ;;  %2681 = vmatpush.msk.msra.mxu1 %vm5136_vm0, %v4915_v52  ;;  %v1564_v32 = vunpack.c.h.bf16 %v4081_v34  ;;  %vm5138_vm13 = vnez %v5073_v18  ;;  %v1565_v49 = vunpack.c.l.bf16 %v4088_v29  ;;  %v1151_v18 = vld [vmem:[#allocation2 + $0x178] sm:$0xff]  ;;  %1491 = vmatpush.msra.mxu2 %v1157_v11 }
  0xf6   : > { %vm678_vm8 = vcmp.eq.f32.partialorder %v5135_v37, 0.0  ;;  %830 = vst.msk [vmem:[#allocation2 + $0x118] sm:$0xff] %vm5137_vm11, %v2445_v12  ;;  %2682 = vmatpush.msk.msra.mxu3 %vm5138_vm13, %v4915_v52  ;;  %v1566_v9 = vunpack.c.h.bf16 %v4088_v29  ;;  %v1855_v20 = vunpack.c.l.b16 %v3763_v59  ;;  %v473_v12 = vld [vmem:[%s2989_s30 + $0x28] sm:$0xff]  ;;  %vm5139_vm15 = vnez %v5086_v35  ;;  %v474_v35 = vld [vmem:[%s2989_s30 + $0x30] sm:$0xff] }
  0xf7   : > { %v2443_v23 = vsel %vm678_vm8, 1.0, %v5065_v15  ;;  %2683 = vmatpush.msk.msra.mxu1 %vm5139_vm15, %v4915_v52  ;;  %v4120_v58 = vsub.f32 %v476_v55, %v1563_v61  ;;  %v4122_v44 = vsub.f32 %v477_v0, %v1564_v32  ;;  %v1857_v37 = vunpack.c.l.b16 %v3767_v31  ;;  %v475_v52 = vld [vmem:[%s2989_s30 + $0x38] sm:$0xff]  ;;  %vm5152_vm8 = vmmov %vm5137_vm11  ;;  %1492 = vmatpush.msra.mxu2 %v1151_v18 }
  0xf8   : > { %828 = vst.msk [vmem:[#allocation2 + $0xe8] sm:$0xff] %vm5142_vm14, %v2443_v23  ;;  %v5143_v29 = vunpack.c.l.bf16 %v3474_v57  ;;  %v5146_v56 = vmov 1.0   ;;  %vm5147_vm3 = vnez %v5081_v50  ;;  %v4137_v55 = vsub.f32 %v478_v14, %v1565_v49  ;;  %2555 = vmatmul.msk.f32.vlgmr.msrb.gmra.mxu2 %vm5152_vm8, %v3958_v51  ;;  %vm5157_vm13 = vmmov %vm5152_vm8  ;;  %1971 = vmatpush.bf16.msra.mxu0 %v1888_v42 }
  0xf9   : > { %5140 = vst [vmem:[#allocation48_spill] sm:$0xff] %v4120_v58  ;;  %2684 = vmatpush.msk.msra.mxu3 %vm5147_vm3, %v5146_v56  ;;  %v4139_v0 = vsub.f32 %v479_v48, %v1566_v9  ;;  %v5150_v61 = vunpack.c.h.bf16 %v3490_v7  ;;  %vm5151_vm4 = vnez %v5095_v30  ;;  %v4150_v57 = vpack.c.bf16 %v4122_v44, %v4120_v58  ;;  %2549 = vmatmul.msk.f32.vlgmr.msrb.gmra.mxu1 %vm975_vm5, %v3940_v5  ;;  %vm5161_vm14 = vmmov %vm5152_vm8  ;;  %v469_v58 = vld [vmem:[%s2989_s30 + $0x8] sm:$0xff]  ;;  %v512_v48 = vld [vmem:[%s2989_s30 + $0x160] sm:$0xff] }
  0xfa   : > { %5141 = vst [vmem:[#allocation49_spill] sm:$0xff] %v4122_v44  ;;  %vm4128_vm2 = vcmp.eq.f32.partialorder %v5143_v29, 0.0  ;;  %2685 = vmatpush.msk.msra.mxu1 %vm5151_vm4, %v5146_v56  ;;  %v1893_v50 = vpack.c.b16 %v1857_v37, %v1855_v20  ;;  %v5153_v14 = vunpack.c.l.bf16 %v3490_v7  ;;  %vm5156_vm11 = vnez %v5092_v26  ;;  %v1145_v30 = vld [vmem:[#allocation2 + $0x148] sm:$0xff]  ;;  %2551 = vmatmul.msk.f32.vlgmr.msrb.gmra.mxu3 %vm5161_vm14, %v3958_v51 }
  0xfb   : > { %5148 = vst [vmem:[#allocation50_spill] sm:$0xff] %v4137_v55  ;;  %vm676_vm1 = vcmp.eq.f32.partialorder %v5150_v61, 0.0  ;;  %2686 = vmatpush.msk.msra.mxu3 %vm5156_vm11, %v5146_v56  ;;  %v4164_v11 = vpack.c.bf16 %v4139_v0, %v4137_v55  ;;  %v4167_v32 = vpack.c.bf16 %v473_v12, %v472_v8  ;;  %v4169_v7 = vpack.c.bf16 %v475_v52, %v474_v35  ;;  %v468_v61 = vld [vmem:[%s2989_s30] sm:$0xff] }
  0xfc   : > { %5149 = vst [vmem:[#allocation51_spill] sm:$0xff] %v4139_v0  ;;  %v2441_v29 = vsel %vm676_vm1, 1.0, %v5065_v15  ;;  %vm4155_vm0 = vcmp.eq.f32.partialorder %v5153_v14, 0.0  ;;  %v1840_v26 = vunpack.c.h.b16 %v4150_v57  ;;  %v5160_v49 = vunpack.c.h.bf16 %v3508_v10  ;;  %2687 = vmatpush.msk.msra.mxu1 %vm4041_vm12, %v5146_v56  ;;  %1493 = vmatpush.msra.mxu2 %v1145_v30  ;;  %v471_v0 = vld [vmem:[%s2989_s30 + $0x18] sm:$0xff] }
  0xfd   : > { %826 = vst.msk [vmem:[#allocation2 + $0xb8] sm:$0xff] %vm5157_vm13, %v2441_v29  ;;  %v1851_v9 = vunpack.c.l.b16 %v3841_v38  ;;  %v1139_v42 = vld [vmem:[#allocation2 + $0x118] sm:$0xff]  ;;  %v1842_v23 = vunpack.c.h.b16 %v4164_v11  ;;  %v1559_v20 = vunpack.c.l.bf16 %v4167_v32  ;;  %v1560_v18 = vunpack.c.h.bf16 %v4167_v32  ;;  %2688 = vmatpush.msk.msra.mxu3 %vm4016_vm10, %v5146_v56  ;;  %vm5169_vm10 = vmmov %vm5152_vm8  ;;  %2554 = vmatmul.msk.f32.gmra.mxu0 %vm979_vm9, %v3966_v13 }
  0xfe   : > { %5158 = vst [vmem:[#allocation52_spill] sm:$0xff] %v4167_v32  ;;  %vm674_vm15 = vcmp.eq.f32.partialorder %v5160_v49, 0.0  ;;  %v1561_v37 = vunpack.c.l.bf16 %v4169_v7  ;;  %v1562_v60 = vunpack.c.h.bf16 %v4169_v7  ;;  %v1853_v14 = vunpack.c.l.b16 %v3853_v41  ;;  %v470_v32 = vld [vmem:[%s2989_s30 + $0x10] sm:$0xff]  ;;  %1941 = vmatpush.bf16.msrb.mxu1 %v4086_v22  ;;  %1494 = vmatpush.msra.mxu2 %v1139_v42 }
  0xff   : > { %5159 = vst [vmem:[#allocation53_spill] sm:$0xff] %v4169_v7  ;;  %v2439_v29 = vsel %vm674_vm15, 1.0, %v5065_v15  ;;  %v5162_v49 = vunpack.c.l.bf16 %v3508_v10  ;;  %v1886_v46 = vpack.c.b16 %v1842_v23, %v1840_v26  ;;  %v1133_v44 = vld [vmem:[#allocation2 + $0xe8] sm:$0xff]  ;;  %v4204_v30 = vsub.f32 %v472_v8, %v1559_v20  ;;  %2689 = vmatpush.msk.msra.mxu3 %vm4067_vm6, %v5146_v56  ;;  %vm5175_vm6 = vmmov %vm5152_vm8 }
 0x100   : > { %v4206_v7 = vsub.f32 %v473_v12, %v1560_v18  ;;  %v4208_v27 = vsub.f32 %v474_v35, %v1561_v37  ;;  %v4214_v10 = vld [vmem:[%s2989_s30 + $0x188] sm:$0xff]  ;;  %824 = vst.msk [vmem:[#allocation2 + $0x88] sm:$0xff] %vm5169_vm10, %v2439_v29  ;;  %v1891_v22 = vpack.c.b16 %v1853_v14, %v1851_v9  ;;  %v5170_v8 = vunpack.c.h.bf16 %v3526_v17  ;;  %1495 = vmatpush.msra.mxu2 %v1133_v44  ;;  %vm5182_vm4 = vmmov %vm5175_vm6 }
 0x101   : > { %vm4196_vm12 = vcmp.eq.f32.partialorder %v5162_v49, 0.0  ;;  %5165 = vst [vmem:[#allocation54_spill] sm:$0xff] %v4204_v30  ;;  %v4219_v49 = vsub.f32 %v475_v52, %v1562_v60  ;;  %1972 = vmatpush.bf16.msra.mxu0 %v1886_v46  ;;  %v4229_v26 = vpack.c.bf16 %v469_v58, %v468_v61  ;;  %v4231_v28 = vpack.c.bf16 %v471_v0, %v470_v32  ;;  %vm5186_vm8 = vmmov %vm5182_vm4 }
 0x102   : > { %5166 = vst [vmem:[#allocation55_spill] sm:$0xff] %v4206_v7  ;;  %vm672_vm3 = vcmp.eq.f32.partialorder %v5170_v8, 0.0  ;;  %v4226_v12 = vpack.c.bf16 %v4206_v7, %v4204_v30  ;;  %2690 = vmatpush.msk.msra.mxu3 %vm4092_vm7, %v5146_v56  ;;  %v5176_v42 = vunpack.c.l.bf16 %v3526_v17  ;;  %v4249_v20 = vpack.c.bf16 %v4214_v10, %v4211_v4  ;;  %1942 = vmatpush.bf16.msrb.mxu1 %v1893_v50  ;;  %vm5189_vm11 = vmmov %vm5182_vm4 }
 0x103   : > { %5167 = vst [vmem:[#allocation56_spill] sm:$0xff] %v4208_v27  ;;  %v2437_v35 = vsel %vm672_vm3, 1.0, %v5065_v15  ;;  %v4238_v9 = vpack.c.bf16 %v4219_v49, %v4208_v27  ;;  %v5179_v3 = vunpack.c.h.bf16 %v3547_v33  ;;  %v1555_v18 = vunpack.c.l.bf16 %v4229_v26  ;;  %2556 = vmatmul.msk.f32.gmra.mxu2 %vm5182_vm4, %v4000_v54  ;;  %2550 = vmatmul.msk.f32.gmra.mxu1 %vm979_vm9, %v3966_v13  ;;  %vm5197_vm14 = vmmov %vm5182_vm4  ;;  %v507_v27 = vld [vmem:[%s2989_s30 + $0x138] sm:$0xff] }
 0x104   : > { %5168 = vst [vmem:[#allocation57_spill] sm:$0xff] %v4219_v49  ;;  %v1127_v52 = vld [vmem:[#allocation2 + $0xb8] sm:$0xff]  ;;  %vm4243_vm1 = vcmp.eq.f32.partialorder %v5176_v42, 0.0  ;;  %v1836_v17 = vunpack.c.h.b16 %v4226_v12  ;;  %v1556_v37 = vunpack.c.h.bf16 %v4229_v26  ;;  %v1557_v60 = vunpack.c.l.bf16 %v4231_v28  ;;  %2691 = vmatpush.msk.msra.mxu3 %vm4128_vm2, %v5146_v56  ;;  %vm5199_vm10 = vmmov %vm5182_vm4 }
 0x105   : > { %5171 = vst [vmem:[#allocation58_spill] sm:$0xff] %v4226_v12  ;;  %vm4253_vm7 = vcmp.eq.f32.partialorder %v5179_v3, 0.0  ;;  %v1838_v50 = vunpack.c.h.b16 %v4238_v9  ;;  %v1558_v29 = vunpack.c.h.bf16 %v4231_v28  ;;  %v2067_v14 = vunpack.c.h.b16 %v4249_v20  ;;  %1496 = vmatpush.msra.mxu2 %v1127_v52  ;;  %2552 = vmatmul.msk.f32.gmra.mxu3 %vm5186_vm8, %v4000_v54  ;;  %vm5200_vm3 = vmmov %vm5182_vm4 }
 0x106   : > { %5172 = vst [vmem:[#allocation59_spill] sm:$0xff] %v4229_v26  ;;  %v4275_v46 = vsub.f32 %v468_v61, %v1555_v18  ;;  %v4277_v8 = vsub.f32 %v469_v58, %v1556_v37  ;;  %v4279_v34 = vsub.f32 %v470_v32, %v1557_v60  ;;  %vm1934_vm2 = vcmask 1043456   ;;  %2692 = vmatpush.msk.msra.mxu3 %vm4155_vm0, %v5146_v56  ;;  %v513_v60 = vld [vmem:[%s2989_s30 + $0x168] sm:$0xff]  ;;  %vm5210_vm4 = vmmov %vm5200_vm3 }
 0x107   : > { %5173 = vst [vmem:[#allocation60_spill] sm:$0xff] %v4231_v28  ;;  %v4283_v42 = vsub.f32 %v471_v0, %v1558_v29  ;;  %v2093_v3 = vpack.c.b16 %v2067_v14, %v2067_v14  ;;  %v2435_v52 = vsel %vm4253_vm7, 1.0, %v5065_v15  ;;  %v1121_v58 = vld [vmem:[#allocation2 + $0x88] sm:$0xff]  ;;  %1943 = vmatpush.bf16.msrb.mxu1 %v1891_v22  ;;  %v1847_v0 = vunpack.c.l.b16 %v3895_v25  ;;  %vm5211_vm8 = vmmov %vm5200_vm3 }
 0x108   : > { %5174 = vst [vmem:[#allocation61_spill] sm:$0xff] %v4238_v9  ;;  %v4293_v32 = vpack.c.bf16 %v4277_v8, %v4275_v46  ;;  %v1849_v61 = vunpack.c.l.b16 %v3915_v19  ;;  %v5190_v44 = vunpack.c.l.bf16 %v3547_v33  ;;  %1497 = vmatpush.msra.mxu2 %v1121_v58  ;;  %v1603_v37 = vunpack.c.l.bf16 %v4249_v20  ;;  %v515_v29 = vld [vmem:[%s2989_s30 + $0x178] sm:$0xff]  ;;  %2693 = vmatpush.msk.msra.mxu3 %vm4196_vm12, %v5146_v56 }
 0x109   : > { %822 = vst.msk [vmem:[#allocation2 + $0x58] sm:$0xff] %vm5175_vm6, %v2437_v35  ;;  %v1884_v35 = vpack.c.b16 %v1838_v50, %v1836_v17  ;;  %v4307_v22 = vpack.c.bf16 %v4283_v42, %v4279_v34  ;;  %v2122_v18 = vsel %vm1934_vm2, %v2093_v3, 0  ;;  %v514_v50 = vld [vmem:[%s2989_s30 + $0x170] sm:$0xff]  ;;  %v5194_v58 = vunpack.c.h.bf16 %v3371_v6 }
 0x10a   : > { %5183 = vst [vmem:[#allocation62_spill] sm:$0xff] %v4275_v46  ;;  %vm4300_vm13 = vcmp.eq.f32.partialorder %v5190_v44, 0.0  ;;  %v1832_v14 = vunpack.c.h.b16 %v4293_v32  ;;  %v4323_v44 = vsub.f32 %v4211_v4, %v1603_v37  ;;  %vm983_vm15 = vcmp.gt.s32.totalorder %v3985_v36, 0  ;;  %2694 = vmatpush.msk.msra.mxu3 %vm4243_vm1, %v5146_v56 }
 0x10b   : > { %5184 = vst [vmem:[#allocation63_spill] sm:$0xff] %v4277_v8  ;;  %1973 = vmatpush.bf16.msra.mxu0 %v1884_v35  ;;  %v1889_v35 = vpack.c.b16 %v1849_v61, %v1847_v0  ;;  %vm718_vm0 = vcmp.eq.f32.partialorder %v5194_v58, 0.0  ;;  %v1834_v3 = vunpack.c.h.b16 %v4307_v22  ;;  %v4334_v6 = vpack.c.bf16 %v513_v60, %v512_v48  ;;  %2559 = vmatmul.msk.f32.vlgmr.msra.gmra.mxu1 %vm5199_vm10, %v3958_v51  ;;  %v508_v58 = vld [vmem:[%s2989_s30 + $0x140] sm:$0xff]  ;;  %vm4375_vm1 = vmpackc.low %vm983_vm15, %vm983_vm15 }
 0x10c   : > { %5185 = vst [vmem:[#allocation64_spill] sm:$0xff] %v4279_v34  ;;  %v2483_v34 = vsel %vm718_vm0, 1.0, %v5065_v15  ;;  %v4336_v0 = vpack.c.bf16 %v515_v29, %v514_v50  ;;  %v5198_v61 = vunpack.c.h.bf16 %v3382_v47  ;;  %v1843_v37 = vunpack.c.l.b16 %v4037_v1  ;;  %2695 = vmatpush.msk.msra.mxu3 %vm4300_vm13, %v5146_v56  ;;  %vm5218_vm13 = vmmov %vm5200_vm3 }
 0x10d   : > { %5187 = vst [vmem:[#allocation65_spill] sm:$0xff] %v4283_v42  ;;  %1944 = vmatpush.bf16.msrb.mxu1 %v1889_v35  ;;  %v1882_v4 = vpack.c.b16 %v1834_v3, %v1832_v14  ;;  %v1845_v23 = vunpack.c.l.b16 %v4055_v39  ;;  %v2063_v47 = vunpack.c.h.b16 %v4334_v6  ;;  %2557 = vmatmul.msk.f32.vlgmr.msra.gmra.mxu3 %vm975_vm5, %v3940_v5  ;;  %v1599_v17 = vunpack.c.l.bf16 %v4334_v6  ;;  %v509_v3 = vld [vmem:[%s2989_s30 + $0x148] sm:$0xff]  ;;  %vm5231_vm10 = vmmov %vm5200_vm3 }
 0x10e   : > { %5188 = vst [vmem:[#allocation66_spill] sm:$0xff] %v4293_v32  ;;  %vm716_vm12 = vcmp.eq.f32.partialorder %v5198_v61, 0.0  ;;  %v1600_v35 = vunpack.c.h.bf16 %v4334_v6  ;;  %v5201_v46 = vunpack.c.h.bf16 %v3396_v40  ;;  %v5209_v36 = vunpack.c.h.bf16 %v3469_v21 }
 0x10f   : > { %820 = vst.msk [vmem:[#allocation2 + $0x28] sm:$0xff] %vm5189_vm11, %v2435_v52  ;;  %v1604_v52 = vunpack.c.h.bf16 %v4249_v20  ;;  %1974 = vmatpush.bf16.msra.mxu0 %v1882_v4  ;;  %v1887_v56 = vpack.c.b16 %v1845_v23, %v1843_v37  ;;  %v511_v37 = vld [vmem:[%s2989_s30 + $0x158] sm:$0xff]  ;;  %v4379_v23 = vsub.f32 %v512_v48, %v1599_v17  ;;  %v1841_v17 = vunpack.c.l.b16 %v4164_v11 }
 0x110   : > { %5193 = vst [vmem:[#allocation67_spill] sm:$0xff] %v4307_v22  ;;  %v1115_v33 = vld [vmem:[#allocation2 + $0x58] sm:$0xff]  ;;  %vm714_vm6 = vcmp.eq.f32.partialorder %v5201_v46, 0.0  ;;  %vm712_vm7 = vcmp.eq.f32.partialorder %v5209_v36, 0.0  ;;  %v1835_v63 = vunpack.c.l.b16 %v4226_v12 }
 0x111   : > { %1498 = vmatpush.msra.mxu2 %v1115_v33  ;;  %5195 = vst [vmem:[#allocation68_spill] sm:$0xff] %v4323_v44  ;;  %v4331_v55 = vsub.f32 %v4214_v10, %v1604_v52  ;;  %v2481_v33 = vsel %vm716_vm12, 1.0, %v5065_v15  ;;  %v1601_v52 = vunpack.c.l.bf16 %v4336_v0  ;;  %1945 = vmatpush.bf16.msrb.mxu1 %v1887_v56  ;;  %v2479_v46 = vsel %vm714_vm6, 1.0, %v5065_v15  ;;  %vm5241_vm6 = vmmov %vm5210_vm4 }
 0x112   : > { %868 = vst.msk [vmem:[#allocation2 + $0x4a8] sm:$0xff] %vm5197_vm14, %v2483_v34  ;;  %v2065_v34 = vunpack.c.h.b16 %v4336_v0  ;;  %2571 = vmatmul.msk.bf16.vlgmr.msra.gmra.mxu0 %vm4375_vm1, %v4020_v43  ;;  %vm5228_vm14 = vmmov %vm5200_vm3 }
 0x113   : > { %5196 = vst [vmem:[#allocation69_spill] sm:$0xff] %v4331_v55  ;;  %v4347_v10 = vpack.c.bf16 %v4331_v55, %v4323_v44  ;;  %2166 = vmatpush.bf16.msrb.mxu0 %v2122_v18  ;;  %v1602_v44 = vunpack.c.h.bf16 %v4336_v0  ;;  %v4383_v40 = vsub.f32 %v514_v50, %v1601_v52  ;;  %2560 = vmatmul.msk.f32.gmra.mxu1 %vm5211_vm8, %v4000_v54  ;;  %v5214_v55 = vld [vmem:[#allocation11_spill] sm:$0xff]  ;;  %vm5260_vm8 = vmmov %vm5210_vm4 }
 0x114   : > { %866 = vst.msk [vmem:[#allocation2 + $0x478] sm:$0xff] %vm5200_vm3, %v2481_v33  ;;  %v2091_v61 = vpack.c.b16 %v2065_v34, %v2063_v47  ;;  %v510_v33 = vld [vmem:[%s2989_s30 + $0x150] sm:$0xff]  ;;  %v4381_v47 = vsub.f32 %v513_v60, %v1600_v35  ;;  %v5215_v42 = vunpack.c.h.bf16 %v5214_v55 }
 0x115   : > { %v1880_v4 = vunpack.c.h.b16 %v4347_v10  ;;  %5204 = vst [vmem:[#allocation70_spill] sm:$0xff] %v4379_v23  ;;  %v4389_v2 = vsub.f32 %v515_v29, %v1602_v44  ;;  %v4400_v50 = vpack.c.bf16 %v511_v37, %v510_v33  ;;  %v1839_v29 = vunpack.c.l.b16 %v4150_v57  ;;  %2558 = vmatmul.msk.f32.gmra.mxu3 %vm979_vm9, %v3966_v13 }
 0x116   : > { %v1109_v14 = vld [vmem:[#allocation2 + $0x28] sm:$0xff]  ;;  %5205 = vst [vmem:[#allocation71_spill] sm:$0xff] %v4381_v47  ;;  %v4398_v60 = vpack.c.bf16 %v4381_v47, %v4379_v23  ;;  %vm710_vm11 = vcmp.eq.f32.partialorder %v5215_v42, 0.0 }
 0x117   : > { %1499 = vmatpush.msra.mxu2 %v1109_v14  ;;  %5206 = vst [vmem:[#allocation72_spill] sm:$0xff] %v4383_v40  ;;  %v1906_v34 = vpack.c.b16 %v1880_v4, %v1880_v4  ;;  %v2477_v14 = vsel %vm712_vm7, 1.0, %v5065_v15  ;;  %2167 = vmatpush.bf16.msrb.mxu0 %v2091_v61  ;;  %v4407_v21 = vpack.c.bf16 %v4389_v2, %v4383_v40  ;;  %v2061_v52 = vunpack.c.h.b16 %v4400_v50  ;;  %vm5252_vm7 = vmmov %vm5210_vm4 }
 0x118   : > { %2561 = vmatmul.msk.f32.vlgmr.msra.gmra.mxu2 %vm975_vm5, %v3940_v5  ;;  %5207 = vst [vmem:[#allocation73_spill] sm:$0xff] %v4389_v2  ;;  %vm5208_vm5 = vmmov %vm5200_vm3  ;;  %v4392_v5 = vpack.c.bf16 %v509_v3, %v508_v58  ;;  %v1876_v35 = vunpack.c.h.b16 %v4398_v60  ;;  %v1885_v40 = vpack.c.b16 %v1841_v17, %v1839_v29  ;;  %v1598_v23 = vunpack.c.h.bf16 %v4400_v50 }
 0x119   : > { %864 = vst.msk [vmem:[#allocation2 + $0x448] sm:$0xff] %vm5208_vm5, %v2479_v46  ;;  %v1253_v48 = vld [vmem:[#allocation2 + $0x4a8] sm:$0xff]  ;;  %v1939_v44 = vsel %vm1934_vm2, %v1906_v34, 0  ;;  %v504_v46 = vld [vmem:[%s2989_s30 + $0x120] sm:$0xff]  ;;  %v2475_v28 = vsel %vm710_vm11, 1.0, %v5065_v15  ;;  %vm5243_vm5 = vmmov %vm5210_vm4 }
 0x11a   : > { %1513 = vmatpush.msrb.mxu3 %v1253_v48  ;;  %v2059_v56 = vunpack.c.h.b16 %v4392_v5  ;;  %862 = vst.msk [vmem:[#allocation2 + $0x418] sm:$0xff] %vm5210_vm4, %v2477_v14  ;;  %1983 = vmatpush.bf16.msrb.mxu2 %v1939_v44  ;;  %v1595_v4 = vunpack.c.l.bf16 %v4392_v5  ;;  %v1596_v61 = vunpack.c.h.bf16 %v4392_v5  ;;  %v505_v34 = vld [vmem:[%s2989_s30 + $0x128] sm:$0xff]  ;;  %v1878_v48 = vunpack.c.h.b16 %v4407_v21  ;;  %v506_v44 = vld [vmem:[%s2989_s30 + $0x130] sm:$0xff]  ;;  %vm5272_vm11 = vmmov %vm5210_vm4 }
 0x11b   : > { %v1247_v36 = vld [vmem:[#allocation2 + $0x478] sm:$0xff]  ;;  %v1597_v14 = vunpack.c.l.bf16 %v4400_v50  ;;  %1946 = vmatpush.bf16.msrb.mxu1 %v1885_v40  ;;  %v4433_v17 = vsub.f32 %v511_v37, %v1598_v23  ;;  %860 = vst.msk [vmem:[#allocation2 + $0x3e8] sm:$0xff] %vm5218_vm13, %v2475_v28  ;;  %v4447_v42 = vpack.c.bf16 %v505_v34, %v504_v46  ;;  %v4449_v55 = vpack.c.bf16 %v507_v27, %v506_v44  ;;  %vm5284_vm13 = vmmov %vm5210_vm4 }
 0x11c   : > { %1514 = vmatpush.msrb.mxu3 %v1247_v36  ;;  %v2089_v30 = vpack.c.b16 %v2061_v52, %v2059_v56  ;;  %v4425_v2 = vsub.f32 %v508_v58, %v1595_v4  ;;  %v4427_v47 = vsub.f32 %v509_v3, %v1596_v61  ;;  %v1904_v8 = vpack.c.b16 %v1878_v48, %v1876_v35  ;;  %v5219_v3 = vld [vmem:[#allocation12_spill] sm:$0xff]  ;;  %v501_v48 = vld [vmem:[%s2989_s30 + $0x108] sm:$0xff] }
 0x11d   : > { %v4431_v29 = vsub.f32 %v510_v33, %v1597_v14  ;;  %5217 = vst [vmem:[#allocation76_spill] sm:$0xff] %v4433_v17  ;;  %v5220_v33 = vunpack.c.h.bf16 %v5219_v3  ;;  %v2057_v23 = vunpack.c.h.b16 %v4449_v55  ;;  %v1591_v4 = vunpack.c.l.bf16 %v4447_v42  ;;  %v500_v36 = vld [vmem:[%s2989_s30 + $0x100] sm:$0xff] }
 0x11e   : > { %5212 = vst [vmem:[#allocation74_spill] sm:$0xff] %v4425_v2  ;;  %2168 = vmatpush.bf16.msrb.mxu0 %v2089_v30  ;;  %v4441_v58 = vpack.c.bf16 %v4427_v47, %v4425_v2  ;;  %1984 = vmatpush.bf16.msrb.mxu2 %v1904_v8  ;;  %v2055_v8 = vunpack.c.h.b16 %v4447_v42  ;;  %v1592_v61 = vunpack.c.h.bf16 %v4447_v42  ;;  %v1594_v3 = vunpack.c.h.bf16 %v4449_v55  ;;  %v503_v2 = vld [vmem:[%s2989_s30 + $0x118] sm:$0xff] }
 0x11f   : > { %5213 = vst [vmem:[#allocation75_spill] sm:$0xff] %v4427_v47  ;;  %v4453_v30 = vpack.c.bf16 %v4433_v17, %v4431_v29  ;;  %vm708_vm0 = vcmp.eq.f32.partialorder %v5220_v33, 0.0  ;;  %v5222_v33 = vld [vmem:[#allocation13_spill] sm:$0xff] }
 0x120   : > { %5216 = vst [vmem:[#allocation11_spill] sm:$0xff] %v4431_v29  ;;  %v1241_v56 = vld [vmem:[#allocation2 + $0x448] sm:$0xff]  ;;  %2562 = vmatmul.msk.f32.gmra.mxu2 %vm979_vm9, %v3966_v13  ;;  %v1837_v13 = vunpack.c.l.b16 %v4238_v9  ;;  %v1872_v37 = vunpack.c.h.b16 %v4441_v58  ;;  %v2473_v40 = vsel %vm708_vm0, 1.0, %v5065_v15  ;;  %vm5221_vm9 = vmmov %vm5200_vm3  ;;  %v2087_v14 = vpack.c.b16 %v2057_v23, %v2055_v8 }
 0x121   : > { %1515 = vmatpush.msrb.mxu3 %v1241_v56  ;;  %v1235_v28 = vld [vmem:[#allocation2 + $0x418] sm:$0xff]  ;;  %v1874_v35 = vunpack.c.h.b16 %v4453_v30  ;;  %858 = vst.msk [vmem:[#allocation2 + $0x3b8] sm:$0xff] %vm5221_vm9, %v2473_v40  ;;  %v1593_v56 = vunpack.c.l.bf16 %v4449_v55  ;;  %v5223_v29 = vunpack.c.h.bf16 %v5222_v33  ;;  %v4475_v40 = vsub.f32 %v504_v46, %v1591_v4 }
 0x122   : > { %v1883_v52 = vpack.c.b16 %v1837_v13, %v1835_v63  ;;  %v4477_v63 = vsub.f32 %v505_v34, %v1592_v61  ;;  %2169 = vmatpush.bf16.msrb.mxu0 %v2087_v14  ;;  %v4482_v8 = vsub.f32 %v507_v27, %v1594_v3  ;;  %v4485_v23 = vpack.c.bf16 %v501_v48, %v500_v36  ;;  %v1229_v46 = vld [vmem:[#allocation2 + $0x3e8] sm:$0xff]  ;;  %v4509_v3 = vld [vmem:[%s3028_s28] sm:$0xff] }
 0x123   : > { %1516 = vmatpush.msrb.mxu3 %v1235_v28  ;;  %vm706_vm15 = vcmp.eq.f32.partialorder %v5223_v29, 0.0  ;;  %v502_v28 = vld [vmem:[%s2989_s30 + $0x110] sm:$0xff]  ;;  %v1902_v17 = vpack.c.b16 %v1874_v35, %v1872_v37  ;;  %5224 = vst [vmem:[#allocation12_spill] sm:$0xff] %v4475_v40  ;;  %v4480_v47 = vsub.f32 %v506_v44, %v1593_v56  ;;  %v1831_v27 = vunpack.c.l.b16 %v4293_v32 }
 0x124   : > { %1947 = vmatpush.bf16.msrb.mxu1 %v1883_v52  ;;  %5225 = vst [vmem:[#allocation13_spill] sm:$0xff] %v4477_v63  ;;  %v2471_v13 = vsel %vm706_vm15, 1.0, %v5065_v15  ;;  %v5229_v29 = vld [vmem:[#allocation14_spill] sm:$0xff]  ;;  %v4491_v34 = vpack.c.bf16 %v4477_v63, %v4475_v40  ;;  %v4493_v37 = vpack.c.bf16 %v503_v2, %v502_v28  ;;  %v2051_v52 = vunpack.c.h.b16 %v4485_v23 }
 0x125   : > { %5226 = vst [vmem:[#allocation77_spill] sm:$0xff] %v4480_v47  ;;  %v5230_v33 = vunpack.c.h.bf16 %v5229_v29  ;;  %1985 = vmatpush.bf16.msrb.mxu2 %v1902_v17  ;;  %1517 = vmatpush.msrb.mxu3 %v1229_v46  ;;  %v4499_v35 = vpack.c.bf16 %v4482_v8, %v4480_v47  ;;  %v1833_v17 = vunpack.c.l.b16 %v4307_v22  ;;  %v1709_v4 = vunpack.c.h.bf16 %v3677_v53  ;;  %v5233_v47 = vld [vmem:[#allocation20_spill] sm:$0xff]  ;;  %v5234_v63 = vld [vmem:[#allocation22_spill] sm:$0xff] }
 0x126   : > { %5227 = vst [vmem:[#allocation78_spill] sm:$0xff] %v4482_v8  ;;  %v1868_v61 = vunpack.c.h.b16 %v4491_v34  ;;  %v2053_v14 = vunpack.c.h.b16 %v4493_v37  ;;  %v1711_v56 = vunpack.c.h.bf16 %v3687_v24  ;;  %v1587_v40 = vunpack.c.l.bf16 %v4485_v23  ;;  %v5235_v22 = vld [vmem:[#allocation10_spill] sm:$0xff] }
 0x127   : > { %856 = vst.msk [vmem:[#allocation2 + $0x388] sm:$0xff] %vm5228_vm14, %v2471_v13  ;;  %vm704_vm12 = vcmp.eq.f32.partialorder %v5230_v33, 0.0  ;;  %v879_v13 = vadd.f32 10.0, %v4509_v3  ;;  %v1870_v33 = vunpack.c.h.b16 %v4499_v35  ;;  %v1881_v46 = vpack.c.b16 %v1833_v17, %v1831_v27 }
 0x128   : > { %v2469_v44 = vsel %vm704_vm12, 1.0, %v5065_v15  ;;  %5232 = vst [vmem:[#allocation14_spill] sm:$0xff] %v4509_v3  ;;  %v1223_v29 = vld [vmem:[#allocation2 + $0x3b8] sm:$0xff]  ;;  %v2085_v8 = vpack.c.b16 %v2053_v14, %v2051_v52  ;;  %v1761_v26 = vsub.f32 %v5234_v63, %v1711_v56  ;;  %v1588_v49 = vunpack.c.h.bf16 %v4485_v23  ;;  %v5240_v56 = vld [vmem:[#allocation17_spill] sm:$0xff] }
 0x129   : > { %854 = vst.msk [vmem:[#allocation2 + $0x358] sm:$0xff] %vm5231_vm10, %v2469_v44  ;;  %v1759_v44 = vsub.f32 %v5233_v47, %v1709_v4  ;;  %1518 = vmatpush.msrb.mxu3 %v1223_v29  ;;  %v880_v32 = vmul.f32 %v879_v13, %v5235_v22  ;;  %v1900_v7 = vpack.c.b16 %v1870_v33, %v1868_v61  ;;  %v1589_v3 = vunpack.c.l.bf16 %v4493_v37 }
 0x12a   : > { %1948 = vmatpush.bf16.msrb.mxu1 %v1881_v46  ;;  %v1590_v9 = vunpack.c.h.bf16 %v4493_v37  ;;  %v4520_v12 = vsub.f32 %v500_v36, %v1587_v40  ;;  %2170 = vmatpush.bf16.msrb.mxu0 %v2085_v8  ;;  %v4522_v4 = vsub.f32 %v501_v48, %v1588_v49  ;;  %v2066_v63 = vunpack.c.l.b16 %v4249_v20  ;;  %v5244_v46 = vld [vmem:[#allocation26_spill] sm:$0xff] }
 0x12b   : > { %v1795_v47 = vpack.c.bf16 %v1761_v26, %v1759_v44  ;;  %v881_v17 = vfloor.f32 %v880_v32  ;;  %1986 = vmatpush.bf16.msrb.mxu2 %v1900_v7  ;;  %v4525_v52 = vsub.f32 %v502_v28, %v1589_v3  ;;  %v5239_v14 = vunpack.c.h.bf16 %v3550_v16 }
 0x12c   : > { %5236 = vst [vmem:[#allocation20_spill] sm:$0xff] %v4520_v12  ;;  %v4527_v61 = vsub.f32 %v503_v2, %v1590_v9  ;;  %v2047_v36 = vunpack.c.h.b16 %v5240_v56  ;;  %v4534_v49 = vpack.c.bf16 %v4522_v4, %v4520_v12  ;;  %v2092_v26 = vpack.c.b16 %v2066_v63, %v2066_v63  ;;  %v5242_v9 = vld [vmem:[#allocation18_spill] sm:$0xff]  ;;  %v5246_v63 = vld [vmem:[#allocation23_spill] sm:$0xff] }
 0x12d   : > { %5237 = vst [vmem:[#allocation22_spill] sm:$0xff] %v4525_v52  ;;  %vm702_vm3 = vcmp.eq.f32.partialorder %v5239_v14, 0.0  ;;  %v2602_v8 = vcvt.f32.s32 %v881_v17  ;;  %2567 = vmatmul.msk.bf16.vlgmr.msrb.gmra.mxu1 %vm4375_vm1, %v4020_v43  ;;  %v2049_v20 = vunpack.c.h.b16 %v5242_v9  ;;  %2580 = vmatmul.msk.bf16.vlgmr.msrb.gmra.mxu0 %vm5243_vm5, %v4027_v45  ;;  %v1879_v32 = vunpack.c.l.b16 %v4347_v10 }
 0x12e   : > { %v1217_v27 = vld [vmem:[#allocation2 + $0x388] sm:$0xff]  ;;  %5238 = vst [vmem:[#allocation79_spill] sm:$0xff] %v4527_v61  ;;  %2208 = vmatpush.bf16.msra.mxu0 %v1795_v47  ;;  %v2467_v7 = vsel %vm702_vm3, 1.0, %v5065_v15  ;;  %v4542_v16 = vpack.c.bf16 %v4527_v61, %v4525_v52  ;;  %v1705_v15 = vunpack.c.h.bf16 %v3763_v59  ;;  %v1864_v2 = vunpack.c.h.b16 %v4534_v49  ;;  %vm5316_vm3 = vmmov %vm5210_vm4 }
 0x12f   : > { %1519 = vmatpush.msrb.mxu3 %v1217_v27  ;;  %852 = vst.msk [vmem:[#allocation2 + $0x328] sm:$0xff] %vm5241_vm6, %v2467_v7  ;;  %997 = vperm.xlu2 %2665, %v2602_v8   ;;  %v2119_v48 = vsel %vm1934_vm2, %v2092_v26, 0  ;;  %v1707_v28 = vunpack.c.h.bf16 %v3767_v31  ;;  %v2062_v3 = vunpack.c.l.b16 %v4334_v6  ;;  %v2083_v29 = vpack.c.b16 %v2049_v20, %v2047_v36  ;;  %v5245_v27 = vld [vmem:[#allocation28_spill] sm:$0xff]  ;;  %v5249_v52 = vld [vmem:[#allocation29_spill] sm:$0xff] }
 0x130   : > { %v1211_v40 = vld [vmem:[#allocation2 + $0x358] sm:$0xff]  ;;  %v1866_v13 = vunpack.c.h.b16 %v4542_v16  ;;  %2140 = vmatpush.bf16.msra.mxu1 %v2119_v48  ;;  %v1905_v33 = vpack.c.b16 %v1879_v32, %v1879_v32  ;;  %v1755_v44 = vsub.f32 %v5244_v46, %v1705_v15  ;;  %v2064_v17 = vunpack.c.l.b16 %v4336_v0 }
 0x131   : > { %1520 = vmatpush.msrb.mxu3 %v1211_v40  ;;  %v1757_v47 = vsub.f32 %v5245_v27, %v1707_v28  ;;  %v2043_v14 = vunpack.c.h.b16 %v5246_v63  ;;  %v5247_v40 = vld [vmem:[#allocation24_spill] sm:$0xff]  ;;  %v1875_v7 = vunpack.c.l.b16 %v4398_v60  ;;  %v1877_v6 = vunpack.c.l.b16 %v4407_v21 }
 0x132   : > { %v2045_v8 = vunpack.c.h.b16 %v5247_v40  ;;  %v1898_v26 = vpack.c.b16 %v1866_v13, %v1864_v2  ;;  %v1936_v22 = vsel %vm1934_vm2, %v1905_v33, 0  ;;  %v2090_v36 = vpack.c.b16 %v2064_v17, %v2062_v3  ;;  %v5248_v13 = vld [vmem:[#allocation32_spill] sm:$0xff] }
 0x133   : > { %v1793_v48 = vpack.c.bf16 %v1757_v47, %v1755_v44  ;;  %v1701_v20 = vunpack.c.h.bf16 %v3841_v38  ;;  %v1703_v15 = vunpack.c.h.bf16 %v3853_v41  ;;  %v2058_v0 = vunpack.c.l.b16 %v4392_v5  ;;  %v5250_v44 = vld [vmem:[#allocation30_spill] sm:$0xff] }
 0x134   : > { %1987 = vmatpush.bf16.msrb.mxu2 %v1898_v26  ;;  %v2081_v32 = vpack.c.b16 %v2045_v8, %v2043_v14  ;;  %v2060_v28 = vunpack.c.l.b16 %v4400_v50  ;;  %v1903_v2 = vpack.c.b16 %v1877_v6, %v1875_v7  ;;  %v2039_v33 = vunpack.c.h.b16 %v5249_v52  ;;  %2141 = vmatpush.bf16.msra.mxu1 %v2090_v36  ;;  %v5251_v47 = vld [vmem:[#allocation34_spill] sm:$0xff] }
 0x135   : > { %2209 = vmatpush.bf16.msra.mxu0 %v1793_v48  ;;  %v1751_v27 = vsub.f32 %v5248_v13, %v1701_v20  ;;  %v2041_v3 = vunpack.c.h.b16 %v5250_v44  ;;  %v1753_v17 = vsub.f32 %v5251_v47, %v1703_v15  ;;  %v1871_v8 = vunpack.c.l.b16 %v4441_v58  ;;  %v5253_v36 = vld [vmem:[#allocation38_spill] sm:$0xff]  ;;  %v5254_v15 = vld [vmem:[#allocation35_spill] sm:$0xff]  ;;  %v5256_v13 = vld [vmem:[#allocation36_spill] sm:$0xff] }
 0x136   : > { %v1205_v46 = vld [vmem:[#allocation2 + $0x328] sm:$0xff]  ;;  %v2088_v14 = vpack.c.b16 %v2060_v28, %v2058_v0  ;;  %v1697_v5 = vunpack.c.h.bf16 %v3895_v25  ;;  %v1873_v50 = vunpack.c.l.b16 %v4453_v30  ;;  %v2054_v26 = vunpack.c.l.b16 %v4447_v42 }
 0x137   : > { %1521 = vmatpush.msrb.mxu3 %v1205_v46  ;;  %2572 = vmatmul.msk.bf16.vlgmr.msrb.gmra.mxu2 %vm5210_vm4, %v4027_v45  ;;  %v2056_v7 = vunpack.c.l.b16 %v4449_v55  ;;  %v1791_v6 = vpack.c.bf16 %v1753_v17, %v1751_v27  ;;  %v2079_v48 = vpack.c.b16 %v2041_v3, %v2039_v33  ;;  %v2035_v0 = vunpack.c.h.b16 %v5254_v15 }
 0x138   : > { %2150 = vmatpush.bf16.msra.mxu2 %v2083_v29  ;;  %2563 = vmatmul.msk.f32.vlgmr.msrb.gmra.mxu3 %vm5252_vm7, %v3958_v51  ;;  %v1699_v29 = vunpack.c.h.bf16 %v3915_v19  ;;  %v1747_v20 = vsub.f32 %v5253_v36, %v1697_v5  ;;  %v5255_v51 = vld [vmem:[#allocation40_spill] sm:$0xff]  ;;  %v2037_v47 = vunpack.c.h.b16 %v5256_v13  ;;  %v1867_v12 = vunpack.c.l.b16 %v4491_v34 }
 0x139   : > { %1957 = vmatpush.bf16.msra.mxu3 %v1936_v22  ;;  %v2086_v46 = vpack.c.b16 %v2056_v7, %v2054_v26  ;;  %2210 = vmatpush.bf16.msra.mxu0 %v1791_v6  ;;  %v1869_v42 = vunpack.c.l.b16 %v4499_v35  ;;  %v1693_v22 = vunpack.c.h.bf16 %v4037_v1  ;;  %v1695_v55 = vunpack.c.h.bf16 %v4055_v39  ;;  %v5258_v7 = vld [vmem:[#allocation41_spill] sm:$0xff]  ;;  %v5259_v6 = vld [vmem:[#allocation42_spill] sm:$0xff] }
 0x13a   : > { %v1749_v28 = vsub.f32 %v5255_v51, %v1699_v29  ;;  %2142 = vmatpush.bf16.msra.mxu1 %v2088_v14  ;;  %v2050_v27 = vunpack.c.l.b16 %v4485_v23  ;;  %v1901_v33 = vpack.c.b16 %v1873_v50, %v1871_v8  ;;  %v2052_v17 = vunpack.c.l.b16 %v4493_v37  ;;  %v5257_v29 = vld [vmem:[#allocation45_spill] sm:$0xff] }
 0x13b   : > { %v1743_v5 = vsub.f32 %v4010_v62, %v1693_v22  ;;  %v1745_v26 = vsub.f32 %v5257_v29, %v1695_v55  ;;  %v2031_v14 = vunpack.c.h.b16 %v5258_v7  ;;  %v2033_v36 = vunpack.c.h.b16 %v5259_v6  ;;  %v5264_v22 = vld [vmem:[#allocation47_spill] sm:$0xff] }
 0x13c   : > { %2151 = vmatpush.bf16.msra.mxu2 %v2081_v32  ;;  %v1789_v3 = vpack.c.bf16 %v1749_v28, %v1747_v20  ;;  %v2077_v32 = vpack.c.b16 %v2037_v47, %v2035_v0  ;;  %v1899_v51 = vpack.c.b16 %v1869_v42, %v1867_v12  ;;  %v1708_v61 = vunpack.c.l.bf16 %v3677_v53  ;;  %v5261_v20 = vld [vmem:[#allocation19_spill] sm:$0xff]  ;;  %v5262_v12 = vld [vmem:[#allocation21_spill] sm:$0xff]  ;;  %v5263_v47 = vld [vmem:[#allocation46_spill] sm:$0xff] }
 0x13d   : > { %1958 = vmatpush.bf16.msra.mxu3 %v1903_v2  ;;  %v1710_v23 = vunpack.c.l.bf16 %v3687_v24  ;;  %v1863_v8 = vunpack.c.l.b16 %v4534_v49  ;;  %v1787_v37 = vpack.c.bf16 %v1745_v26, %v1743_v5  ;;  %v2084_v2 = vpack.c.b16 %v2052_v17, %v2050_v27  ;;  %v5266_v17 = vld [vmem:[#allocation51_spill] sm:$0xff]  ;;  %v5267_v26 = vld [vmem:[#allocation25_spill] sm:$0xff] }
 0x13e   : > { %2211 = vmatpush.bf16.msra.mxu0 %v1789_v3  ;;  %2143 = vmatpush.bf16.msra.mxu1 %v2086_v46  ;;  %v1865_v62 = vunpack.c.l.b16 %v4542_v16  ;;  %v2046_v50 = vunpack.c.l.b16 %v5240_v56  ;;  %v2048_v53 = vunpack.c.l.b16 %v5242_v9  ;;  %v1689_v24 = vunpack.c.h.bf16 %v4150_v57 }
 0x13f   : > { %v1760_v0 = vsub.f32 %v5262_v12, %v1710_v23  ;;  %v2075_v28 = vpack.c.b16 %v2033_v36, %v2031_v14  ;;  %v1691_v46 = vunpack.c.h.bf16 %v4164_v11  ;;  %v2027_v42 = vunpack.c.h.b16 %v5263_v47  ;;  %v5268_v36 = vld [vmem:[#allocation58_spill] sm:$0xff]  ;;  %v5274_v12 = vld [vmem:[#allocation57_spill] sm:$0xff] }
 0x140   : > { %2152 = vmatpush.bf16.msra.mxu2 %v2079_v48  ;;  %2564 = vmatmul.msk.f32.gmra.mxu3 %vm5260_vm8, %v4000_v54  ;;  %v1758_v48 = vsub.f32 %v5261_v20, %v1708_v61  ;;  %v2029_v55 = vunpack.c.h.b16 %v5264_v22  ;;  %v1897_v27 = vpack.c.b16 %v1865_v62, %v1863_v8  ;;  %v5265_v54 = vld [vmem:[#allocation49_spill] sm:$0xff]  ;;  %v1704_v61 = vunpack.c.l.bf16 %v3763_v59  ;;  %v5271_v20 = vld [vmem:[#allocation52_spill] sm:$0xff] }
 0x141   : > { %1959 = vmatpush.bf16.msra.mxu3 %v1901_v33  ;;  %v1739_v3 = vsub.f32 %v5265_v54, %v1689_v24  ;;  %v2082_v9 = vpack.c.b16 %v2048_v53, %v2046_v50  ;;  %v1741_v5 = vsub.f32 %v5266_v17, %v1691_v46  ;;  %v1706_v33 = vunpack.c.l.bf16 %v3767_v31  ;;  %v5269_v8 = vld [vmem:[#allocation61_spill] sm:$0xff]  ;;  %v5273_v31 = vld [vmem:[#allocation55_spill] sm:$0xff] }
 0x142   : > { %v1794_v56 = vpack.c.bf16 %v1760_v0, %v1758_v48  ;;  %2212 = vmatpush.bf16.msra.mxu0 %v1787_v37  ;;  %2144 = vmatpush.bf16.msra.mxu1 %v2084_v2  ;;  %v2042_v29 = vunpack.c.l.b16 %v5246_v63  ;;  %v1754_v14 = vsub.f32 %v5267_v26, %v1704_v61  ;;  %v1685_v23 = vunpack.c.h.bf16 %v5268_v36  ;;  %v5270_v2 = vld [vmem:[#allocation27_spill] sm:$0xff]  ;;  %v5277_v61 = vld [vmem:[#allocation66_spill] sm:$0xff] }
 0x143   : > { %v1687_v62 = vunpack.c.h.bf16 %v5269_v8  ;;  %v1785_v59 = vpack.c.bf16 %v1741_v5, %v1739_v3  ;;  %v2073_v37 = vpack.c.b16 %v2029_v55, %v2027_v42  ;;  %v1756_v50 = vsub.f32 %v5270_v2, %v1706_v33  ;;  %v5278_v5 = vld [vmem:[#allocation33_spill] sm:$0xff]  ;;  %v5279_v26 = vld [vmem:[#allocation67_spill] sm:$0xff] }
 0x144   : > { %2153 = vmatpush.bf16.msra.mxu2 %v2077_v32  ;;  %v2044_v32 = vunpack.c.l.b16 %v5247_v40  ;;  %v2023_v48 = vunpack.c.h.b16 %v5271_v20  ;;  %v1735_v63 = vsub.f32 %v5273_v31, %v1685_v23  ;;  %v5275_v40 = vld [vmem:[#allocation53_spill] sm:$0xff]  ;;  %v1700_v24 = vunpack.c.l.bf16 %v3841_v38  ;;  %v5280_v23 = vld [vmem:[#allocation59_spill] sm:$0xff] }
 0x145   : > { %1960 = vmatpush.bf16.msra.mxu3 %v1899_v51  ;;  %2576 = vmatmul.msk.bf16.vlgmr.msra.gmra.mxu1 %vm5272_vm11, %v4027_v45  ;;  %v1737_v0 = vsub.f32 %v5274_v12, %v1687_v62  ;;  %v2025_v53 = vunpack.c.h.b16 %v5275_v40  ;;  %v1792_v51 = vpack.c.bf16 %v1756_v50, %v1754_v14  ;;  %v1702_v42 = vunpack.c.l.bf16 %v3853_v41  ;;  %v5283_v50 = vld [vmem:[#allocation65_spill] sm:$0xff] }
 0x146   : > { %2182 = vmatpush.bf16.msrb.mxu1 %v1794_v56  ;;  %2213 = vmatpush.bf16.msra.mxu0 %v1785_v59  ;;  %v2080_v46 = vpack.c.b16 %v2044_v32, %v2042_v29  ;;  %v2038_v55 = vunpack.c.l.b16 %v5249_v52  ;;  %v2040_v3 = vunpack.c.l.b16 %v5250_v44  ;;  %v1681_v17 = vunpack.c.h.bf16 %v5277_v61  ;;  %v5281_v29 = vld [vmem:[#allocation60_spill] sm:$0xff]  ;;  %v5282_v52 = vld [vmem:[#allocation63_spill] sm:$0xff] }
 0x147   : > { %v1783_v56 = vpack.c.bf16 %v1737_v0, %v1735_v63  ;;  %v1752_v33 = vsub.f32 %v5278_v5, %v1702_v42  ;;  %v1683_v38 = vunpack.c.h.bf16 %v5279_v26  ;;  %v2019_v14 = vunpack.c.h.b16 %v5280_v23  ;;  %v5289_v5 = vld [vmem:[#allocation44_spill] sm:$0xff] }
 0x148   : > { %2154 = vmatpush.bf16.msra.mxu2 %v2075_v28  ;;  %v5276_v28 = vld [vmem:[#allocation31_spill] sm:$0xff]  ;;  %v2021_v32 = vunpack.c.h.b16 %v5281_v29  ;;  %v2071_v41 = vpack.c.b16 %v2025_v53, %v2023_v48  ;;  %v1731_v62 = vsub.f32 %v5282_v52, %v1681_v17  ;;  %v1696_v59 = vunpack.c.l.bf16 %v3895_v25 }
 0x149   : > { %v1750_v54 = vsub.f32 %v5276_v28, %v1700_v24  ;;  %1961 = vmatpush.bf16.msra.mxu3 %v1897_v27  ;;  %v1698_v44 = vunpack.c.l.bf16 %v3915_v19  ;;  %v2078_v2 = vpack.c.b16 %v2040_v3, %v2038_v55  ;;  %v1733_v31 = vsub.f32 %v5283_v50, %v1683_v38  ;;  %v5286_v48 = vld [vmem:[#allocation39_spill] sm:$0xff]  ;;  %v5287_v19 = vld [vmem:[#allocation69_spill] sm:$0xff] }
 0x14a   : > { %2183 = vmatpush.bf16.msrb.mxu1 %v1792_v51  ;;  %2214 = vmatpush.bf16.msra.mxu0 %v1783_v56  ;;  %v1729_v63 = vunpack.c.h.bf16 %v4347_v10  ;;  %v2069_v12 = vpack.c.b16 %v2021_v32, %v2019_v14  ;;  %v2034_v53 = vunpack.c.l.b16 %v5254_v15  ;;  %v1692_v51 = vunpack.c.l.bf16 %v4037_v1  ;;  %v5288_v15 = vld [vmem:[#allocation43_spill] sm:$0xff] }
 0x14b   : > { %v1790_v27 = vpack.c.bf16 %v1752_v33, %v1750_v54  ;;  %v1748_v0 = vsub.f32 %v5286_v48, %v1698_v44  ;;  %v1781_v25 = vpack.c.bf16 %v1733_v31, %v1731_v62  ;;  %v1694_v42 = vunpack.c.l.bf16 %v4055_v39  ;;  %v5290_v1 = vld [vmem:[#allocation71_spill] sm:$0xff]  ;;  %v5291_v39 = vld [vmem:[#allocation73_spill] sm:$0xff] }
 0x14c   : > { %2155 = vmatpush.bf16.msra.mxu2 %v2073_v37  ;;  %2568 = vmatmul.msk.bf16.vlgmr.msra.gmra.mxu3 %vm5284_vm13, %v4027_v45  ;;  %v1779_v24 = vsub.f32 %v5287_v19, %v1729_v63  ;;  %v2036_v56 = vunpack.c.l.b16 %v5256_v13  ;;  %v1725_v28 = vunpack.c.h.bf16 %v4398_v60  ;;  %v1727_v54 = vunpack.c.h.bf16 %v4407_v21  ;;  %v5294_v63 = vld [vmem:[#allocation75_spill] sm:$0xff] }
 0x14d   : > { %2124 = vmatpush.bf16.msrb.mxu3 %v2082_v9  ;;  %v5285_v9 = vld [vmem:[#allocation37_spill] sm:$0xff]  ;;  %v1742_v17 = vsub.f32 %v5288_v15, %v1692_v51  ;;  %v1744_v33 = vsub.f32 %v5289_v5, %v1694_v42  ;;  %v2030_v38 = vunpack.c.l.b16 %v5258_v7  ;;  %v2032_v32 = vunpack.c.l.b16 %v5259_v6  ;;  %v5296_v51 = vld [vmem:[#allocation54_spill] sm:$0xff] }
 0x14e   : > { %v1746_v37 = vsub.f32 %v5285_v9, %v1696_v59  ;;  %2184 = vmatpush.bf16.msrb.mxu1 %v1790_v27  ;;  %2215 = vmatpush.bf16.msra.mxu0 %v1781_v25  ;;  %v1805_v3 = vpack.c.bf16 %v1779_v24, %v1779_v24  ;;  %v1775_v14 = vsub.f32 %v5290_v1, %v1725_v28  ;;  %v1688_v13 = vunpack.c.l.bf16 %v4150_v57  ;;  %v5292_v27 = vld [vmem:[#allocation48_spill] sm:$0xff]  ;;  %v5293_v57 = vld [vmem:[#allocation50_spill] sm:$0xff] }
 0x14f   : > { %v1786_v52 = vpack.c.bf16 %v1744_v33, %v1742_v17  ;;  %v1690_v62 = vunpack.c.l.bf16 %v4164_v11  ;;  %v1721_v59 = vunpack.c.h.bf16 %v4441_v58  ;;  %v2076_v44 = vpack.c.b16 %v2036_v56, %v2034_v53  ;;  %v5299_v28 = vld [vmem:[#allocation78_spill] sm:$0xff] }
 0x150   : > { %2156 = vmatpush.bf16.msra.mxu2 %v2071_v41  ;;  %v1788_v55 = vpack.c.bf16 %v1748_v0, %v1746_v37  ;;  %v2180_v41 = vsel %vm1934_vm2, %v1805_v3, 0  ;;  %v1738_v50 = vsub.f32 %v5292_v27, %v1688_v13  ;;  %v1723_v31 = vunpack.c.h.bf16 %v4453_v30  ;;  %v5300_v1 = vld [vmem:[#allocation62_spill] sm:$0xff] }
 0x151   : > { %2125 = vmatpush.bf16.msrb.mxu3 %v2080_v46  ;;  %v1777_v46 = vsub.f32 %v5291_v39, %v1727_v54  ;;  %2587 = vmatmul.msk.bf16.vlgmr.msra.gmra.mxu0 %vm4375_vm1, %v4020_v43  ;;  %v1740_v6 = vsub.f32 %v5293_v57, %v1690_v62  ;;  %v1771_v9 = vsub.f32 %v5294_v63, %v1721_v59  ;;  %v2026_v11 = vunpack.c.l.b16 %v5263_v47  ;;  %v5301_v39 = vld [vmem:[#allocation64_spill] sm:$0xff]  ;;  %v5304_v57 = vld [vmem:[#allocation70_spill] sm:$0xff] }
 0x152   : > { %2185 = vmatpush.bf16.msrb.mxu1 %v1788_v55  ;;  %v1684_v48 = vunpack.c.l.bf16 %v5268_v36  ;;  %v1686_v0 = vunpack.c.l.bf16 %v5269_v8  ;;  %v1717_v53 = vunpack.c.h.bf16 %v4491_v34  ;;  %v2074_v25 = vpack.c.b16 %v2032_v32, %v2030_v38  ;;  %v5297_v36 = vld [vmem:[#allocation56_spill] sm:$0xff]  ;;  %v5298_v8 = vld [vmem:[#allocation13_spill] sm:$0xff] }
 0x153   : > { %v1803_v7 = vpack.c.bf16 %v1777_v46, %v1775_v14  ;;  %v1784_v19 = vpack.c.bf16 %v1740_v6, %v1738_v50  ;;  %v1719_v24 = vunpack.c.h.bf16 %v4499_v35  ;;  %v2022_v47 = vunpack.c.l.b16 %v5271_v20 }
 0x154   : > { %2157 = vmatpush.bf16.msra.mxu2 %v2069_v12  ;;  %v5295_v12 = vld [vmem:[#allocation76_spill] sm:$0xff]  ;;  %v1734_v42 = vsub.f32 %v5296_v51, %v1684_v48  ;;  %v1736_v55 = vsub.f32 %v5297_v36, %v1686_v0  ;;  %v1767_v56 = vsub.f32 %v5298_v8, %v1717_v53  ;;  %v2024_v3 = vunpack.c.l.b16 %v5275_v40  ;;  %v5309_v53 = vld [vmem:[#allocation15_spill] sm:$0xff] }
 0x155   : > { %2126 = vmatpush.bf16.msrb.mxu3 %v2078_v2  ;;  %v2028_v2 = vunpack.c.l.b16 %v5264_v22  ;;  %v1773_v37 = vsub.f32 %v5295_v12, %v1723_v31  ;;  %v1769_v54 = vsub.f32 %v5299_v28, %v1719_v24  ;;  %v1680_v15 = vunpack.c.l.bf16 %v5277_v61  ;;  %v5302_v61 = vld [vmem:[#allocation79_spill] sm:$0xff] }
 0x156   : > { %2186 = vmatpush.bf16.msrb.mxu1 %v1786_v52  ;;  %v1682_v17 = vunpack.c.l.bf16 %v5279_v26  ;;  %v1713_v20 = vunpack.c.h.bf16 %v4534_v49  ;;  %v1715_v33 = vunpack.c.h.bf16 %v4542_v16  ;;  %v1782_v38 = vpack.c.bf16 %v1736_v55, %v1734_v42  ;;  %v5312_v42 = vld [vmem:[#allocation22_spill] sm:$0xff] }
 0x157   : > { %2579 = vmatmul.msk.bf16.vlgmr.msra.gmra.mxu2 %vm4375_vm1, %v4020_v43  ;;  %v1801_v22 = vpack.c.bf16 %v1773_v37, %v1771_v9  ;;  %v2072_v5 = vpack.c.b16 %v2028_v2, %v2026_v11  ;;  %v1730_v14 = vsub.f32 %v5300_v1, %v1680_v15  ;;  %v2018_v32 = vunpack.c.l.b16 %v5280_v23  ;;  %v5303_v23 = vld [vmem:[#allocation68_spill] sm:$0xff]  ;;  %v5306_v9 = vld [vmem:[#allocation74_spill] sm:$0xff] }
 0x158   : > { %2224 = vmatpush.bf16.msrb.mxu2 %v2180_v41  ;;  %v1732_v46 = vsub.f32 %v5301_v39, %v1682_v17  ;;  %v1799_v13 = vpack.c.bf16 %v1769_v54, %v1767_v56  ;;  %v1763_v40 = vsub.f32 %v4522_v4, %v1713_v20  ;;  %v1765_v41 = vsub.f32 %v5302_v61, %v1715_v33  ;;  %v995_v4 = vpop.permute.xlu1 %994  ;;  %v5308_v37 = vld [vmem:[#allocation12_spill] sm:$0xff] }
 0x159   : > { %2127 = vmatpush.bf16.msrb.mxu3 %v2076_v44  ;;  %v1728_v26 = vunpack.c.l.bf16 %v4347_v10  ;;  %v2070_v52 = vpack.c.b16 %v2024_v3, %v2022_v47  ;;  %v1724_v62 = vunpack.c.l.bf16 %v4398_v60  ;;  %v1726_v59 = vunpack.c.l.bf16 %v4407_v21  ;;  %v5305_v10 = vld [vmem:[#allocation72_spill] sm:$0xff]  ;;  %v5310_v47 = vld [vmem:[#allocation77_spill] sm:$0xff] }
 0x15a   : > { %2187 = vmatpush.bf16.msrb.mxu1 %v1784_v19  ;;  %v1720_v44 = vunpack.c.l.bf16 %v4441_v58  ;;  %v2020_v27 = vunpack.c.l.b16 %v5281_v29  ;;  %v1722_v31 = vunpack.c.l.bf16 %v4453_v30  ;;  %v1716_v60 = vunpack.c.l.bf16 %v4491_v34  ;;  %v5307_v58 = vld [vmem:[#allocation11_spill] sm:$0xff] }
 0x15b   : > { %v1778_v50 = vsub.f32 %v5303_v23, %v1728_v26  ;;  %v1774_v6 = vsub.f32 %v5304_v57, %v1724_v62  ;;  %v1776_v63 = vsub.f32 %v5305_v10, %v1726_v59  ;;  %v1797_v21 = vpack.c.bf16 %v1765_v41, %v1763_v40  ;;  %v5317_v57 = vld [vmem:[#allocation14_spill] sm:$0xff] }
 0x15c   : > { %2225 = vmatpush.bf16.msrb.mxu2 %v1803_v7  ;;  %v1780_v7 = vpack.c.bf16 %v1732_v46, %v1730_v14  ;;  %v1770_v11 = vsub.f32 %v5306_v9, %v1720_v44  ;;  %v1772_v2 = vsub.f32 %v5307_v58, %v1722_v31  ;;  %v1718_v29 = vunpack.c.l.bf16 %v4499_v35  ;;  %v5313_v35 = vld [vmem:[#allocation16_spill] sm:$0xff] }
 0x15d   : > { %2128 = vmatpush.bf16.msrb.mxu3 %v2074_v25  ;;  %v1712_v12 = vunpack.c.l.bf16 %v4534_v49  ;;  %v1802_v30 = vpack.c.bf16 %v1776_v63, %v1774_v6  ;;  %v1766_v48 = vsub.f32 %v5308_v37, %v1716_v60  ;;  %v1714_v0 = vunpack.c.l.bf16 %v4542_v16 }
 0x15e   : > { %2188 = vmatpush.bf16.msrb.mxu1 %v1782_v38  ;;  %v1002_v25 = vsub.s32 %v5309_v53, %v995_v4  ;;  %v1804_v19 = vpack.c.bf16 %v1778_v50, %v1778_v50  ;;  %v1800_v24 = vpack.c.bf16 %v1772_v2, %v1770_v11  ;;  %v1768_v34 = vsub.f32 %v5310_v47, %v1718_v29 }
 0x15f   : > { %v1764_v36 = vsub.f32 %v5312_v42, %v1714_v0  ;;  %v1003_v55 = vsub.s32 %v5313_v35, %v995_v4  ;;  %vm5314_vm0 = vcmp.eq.s32.totalorder %v5309_v53, 0  ;;  %v2068_v8 = vpack.c.b16 %v2020_v27, %v2018_v32 }
 0x160   : > { %2226 = vmatpush.bf16.msrb.mxu2 %v1801_v22  ;;  %v5311_v22 = vld [vmem:[#allocation20_spill] sm:$0xff]  ;;  %v1008_v49 = vsel %vm5314_vm0, 4293918720, %v1002_v25  ;;  %v1798_v56 = vpack.c.bf16 %v1768_v34, %v1766_v48  ;;  %vm2509_vm9 = vcmp.gt.s32.totalorder %v1002_v25, 104  ;;  %vm5315_vm14 = vcmp.eq.s32.totalorder %v5313_v35, 199 }
 0x161   : > { %2129 = vmatpush.bf16.msrb.mxu3 %v2072_v5  ;;  %v1762_v51 = vsub.f32 %v5311_v22, %v1712_v12  ;;  %vm2517_vm15 = vcmp.lt.s32.totalorder %v1008_v49, 97  ;;  %v1015_v28 = vsel %vm5315_vm14, 1048576, %v1003_v55  ;;  %vm2518_vm12 = vcmp.lt.s32.totalorder %v1003_v55, 97  ;;  %v1277_v38 = vpop.f32.mrf.mxu0 }
 0x162   : > { %2189 = vmatpush.bf16.msrb.mxu1 %v1780_v7  ;;  %v2177_v54 = vsel %vm1934_vm2, %v1804_v19, 0  ;;  %vm2510_vm10 = vcmp.gt.s32.totalorder %v1015_v28, 104  ;;  %v1051_v15 = vsel %vm2518_vm12, 97, %v1003_v55  ;;  %v1027_v17 = vsel %vm2509_vm9, 104, %v1002_v25 }
 0x163   : > { %v1796_v16 = vpack.c.bf16 %v1764_v36, %v1762_v51  ;;  %v1029_v3 = vsel %vm2510_vm10, 104, %v1015_v28  ;;  %v1049_v5 = vsel %vm2517_vm15, 97, %v1008_v49  ;;  %vm2511_vm2 = vcmp.gt.s32.totalorder %v1002_v25, 108 }
 0x164   : > { %2227 = vmatpush.bf16.msrb.mxu2 %v1799_v13  ;;  %v1065_v20 = vsub.s32 %v1029_v3, %v1051_v15  ;;  %v1064_v33 = vsub.s32 %v1027_v17, %v1049_v5  ;;  %vm2519_vm6 = vcmp.lt.s32.totalorder %v1008_v49, 93  ;;  %v1300_v39 = vpop.f32.mrf.mxu1  ;;  %v1031_v46 = vsel %vm2511_vm2, 108, %v1002_v25 }
 0x165   : > { %2130 = vmatpush.bf16.msrb.mxu3 %v2070_v52  ;;  %2583 = vmatmul.msk.bf16.vlgmr.msrb.gmra.mxu1 %vm4375_vm1, %v4020_v43  ;;  %vm2512_vm5 = vcmp.gt.s32.totalorder %v1015_v28, 108  ;;  %vm2520_vm7 = vcmp.lt.s32.totalorder %v1003_v55, 93  ;;  %v1053_v13 = vsel %vm2519_vm6, 93, %v1008_v49  ;;  %v1301_v52 = vadd.f32 %v1300_v39, %v1277_v38 }
 0x166   : > { %v1073_v1 = vadd.s32 1, %v1065_v20  ;;  %v1072_v14 = vadd.s32 1, %v1064_v33  ;;  %v1033_v40 = vsel %vm2512_vm5, 108, %v1015_v28  ;;  %v1055_v61 = vsel %vm2520_vm7, 93, %v1003_v55 }
 0x167   : > { %v1067_v18 = vsub.s32 %v1033_v40, %v1055_v61  ;;  %v1066_v26 = vsub.s32 %v1031_v46, %v1053_v13  ;;  %v4734_v6 = vmul.f32 %v5317_v57, %v5317_v57  ;;  %vm5321_vm15 = vcmp.eq.s32.totalorder %v5309_v53, 0 }
 0x168   : > { %2228 = vmatpush.bf16.msrb.mxu2 %v1797_v21  ;;  %v2527_v32 = vcvt.s32.f32 %v1073_v1  ;;  %v2525_v41 = vcvt.s32.f32 %v1072_v14  ;;  %vm1082_vm4 = vcmp.gt.s32.totalorder %v1073_v1, 0  ;;  %vm1080_vm8 = vcmp.gt.s32.totalorder %v1072_v14, 0 }
 0x169   : > { %2131 = vmatpush.bf16.msrb.mxu3 %v2068_v8  ;;  %v1280_v44 = vpop.f32.mrf.mxu0  ;;  %v1075_v23 = vadd.s32 1, %v1067_v18  ;;  %v1074_v31 = vadd.s32 1, %v1066_v26  ;;  %2268 = vrot.lane.b32.xlu2 %v4734_v6, %s2835_s7 }
 0x16a   : > { %v4727_v62 = vsel %vm1082_vm4, %v2527_v32, 0.0  ;;  %v4729_v7 = vsel %vm1080_vm8, %v2525_v41, 0.0  ;;  %vm5324_vm8 = vmmov %vm5315_vm14 }
 0x16b   : > { %2588 = vmatmul.msk.bf16.vlgmr.msrb.gmra.mxu2 %vm5316_vm3, %v4027_v45  ;;  %v1346_v59 = vpop.f32.mrf.mxu3  ;;  %v2236_v10 = vmul.f32 %v4729_v7, %v1301_v52  ;;  %v2531_v9 = vcvt.s32.f32 %v1075_v23  ;;  %v2529_v60 = vcvt.s32.f32 %v1074_v31  ;;  %vm1086_vm13 = vcmp.gt.s32.totalorder %v1075_v23, 0 }
 0x16c   : > { %2575 = vmatmul.msk.bf16.vlgmr.msrb.gmra.mxu3 %vm4375_vm1, %v4020_v43  ;;  %v1323_v43 = vpop.f32.mrf.mxu2  ;;  %vm5318_vm1 = vmmov %vm5316_vm3  ;;  %vm1084_vm0 = vcmp.gt.s32.totalorder %v1074_v31, 0 }
 0x16d   : > { %2198 = vmatpush.bf16.msra.mxu3 %v2177_v54  ;;  %v1347_v27 = vadd.f32 %v1346_v59, %v1323_v43  ;;  %v1303_v4 = vpop.f32.mrf.mxu1  ;;  %vm5319_vm11 = vmmov %vm5318_vm1  ;;  %v2532_v29 = vsel %vm1086_vm13, %v2531_v9, 0.0 }
 0x16e   : > { %v1304_v2 = vadd.f32 %v1303_v4, %v1280_v44  ;;  %vm5320_vm9 = vmmov %vm5318_vm1 }
 0x16f   : > { %v2237_v50 = vmul.f32 %v4727_v62, %v1347_v27  ;;  %vm5322_vm7 = vmmov %vm5318_vm1 }
 0x170   : > { %vm5323_vm4 = vmmov %vm5318_vm1 }
 0x171   : > { %2199 = vmatpush.bf16.msra.mxu3 %v1802_v30  ;;  %v2238_v63 = vsel %vm5318_vm1, %v2237_v50, 0.0  ;;  %v1413_v58 = vpop.f32.mrf.mxu0  ;;  %v2530_v30 = vsel %vm1084_vm0, %v2529_v60, 0.0  ;;  %vm5325_vm13 = vmmov %vm5321_vm15 }
 0x172   : > { %v2239_v11 = vadd.f32 %v2238_v63, %v2236_v10  ;;  %v2242_v25 = vmul.f32 %v2530_v30, %v1304_v2 }
 0x173   : > { %v1349_v12 = vpop.f32.mrf.mxu3 }
 0x174   : > { %v1326_v21 = vpop.f32.mrf.mxu2  ;;  %2240 = vadd.xlane.f32.xlu1 %v2239_v11 }
 0x175   : > { %2200 = vmatpush.bf16.msra.mxu3 %v1800_v24  ;;  %v1350_v37 = vadd.f32 %v1349_v12, %v1326_v21 }
 0x176   : > { %v1369_v48 = vpop.f32.mrf.mxu1 }
 0x177   : > { %v2243_v0 = vmul.f32 %v2532_v29, %v1350_v37 }
 0x179   : > { %2201 = vmatpush.bf16.msra.mxu3 %v1798_v56  ;;  %v2244_v19 = vsel %vm5320_vm9, %v2243_v0, 0.0 }
 0x17a   : > { %v1416_v22 = vpop.f32.mrf.mxu0 }
 0x17c   : > { %v1435_v24 = vpop.f32.mrf.mxu2 }
 0x17d   : > { %2202 = vmatpush.bf16.msra.mxu3 %v1796_v16  ;;  %v1436_v47 = vadd.f32 %v1435_v24, %v1413_v58  ;;  %v1391_v34 = vpop.f32.mrf.mxu3 }
 0x17e   : > { %v1392_v51 = vadd.f32 %v1391_v34, %v1369_v48 }
 0x180   : > { %2584 = vmatmul.msk.bf16.vlgmr.msra.gmra.mxu3 %vm5319_vm11, %v4027_v45  ;;  %v2245_v45 = vadd.f32 %v2244_v19, %v2242_v25  ;;  %v1372_v42 = vpop.f32.mrf.mxu1 }
 0x182   : > { %2246 = vadd.xlane.f32.xlu0 %v2245_v45 }
 0x186   : > { %v1438_v54 = vpop.f32.mrf.mxu2 }
 0x188   : > { %v1394_v20 = vpop.f32.mrf.mxu3  ;;  %v1479_v33 = vpop.f32.mrf.mxu1 }
 0x189   : > { %v998_v36 = vpop.permute.xlu2 %997 }
 0x18a   : > { %v1004_v55 = vsub.s32 %v5309_v53, %v998_v36  ;;  %v1005_v49 = vsub.s32 %v5313_v35, %v998_v36 }
 0x18c   : > { %v1010_v8 = vsel %vm5321_vm15, 4293918720, %v1004_v55  ;;  %v1017_v56 = vsel %vm5315_vm14, 1048576, %v1005_v49  ;;  %vm2513_vm12 = vcmp.gt.s32.totalorder %v1004_v55, 104  ;;  %vm2522_vm10 = vcmp.lt.s32.totalorder %v1005_v49, 97 }
 0x18d   : > { %v1035_v16 = vsel %vm2513_vm12, 104, %v1004_v55  ;;  %vm2514_vm3 = vcmp.gt.s32.totalorder %v1017_v56, 104  ;;  %vm2521_vm2 = vcmp.lt.s32.totalorder %v1010_v8, 97  ;;  %v1059_v28 = vsel %vm2522_vm10, 97, %v1005_v49  ;;  %vm5326_vm12 = vmmov %vm5323_vm4 }
 0x18e   : > { %v1037_v3 = vsel %vm2514_vm3, 104, %v1017_v56  ;;  %v1057_v15 = vsel %vm2521_vm2, 97, %v1010_v8  ;;  %vm2303_vm2 = vcmask 7168  }
 0x18f   : > { %v1069_v17 = vsub.s32 %v1037_v3, %v1059_v28  ;;  %v1068_v5 = vsub.s32 %v1035_v16, %v1057_v15  ;;  %v1976_v46 = vpop.f32.mrf.mxu0 }
 0x190   : > { %v1457_v41 = vpop.f32.mrf.mxu3  ;;  %v1482_v43 = vpop.f32.mrf.mxu1 }
 0x191   : > { %v1077_v38 = vadd.s32 1, %v1069_v17  ;;  %v1076_v1 = vadd.s32 1, %v1068_v5  ;;  %v1480_v57 = vadd.f32 %v1479_v33, %v1457_v41 }
 0x193   : > { %vm1090_vm6 = vcmp.gt.s32.totalorder %v1077_v38, 0  ;;  %v2535_v14 = vcvt.s32.f32 %v1077_v38  ;;  %vm1088_vm5 = vcmp.gt.s32.totalorder %v1076_v1, 0  ;;  %v2533_v39 = vcvt.s32.f32 %v1076_v1 }
 0x194   : > { %v2254_v60 = vmul.f32 %v4729_v7, %v1480_v57 }
 0x195   : > { %v2536_v32 = vsel %vm1090_vm6, %v2535_v14, 0.0  ;;  %v2534_v13 = vsel %vm1088_vm5, %v2533_v39, 0.0 }
 0x196   : > { %v2249_v40 = vmul.f32 %v2536_v32, %v1436_v47  ;;  %v2248_v61 = vmul.f32 %v2534_v13, %v1392_v51 }
 0x197   : > { %v1978_v59 = vpop.f32.mrf.mxu0 }
 0x198   : > { %v2250_v18 = vsel %vm5322_vm7, %v2249_v40, 0.0  ;;  %v1460_v44 = vpop.f32.mrf.mxu3 }
 0x199   : > { %v4749_v52 = vadd.f32 %v2250_v18, %v2248_v61 }
 0x19b   : > { %v1501_v26 = vpop.f32.mrf.mxu2 }
 0x1a3   : > { %v1504_v27 = vpop.f32.mrf.mxu2 }
 0x1aa   : > { %v1950_v23 = vpop.f32.mrf.mxu1  ;;  %v2172_v50 = vpop.f32.mrf.mxu0 }
 0x1b2   : > { %v1952_v31 = vpop.f32.mrf.mxu1  ;;  %v2174_v4 = vpop.f32.mrf.mxu0 }
 0x1ba   : > { %v1989_v63 = vpop.f32.mrf.mxu2 }
 0x1bb   : > { %v1523_v10 = vpop.f32.mrf.mxu3  ;;  %v1990_v0 = vadd.f32 %v1989_v63, %v1976_v46 }
 0x1bc   : > { %v1524_v9 = vadd.f32 %v1523_v10, %v1501_v26 }
 0x1be   : > { %v2255_v11 = vmul.f32 %v4727_v62, %v1524_v9  ;;  %v1001_v62 = vpop.permute.xlu1 %1000 }
 0x1bf   : > { %v1007_v7 = vsub.s32 %v5313_v35, %v1001_v62  ;;  %v1006_v42 = vsub.s32 %v5309_v53, %v1001_v62 }
 0x1c0   : > { %v2256_v21 = vsel %vm5323_vm4, %v2255_v11, 0.0 }
 0x1c1   : > { %v2257_v58 = vadd.f32 %v2256_v21, %v2254_v60  ;;  %v1019_v51 = vsel %vm5324_vm8, 1048576, %v1007_v7  ;;  %vm2524_vm11 = vcmp.lt.s32.totalorder %v1007_v7, 0  ;;  %v1012_v49 = vsel %vm5325_vm13, 4293918720, %v1006_v42 }
 0x1c2   : > { %v1991_v29 = vpop.f32.mrf.mxu2  ;;  %v2146_v12 = vpop.f32.mrf.mxu1  ;;  %vm2516_vm1 = vcmp.gt.s32.totalorder %v1019_v51, 0  ;;  %v1063_v16 = vsel %vm2524_vm11, 0, %v1007_v7  ;;  %vm2515_vm0 = vcmp.gt.s32.totalorder %v1006_v42, 0  ;;  %vm2523_vm9 = vcmp.lt.s32.totalorder %v1012_v49, 0 }
 0x1c3   : > { %v1526_v2 = vpop.f32.mrf.mxu3  ;;  %2258 = vadd.xlane.f32.xlu0 %v2257_v58  ;;  %v1041_v56 = vsel %vm2516_vm1, 0, %v1019_v51  ;;  %v1039_v3 = vsel %vm2515_vm0, 0, %v1006_v42  ;;  %v1061_v15 = vsel %vm2523_vm9, 0, %v1012_v49  ;;  %v2269_v27 = vpop.permute.xlu2 %2268  ;;  %v5327_v58 = vld [vmem:[#allocation10_spill] sm:$0xff] }
 0x1c4   : > { %v1071_v28 = vsub.s32 %v1041_v56, %v1063_v16  ;;  %v1070_v5 = vsub.s32 %v1039_v3, %v1061_v15 }
 0x1c6   : > { %v1079_v35 = vadd.s32 1, %v1071_v28  ;;  %v1078_v1 = vadd.s32 1, %v1070_v5 }
 0x1c8   : > { %v2539_v38 = vcvt.s32.f32 %v1079_v35  ;;  %vm1094_vm15 = vcmp.gt.s32.totalorder %v1079_v35, 0  ;;  %v2537_v32 = vcvt.s32.f32 %v1078_v1  ;;  %vm1092_vm14 = vcmp.gt.s32.totalorder %v1078_v1, 0 }
 0x1ca   : > { %v2148_v30 = vpop.f32.mrf.mxu1  ;;  %v2540_v39 = vsel %vm1094_vm15, %v2539_v38, 0.0  ;;  %v2538_v43 = vsel %vm1092_vm14, %v2537_v32, 0.0 }
 0x1ce   : > { %v2217_v48 = vpop.f32.mrf.mxu0 }
 0x1cf   : > { %v1963_v37 = vpop.f32.mrf.mxu3 }
 0x1d0   : > { %v1964_v33 = vadd.f32 %v1963_v37, %v1950_v23  ;;  %v2271_v23 = vadd.f32 %v2269_v27, %v4734_v6 }
 0x1d2   : > { %2668 = vrsqrt.f32 %v2271_v23  ;;  %vm2279_vm10 = vcmp.eq.f32.partialorder %v2271_v23, inf  ;;  %v2282_v11 = vand.u32 2147483648, %v2271_v23  ;;  %vm2281_vm3 = vcmp.eq.f32.partialorder %v2271_v23, 0.0 }
 0x1d6   : > { %v2219_v24 = vpop.f32.mrf.mxu0 }
 0x1d7   : > { %v1965_v25 = vpop.f32.mrf.mxu3 }
 0x1da   : > { %v2159_v19 = vpop.f32.mrf.mxu2 }
 0x1db   : > { %v2160_v45 = vadd.f32 %v2159_v19, %v1990_v0 }
 0x1dd   : > { %v2173_v47 = vadd.f32 %v2172_v50, %v2160_v45  ;;  %v2669_v50 = vpop.eup %2668 }
 0x1de   : > { %v2273_v31 = vmul.f32 %v2669_v50, %v2271_v23 }
 0x1e0   : > { %v2274_v4 = vmul.f32 %v2669_v50, %v2273_v31 }
 0x1e2   : > { %v2161_v34 = vpop.f32.mrf.mxu2  ;;  %v2191_v22 = vpop.f32.mrf.mxu1  ;;  %v2275_v57 = vmul.f32 0.5, %v2274_v4 }
 0x1e4   : > { %v2276_v10 = vsub.f32 1.5, %v2275_v57 }
 0x1e6   : > { %v2277_v63 = vmul.f32 %v2669_v50, %v2276_v10 }
 0x1e8   : > { %v2278_v9 = vmul.f32 %v2277_v63, %v2271_v23 }
 0x1ea   : > { %v2193_v55 = vpop.f32.mrf.mxu1  ;;  %v2280_v60 = vsel %vm2279_vm10, %v2271_v23, %v2278_v9 }
 0x1eb   : > { %v2283_v21 = vsel %vm2281_vm3, %v2282_v11, %v2280_v60 }
 0x1ec   : > { %v2284_v2 = vmul.f32 %v2283_v21, %v5327_v58 }
 0x1ee   : > { %v2230_v36 = vpop.f32.mrf.mxu2 }
 0x1ef   : > { %v2133_v8 = vpop.f32.mrf.mxu3  ;;  %v2231_v20 = vadd.f32 %v2230_v36, %v2217_v48 }
 0x1f0   : > { %v2134_v14 = vadd.f32 %v2133_v8, %v1964_v33 }
 0x1f1   : > { %v2235_v53 = vadd.f32 %v2231_v20, %v2173_v47 }
 0x1f2   : > { %v2147_v13 = vadd.f32 %v2146_v12, %v2134_v14  ;;  %v2241_v12 = vpop.xlane.xlu1 %2240 }
 0x1f3   : > { %v2261_v61 = vmul.f32 %v2540_v39, %v2235_v53 }
 0x1f5   : > { %v2262_v26 = vsel %vm5326_vm12, %v2261_v61, 0.0  ;;  %v2247_v29 = vpop.xlane.xlu0 %2246 }
 0x1f6   : > { %v2232_v54 = vpop.f32.mrf.mxu2 }
 0x1f7   : > { %v2135_v17 = vpop.f32.mrf.mxu3 }
 0x203   : > { %v2204_v46 = vpop.f32.mrf.mxu3 }
 0x204   : > { %v2205_v40 = vadd.f32 %v2204_v46, %v2191_v22 }
 0x206   : > { %v2234_v41 = vadd.f32 %v2205_v40, %v2147_v13 }
 0x208   : > { %v2260_v18 = vmul.f32 %v2538_v43, %v2234_v41 }
 0x20a   : > { %v2263_v59 = vadd.f32 %v2262_v26, %v2260_v18 }
 0x20b   : > { %v2206_v44 = vpop.f32.mrf.mxu3 }
 0x20c   : > { %2264 = vadd.xlane.f32.xlu2 %v2263_v59 }
 0x214   : > { %2252 = vadd.xlane.f32.xlu2 %v4749_v52  ;;  %v2285_v52 = vmul.f32 %v2284_v2, %v2247_v29 }
 0x216   : > { %v2286_v30 = vadd.f32 %v2285_v52, %v2241_v12 }
 0x218   : > { %v2287_v48 = vmul.f32 0.1, %v2286_v30 }
 0x21a   : > { %v2288_v24 = vmax.f32 %v2287_v48, 0.0 }
 0x21c   : > { %v2289_v22 = vmin.f32 %v2288_v24, 100.0 }
 0x236   : > { %v2259_v25 = vpop.xlane.xlu0 %2258 }
 0x237   : > { %v2292_v45 = vmul.f32 5.0, %v2259_v25 }
 0x239   : > { %v2293_v7 = vmax.f32 %v2292_v45, 0.0 }
 0x23b   : > { %v2294_v55 = vmin.f32 %v2293_v7, 100.0 }
 0x27f   : > { %v2265_v6 = vpop.xlane.xlu2 %2264 }
 0x280   : > { %v2295_v37 = vmax.f32 %v2265_v6, 0.0 }
 0x282   : > { %v2296_v0 = vmin.f32 %v2295_v37, 1000.0 }
 0x284   : > { %v2297_v19 = vmul.f32 100.0, %v2296_v0 }
 0x286   : > { %v2298_v34 = vmax.f32 %v2297_v19, 0.0 }
 0x287   : > { %v2253_v47 = vpop.xlane.xlu2 %2252 }
 0x288   : > { %v2290_v62 = vmax.f32 %v2253_v47, 0.0  ;;  %v2299_v42 = vmin.f32 %v2298_v34, 100.0 }
 0x28a   : > { %v2291_v51 = vmin.f32 %v2290_v62, 100.0 }
 0x28c   : > { %v2300_v36 = vadd.f32 %v2291_v51, %v2289_v22 }
 0x28e   : > { %v2301_v49 = vadd.f32 %v2300_v36, %v2299_v42 }
 0x290   : > { %v2302_v8 = vadd.f32 %v2301_v49, %v2294_v55 }
 0x292   : > { %2304 = vst.msk [vmem:[%s315_s21] sm:$0xff] %vm2303_vm2, %v2302_v8 }
 0x293 PF: > { %p17_p7 = scmp.ge.s32.totalorder %s2883_s20, 4   ;;  %s5328_s15 = smov %s2816_s16 }
 0x294   : > { %s5329_s16 = smov %s2820_s17  ;;  %s5330_s17 = smov %s2893_s23 }
 0x295   : > { %s5331_s18 = smov %s2883_s20  ;;  %19 = sbr.rel (!%p17_p7) target bundleno = 5 (0x5), region = 103 }
 0x29a   :  { %2324 = vsyncpa [#allocation4], 1 }
 0x29b   :  { %2326 = vsyncpa [#allocation4 + $0x1], 1 }
 0x29c   :  { %2327 = vsyncpa [#allocation6], 1 }
 0x29d   :  { %2329 = vsyncpa [#allocation6 + $0x1], 1 }

</bundles_post_ra>
